<compile_context>
chip_gen: v7x
topology: tpu7x:2x2x1
jax: 0.10.0
libtpu: 0.0.40
codegen_flags: <defaults>
</compile_context>

<pallas_src>
import math

import jax
import jax.numpy as jnp
from jax import lax
from jax.experimental import pallas as pl
from jax.experimental.pallas import tpu as pltpu


def make_conv_kernel(num_nodes, tile_e, hidden, final_scale):
    def kernel(nfexp_ref, src_ref, dst_ref, rec_ref, wcomb_ref, w2_ref, r_ref,
               out_ref):
        e = pl.program_id(0)

        # ---- init resident output block on the first edge tile ----
        @pl.when(e == 0)
        def _init():
            out_ref[...] = jnp.zeros_like(out_ref)

        # ---- gather + broadcast to path lanes in one MXU op (exact f32 one-hot) ----
        src_oh = (lax.broadcasted_iota(jnp.int32, (tile_e, num_nodes), 1)
                  == src_ref[...]).astype(jnp.float32)                   # (TE, N)
        x_bcast = jnp.dot(src_oh, nfexp_ref[...],
                          preferred_element_type=jnp.float32)            # (TE, P)

        # ---- combined first matmul: fc1 (scaled) || attr -> path-lane broadcast ----
        z = jnp.dot(rec_ref[...], wcomb_ref[...],
                    preferred_element_type=jnp.float32)                  # (TE, H+P)
        h = jnp.maximum(z[:, :hidden], 0.0)                              # (TE, H)
        a_bcast = z[:, hidden:]                                          # (TE, P)

        # ---- fc2 on the MXU in bf16 (dominant matmul), f32 accumulation ----
        w_flat = jnp.dot(h.astype(jnp.bfloat16), w2_ref[...],
                         preferred_element_type=jnp.float32)             # (TE, P)

        # ---- lane-dense tensor product + static-matrix path reduction (MXU) ----
        ew = w_flat * x_bcast * a_bcast                                  # (TE, P)
        edge_feat = jnp.dot(ew, r_ref[...],
                            preferred_element_type=jnp.float32)          # (TE, Cout)

        # ---- scatter-add over edge_dst (f32 one-hot, MXU) into resident output ----
        dst_oh = (lax.broadcasted_iota(jnp.int32, (num_nodes, tile_e), 0)
                  == dst_ref[...]).astype(jnp.float32)                   # (N, TE)
        out_ref[...] += jnp.dot(dst_oh, edge_feat,
                                preferred_element_type=jnp.float32)      # (N, Cout)

        # ---- finalize: apply all folded normalizations once ----
        @pl.when(e == pl.num_programs(0) - 1)
        def _fin():
            out_ref[...] = out_ref[...] * final_scale

    return kernel


def convolution_forward(node_features, edge_src, edge_dst, edge_attr,
                        edge_scalars, w_fc1, w_fc2, num_neighbors, tile_e=512):
    N, cin = node_features.shape
    E, csh = edge_attr.shape
    k_in, hidden = w_fc1.shape
    weight_numel = w_fc2.shape[1]
    cout = weight_numel // (cin * csh)
    P = cin * csh * cout
    assert P == weight_numel

    # --- pad edge count up to a multiple of tile_e (padded edges contribute 0) ---
    e_pad = max(tile_e, ((E + tile_e - 1) // tile_e) * tile_e)
    pe = e_pad - E

    # --- packed per-edge record: [ edge_scalars | edge_attr ], sublane-friendly ---
    sc_slot = ((k_in + 7) // 8) * 8
    attr_slot = ((csh + 7) // 8) * 8
    rec_w = sc_slot + attr_slot
    rec = jnp.zeros((e_pad, rec_w), jnp.float32)
    rec = rec.at[:E, :k_in].set(edge_scalars.astype(jnp.float32))
    rec = rec.at[:E, sc_slot:sc_slot + csh].set(edge_attr.astype(jnp.float32))

    src_p = jnp.pad(edge_src.astype(jnp.int32), (0, pe),
                    constant_values=0).reshape(e_pad, 1)
    dst_p = jnp.pad(edge_dst.astype(jnp.int32), (0, pe),
                    constant_values=N).reshape(1, e_pad)   # N == out of range -> dropped

    # --- static path-index maps (p = i*csh*cout + j*cout + k) ---
    p_idx = jnp.arange(P)
    j_of_p = (p_idx // cout) % csh
    k_of_p = p_idx % cout

    # node features pre-broadcast to path lanes (exact replication), resident (N, P)
    nf_exp = jnp.repeat(node_features.astype(jnp.float32), csh * cout, axis=1)

    # combined first-layer weight: fc1 with 1/sqrt(fan_in) folded, plus attr broadcast
    w_comb = jnp.zeros((rec_w, hidden + P), jnp.float32)
    w_comb = w_comb.at[:k_in, :hidden].set(
        w_fc1.astype(jnp.float32) * (1.0 / math.sqrt(k_in)))
    ba = (jnp.arange(csh)[:, None] == j_of_p[None, :]).astype(jnp.float32)   # (csh, P)
    w_comb = w_comb.at[sc_slot:sc_slot + csh, hidden:].set(ba)

    # fc2 weights in bf16 (halves resident VMEM / DMA, MXU-fast; accum stays f32)
    w2_bf16 = w_fc2.astype(jnp.bfloat16)                                     # (H, P)

    # static 0/1 path -> output-channel reduction matrix
    r_mat = (k_of_p[:, None] == jnp.arange(cout)[None, :]).astype(jnp.float32)  # (P, Cout)

    # folded normalizations applied once at finalize
    final_scale = (1.0 / math.sqrt(hidden)) \
                  * (1.0 / math.sqrt(cin * csh)) \
                  * (1.0 / math.sqrt(num_neighbors))

    n_tiles = e_pad // tile_e
    kernel = make_conv_kernel(N, tile_e, hidden, final_scale)

    grid_spec = pltpu.PrefetchScalarGridSpec(
        num_scalar_prefetch=0,
        grid=(n_tiles,),
        in_specs=[
            pl.BlockSpec((N, P), lambda e: (0, 0)),                 # nf_exp (resident)
            pl.BlockSpec((tile_e, 1), lambda e: (e, 0)),            # edge_src tile
            pl.BlockSpec((1, tile_e), lambda e: (0, e)),            # edge_dst tile
            pl.BlockSpec((tile_e, rec_w), lambda e: (e, 0)),        # packed edge record tile
            pl.BlockSpec((rec_w, hidden + P), lambda e: (0, 0)),    # fc1 || Ba (resident)
            pl.BlockSpec((hidden, P), lambda e: (0, 0)),            # fc2 bf16 (resident)
            pl.BlockSpec((P, cout), lambda e: (0, 0)),              # path reduction R (resident)
        ],
        out_specs=pl.BlockSpec((N, cout), lambda e: (0, 0)),        # resident f32 accumulator
        scratch_shapes=[],
    )

    flops = 2 * e_pad * (N * P + rec_w * (hidden + P) + hidden * P
                         + 2 * P + P * cout + N * cout)
    bytes_accessed = (4 * (nf_exp.size + e_pad * (rec_w + 2)
                           + w_comb.size + r_mat.size + N * cout)
                      + 2 * w2_bf16.size)
    cost = pl.CostEstimate(flops=flops, transcendentals=0,
                           bytes_accessed=bytes_accessed)

    return pl.pallas_call(
        kernel,
        out_shape=jax.ShapeDtypeStruct((N, cout), jnp.float32),
        grid_spec=grid_spec,
        compiler_params=pltpu.CompilerParams(
            dimension_semantics=("arbitrary",)),                    # edge axis is a reduction
        cost_estimate=cost,
    )(nf_exp, src_p, dst_p, rec, w_comb, w2_bf16, r_mat)


def reference(node_features, edge_src, edge_dst, edge_attr, edge_scalars,
              w_fc1, w_fc2, num_neighbors):
    N, cin = node_features.shape
    E, csh = edge_attr.shape
    cout = w_fc2.shape[1] // (cin * csh)
    h = jax.nn.relu((edge_scalars @ w_fc1) / jnp.sqrt(float(w_fc1.shape[0])))
    w = ((h @ w_fc2) / jnp.sqrt(float(w_fc1.shape[1]))).reshape(E, cin, csh, cout)
    x1 = node_features[edge_src]
    ef = jnp.einsum("ei,ej,eijk->ek", x1, edge_attr, w) / jnp.sqrt(cin * csh)
    out = jnp.zeros((N, cout), jnp.float32).at[edge_dst].add(ef)
    return out / jnp.sqrt(num_neighbors)


if __name__ == "__main__":
    N, E = 64, 1024                # nodes, edges (E = 2 edge tiles of 512)
    CIN, CSH, COUT = 4, 4, 8
    HIDDEN = 256
    NUM_NEIGHBORS = float(E) / float(N)
    weight_numel = CIN * CSH * COUT

    key = jax.random.PRNGKey(0)
    k_nf, k_attr, k_sc, k_w1, k_w2, k_src, k_dst = jax.random.split(key, 7)
    node_features = jax.random.normal(k_nf, (N, CIN), jnp.float32)
    edge_attr = jax.random.normal(k_attr, (E, CSH), jnp.float32)
    edge_scalars = jax.random.normal(k_sc, (E, 3), jnp.float32)
    w_fc1 = jax.random.normal(k_w1, (3, HIDDEN), jnp.float32)
    w_fc2 = jax.random.normal(k_w2, (HIDDEN, weight_numel), jnp.float32)
    edge_src = jax.random.randint(k_src, (E,), 0, N, jnp.int32)
    edge_dst = jax.random.randint(k_dst, (E,), 0, N, jnp.int32)

    out = convolution_forward(node_features, edge_src, edge_dst, edge_attr,
                              edge_scalars, w_fc1, w_fc2, NUM_NEIGHBORS)
    out = jax.block_until_ready(out)

    ref = reference(node_features, edge_src, edge_dst, edge_attr,
                    edge_scalars, w_fc1, w_fc2, NUM_NEIGHBORS)
    assert out.shape == (N, COUT)
    assert jnp.allclose(out, ref, rtol=5e-2, atol=5e-2), "mismatch vs reference"
    print("KERNEL_OK")
</pallas_src>

<mosaic_0001>
module attributes {stable_mosaic.version = 11 : i64} {
  func.func @kernel(%arg0: i32, %arg1: memref<64x128xf32, #tpu.memory_space<vmem>>, %arg2: memref<512x1xi32, #tpu.memory_space<vmem>>, %arg3: memref<1x512xi32, #tpu.memory_space<vmem>>, %arg4: memref<512x16xf32, #tpu.memory_space<vmem>>, %arg5: memref<16x384xf32, #tpu.memory_space<vmem>>, %arg6: memref<256x128xbf16, #tpu.memory_space<vmem>>, %arg7: memref<128x8xf32, #tpu.memory_space<vmem>>, %arg8: memref<64x8xf32, #tpu.memory_space<vmem>>) attributes {dimension_semantics = [#tpu.dimension_semantics<arbitrary>], iteration_bounds = array<i64: 2>, scalar_prefetch = 0 : i64, scratch_operands = 0 : i64, tpu.core_type = #tpu.core_type<tc>, window_params = [{pipeline_mode = #tpu.pipeline_mode<synchronous>, transform_indices = @transform_0, window_bounds = array<i64: 64, 128>}, {transform_indices = @transform_1, window_bounds = array<i64: 512, 1>}, {transform_indices = @transform_2, window_bounds = array<i64: 1, 512>}, {transform_indices = @transform_3, window_bounds = array<i64: 512, 16>}, {pipeline_mode = #tpu.pipeline_mode<synchronous>, transform_indices = @transform_4, window_bounds = array<i64: 16, 384>}, {pipeline_mode = #tpu.pipeline_mode<synchronous>, transform_indices = @transform_5, window_bounds = array<i64: 256, 128>}, {pipeline_mode = #tpu.pipeline_mode<synchronous>, transform_indices = @transform_6, window_bounds = array<i64: 128, 8>}, {pipeline_mode = #tpu.pipeline_mode<synchronous>, transform_indices = @transform_7, window_bounds = array<i64: 64, 8>}]} {
    %c0_i32 = arith.constant 0 : i32
    %0 = arith.cmpi eq, %arg0, %c0_i32 : i32
    %1 = arith.extui %0 : i1 to i32
    %c0_i32_0 = arith.constant 0 : i32
    %2 = arith.cmpi ne, %1, %c0_i32_0 : i32
    scf.if %2 {
      %cst_24 = arith.constant 0.000000e+00 : f32
      %38 = vector.broadcast %cst_24 : f32 to vector<64x8xf32>
      %c0_25 = arith.constant 0 : index
      %c0_26 = arith.constant 0 : index
      %39 = vector.load %arg8[%c0_25, %c0_26] : memref<64x8xf32, #tpu.memory_space<vmem>>, vector<64x8xf32>
      tpu.vector_store %arg8[%c0_25, %c0_26], %38 {strides = array<i32>} : memref<64x8xf32, #tpu.memory_space<vmem>>, vector<64x8xf32>,
    } else {
    }
    %3 = tpu.iota {dimensions = array<i32: 1>} : vector<512x64xi32>
    %c0 = arith.constant 0 : index
    %c0_1 = arith.constant 0 : index
    %4 = vector.load %arg2[%c0, %c0_1] : memref<512x1xi32, #tpu.memory_space<vmem>>, vector<512x1xi32>
    %5 = vector.broadcast %4 : vector<512x1xi32> to vector<512x64xi32>
    %6 = arith.cmpi eq, %3, %5 : vector<512x64xi32>
    %7 = arith.extui %6 : vector<512x64xi1> to vector<512x64xi32>
    %8 = arith.sitofp %7 : vector<512x64xi32> to vector<512x64xf32>
    %c0_2 = arith.constant 0 : index
    %c0_3 = arith.constant 0 : index
    %9 = vector.load %arg1[%c0_2, %c0_3] : memref<64x128xf32, #tpu.memory_space<vmem>>, vector<64x128xf32>
    %cst = arith.constant dense<0.000000e+00> : vector<512x128xf32>
    %10 = tpu.matmul %8, %9, %cst {dimension_numbers = #tpu.dot_dimension_numbers<[1], [0], [0], [1], [0, 0, 1, 1], [], []>} : vector<512x64xf32>, vector<64x128xf32>, vector<512x128xf32> -> vector<512x128xf32>
    %c0_4 = arith.constant 0 : index
    %c0_5 = arith.constant 0 : index
    %11 = vector.load %arg4[%c0_4, %c0_5] : memref<512x16xf32, #tpu.memory_space<vmem>>, vector<512x16xf32>
    %c0_6 = arith.constant 0 : index
    %c0_7 = arith.constant 0 : index
    %12 = vector.load %arg5[%c0_6, %c0_7] : memref<16x384xf32, #tpu.memory_space<vmem>>, vector<16x384xf32>
    %cst_8 = arith.constant dense<0.000000e+00> : vector<512x384xf32>
    %13 = tpu.matmul %11, %12, %cst_8 {dimension_numbers = #tpu.dot_dimension_numbers<[1], [0], [0], [1], [0, 0, 1, 1], [], []>} : vector<512x16xf32>, vector<16x384xf32>, vector<512x384xf32> -> vector<512x384xf32>
    %14 = vector.extract_strided_slice %13 {offsets = [0, 0], sizes = [512, 256], strides = [1, 1]} : vector<512x384xf32> to vector<512x256xf32>
    %cst_9 = arith.constant 0.000000e+00 : f32
    %15 = vector.broadcast %cst_9 : f32 to vector<512x256xf32>
    %16 = arith.maximumf %14, %15 : vector<512x256xf32>
    %17 = vector.extract_strided_slice %13 {offsets = [0, 256], sizes = [512, 128], strides = [1, 1]} : vector<512x384xf32> to vector<512x128xf32>
    %18 = arith.truncf %16 : vector<512x256xf32> to vector<512x256xbf16>
    %c0_10 = arith.constant 0 : index
    %c0_11 = arith.constant 0 : index
    %19 = vector.load %arg6[%c0_10, %c0_11] : memref<256x128xbf16, #tpu.memory_space<vmem>>, vector<256x128xbf16>
    %cst_12 = arith.constant dense<0.000000e+00> : vector<512x128xf32>
    %20 = tpu.matmul %18, %19, %cst_12 {dimension_numbers = #tpu.dot_dimension_numbers<[1], [0], [0], [1], [0, 0, 1, 1], [], []>} : vector<512x256xbf16>, vector<256x128xbf16>, vector<512x128xf32> -> vector<512x128xf32>
    %21 = arith.mulf %20, %10 : vector<512x128xf32>
    %22 = arith.mulf %21, %17 : vector<512x128xf32>
    %c0_13 = arith.constant 0 : index
    %c0_14 = arith.constant 0 : index
    %23 = vector.load %arg7[%c0_13, %c0_14] : memref<128x8xf32, #tpu.memory_space<vmem>>, vector<128x8xf32>
    %cst_15 = arith.constant dense<0.000000e+00> : vector<512x8xf32>
    %24 = tpu.matmul %22, %23, %cst_15 {dimension_numbers = #tpu.dot_dimension_numbers<[1], [0], [0], [1], [0, 0, 1, 1], [], []>} : vector<512x128xf32>, vector<128x8xf32>, vector<512x8xf32> -> vector<512x8xf32>
    %25 = tpu.iota {dimensions = array<i32: 0>} : vector<64x512xi32>
    %c0_16 = arith.constant 0 : index
    %c0_17 = arith.constant 0 : index
    %26 = vector.load %arg3[%c0_16, %c0_17] : memref<1x512xi32, #tpu.memory_space<vmem>>, vector<1x512xi32>
    %27 = vector.broadcast %26 : vector<1x512xi32> to vector<64x512xi32>
    %28 = arith.cmpi eq, %25, %27 : vector<64x512xi32>
    %29 = arith.extui %28 : vector<64x512xi1> to vector<64x512xi32>
    %30 = arith.sitofp %29 : vector<64x512xi32> to vector<64x512xf32>
    %c0_18 = arith.constant 0 : index
    %c0_19 = arith.constant 0 : index
    %31 = vector.load %arg8[%c0_18, %c0_19] : memref<64x8xf32, #tpu.memory_space<vmem>>, vector<64x8xf32>
    %cst_20 = arith.constant dense<0.000000e+00> : vector<64x8xf32>
    %32 = tpu.matmul %30, %24, %cst_20 {dimension_numbers = #tpu.dot_dimension_numbers<[1], [0], [0], [1], [0, 0, 1, 1], [], []>} : vector<64x512xf32>, vector<512x8xf32>, vector<64x8xf32> -> vector<64x8xf32>
    %33 = arith.addf %31, %32 : vector<64x8xf32>
    %c0_21 = arith.constant 0 : index
    %c0_22 = arith.constant 0 : index
    %34 = vector.load %arg8[%c0_21, %c0_22] : memref<64x8xf32, #tpu.memory_space<vmem>>, vector<64x8xf32>
    tpu.vector_store %arg8[%c0_21, %c0_22], %33 {strides = array<i32>} : memref<64x8xf32, #tpu.memory_space<vmem>>, vector<64x8xf32>,
    %c1_i32 = arith.constant 1 : i32
    %35 = arith.cmpi eq, %arg0, %c1_i32 : i32
    %36 = arith.extui %35 : i1 to i32
    %c0_i32_23 = arith.constant 0 : i32
    %37 = arith.cmpi ne, %36, %c0_i32_23 : i32
    scf.if %37 {
      %c0_24 = arith.constant 0 : index
      %c0_25 = arith.constant 0 : index
      %38 = vector.load %arg8[%c0_24, %c0_25] : memref<64x8xf32, #tpu.memory_space<vmem>>, vector<64x8xf32>
      %cst_26 = arith.constant 3.906250e-03 : f32
      %39 = vector.broadcast %cst_26 : f32 to vector<64x8xf32>
      %40 = arith.mulf %38, %39 : vector<64x8xf32>
      %c0_27 = arith.constant 0 : index
      %c0_28 = arith.constant 0 : index
      %41 = vector.load %arg8[%c0_27, %c0_28] : memref<64x8xf32, #tpu.memory_space<vmem>>, vector<64x8xf32>
      tpu.vector_store %arg8[%c0_27, %c0_28], %40 {strides = array<i32>} : memref<64x8xf32, #tpu.memory_space<vmem>>, vector<64x8xf32>,
    } else {
    }
    return
  }
  func.func @transform_0(%arg0: i32) -> (i32, i32) {
    %c0_i32 = arith.constant 0 : i32
    %c0_i32_0 = arith.constant 0 : i32
    %c0_i32_1 = arith.constant 0 : i32
    return %c0_i32, %c0_i32_0 : i32, i32
  }
  func.func @transform_1(%arg0: i32) -> (i32, i32) {
    %c0_i32 = arith.constant 0 : i32
    %c0_i32_0 = arith.constant 0 : i32
    return %arg0, %c0_i32 : i32, i32
  }
  func.func @transform_2(%arg0: i32) -> (i32, i32) {
    %c0_i32 = arith.constant 0 : i32
    %c0_i32_0 = arith.constant 0 : i32
    return %c0_i32, %arg0 : i32, i32
  }
  func.func @transform_3(%arg0: i32) -> (i32, i32) {
    %c0_i32 = arith.constant 0 : i32
    %c0_i32_0 = arith.constant 0 : i32
    return %arg0, %c0_i32 : i32, i32
  }
  func.func @transform_4(%arg0: i32) -> (i32, i32) {
    %c0_i32 = arith.constant 0 : i32
    %c0_i32_0 = arith.constant 0 : i32
    %c0_i32_1 = arith.constant 0 : i32
    return %c0_i32, %c0_i32_0 : i32, i32
  }
  func.func @transform_5(%arg0: i32) -> (i32, i32) {
    %c0_i32 = arith.constant 0 : i32
    %c0_i32_0 = arith.constant 0 : i32
    %c0_i32_1 = arith.constant 0 : i32
    return %c0_i32, %c0_i32_0 : i32, i32
  }
  func.func @transform_6(%arg0: i32) -> (i32, i32) {
    %c0_i32 = arith.constant 0 : i32
    %c0_i32_0 = arith.constant 0 : i32
    %c0_i32_1 = arith.constant 0 : i32
    return %c0_i32, %c0_i32_0 : i32, i32
  }
  func.func @transform_7(%arg0: i32) -> (i32, i32) {
    %c0_i32 = arith.constant 0 : i32
    %c0_i32_0 = arith.constant 0 : i32
    %c0_i32_1 = arith.constant 0 : i32
    return %c0_i32, %c0_i32_0 : i32, i32
  }
}

</mosaic_0001>

<bundles_post_ra>
// kernel: tpu_custom_call.1
= control target key start
LH: loop header
LB: loop body
LE: loop exit
PB: predicated region body
PF: predicated region fallthrough
CT: control target
= control target key end

     0   :  { %s5259_s24 = smov 0   ;;  %s7115_s0 = inlined_call_operand.vmem [shape: f32[64,128], index: 0, kind: input, shape index: {}]   ;;  %s7116_s1 = inlined_call_operand.vmem [shape: s32[1024,1], index: 1, kind: input, shape index: {}]   ;;  %s7117_s2 = inlined_call_operand.vmem [shape: s32[1,1024], index: 2, kind: input, shape index: {}]   ;;  %s7118_s3 = inlined_call_operand.vmem [shape: f32[1024,16], index: 3, kind: input, shape index: {}]   ;;  %s7119_s4 = inlined_call_operand.vmem [shape: f32[16,384], index: 4, kind: input, shape index: {}]   ;;  %s7120_s5 = inlined_call_operand.vmem [shape: bf16[256,128], index: 5, kind: input, shape index: {}]   ;;  %s7121_s6 = inlined_call_operand.vmem [shape: f32[128,8], index: 6, kind: input, shape index: {}]   ;;  %s7122_s7 = inlined_call_operand.vmem [shape: f32[64,8], index: 7, kind: output, shape index: {}]  }
   0x1 LB: > { %s5265_s25 = sadd.s32 4294967295, %s5213_s24   ;;  %p4029_p0 = scmp.ge.s32.totalorder %s5213_s24, 1  ;;  %s5213_s24 = sphi %s5259_s24, %s17_s24  }
   0x2   : > { %p254_p1 = scmp.lt.s32.totalorder %s5213_s24, 3 }
   0x4   : > { %p255_p2 = pnand %p4029_p0, %p254_p1 }
   0x6   : > { %258 = sbr.rel (%p255_p2) target bundleno = 1455 (0x5af), region = 48 }
   0xd   : > { %s4030_s26 = sshll.u32 %s5265_s25, 6  ;;  %s4032_s27 = sshll.u32 %s5265_s25, 2 }
   0xe   : > { %p291_p3 = scmp.lt.s32.totalorder %s4030_s26, 127  ;;  %p297_p4 = scmp.lt.s32.totalorder %s4032_s27, 7 }
   0xf   : > { %p4035_p5 = scmp.ne.s32.totalorder %s5265_s25, 0 }
  0x10   : > { %s7273_s26 = smov (!%p291_p3, %s4030_s26), 127  ;;  %s7275_s27 = smov (!%p297_p4, %s4032_s27), 7 }
  0x11   : > { %s4031_s28 = sshll.u32 %s7273_s26, 3  ;;  %s299_s11 = scalar_lea.vmem %s7117_s2, %s7275_s27  ;;  %vm312_vm0 = vcmask (!%p4035_p5), 64512   ;;  %v5215_v0 = vmov (!%p4035_p5), 0.0  }
  0x12   : > { %s5276_s8 = scalar_lea.vmem %s7116_s1, %s4031_s28  ;;  %s5285_s14 = scalar_lea.vmem %s7118_s3, %s4031_s28  ;;  %313 = vst.msk [vmem:[%s7122_s7] sm:$0xff] (!%p4035_p5), %vm312_vm0, %v5215_v0  ;;  %314 = vst.msk [vmem:[%s7122_s7 + $0x8] sm:$0xff] (!%p4035_p5), %vm312_vm0, %v5215_v0 }
  0x13   : > { %311 = sbr.rel (%p4035_p5) target bundleno = 26 (0x1a), region = 52  ;;  %315 = vst.msk [vmem:[%s7122_s7 + $0x10] sm:$0xff] (!%p4035_p5), %vm312_vm0, %v5215_v0  ;;  %316 = vst.msk [vmem:[%s7122_s7 + $0x18] sm:$0xff] (!%p4035_p5), %vm312_vm0, %v5215_v0 }
  0x14   : > { %317 = vst.msk [vmem:[%s7122_s7 + $0x20] sm:$0xff] (!%p4035_p5), %vm312_vm0, %v5215_v0  ;;  %318 = vst.msk [vmem:[%s7122_s7 + $0x28] sm:$0xff] (!%p4035_p5), %vm312_vm0, %v5215_v0 }
  0x15   : > { %319 = vst.msk [vmem:[%s7122_s7 + $0x30] sm:$0xff] (!%p4035_p5), %vm312_vm0, %v5215_v0  ;;  %320 = vst.msk [vmem:[%s7122_s7 + $0x38] sm:$0xff] (!%p4035_p5), %vm312_vm0, %v5215_v0 }
  0x1a PF: > { %v325_v1 = vld [vmem:[%s5276_s8 + $0x10] sm:$0xff]  ;;  %v323_v2 = vld [vmem:[%s5276_s8] sm:$0xff]  ;;  %v5216_v3 = vmov 0   ;;  %v326_v4 = vld [vmem:[%s5276_s8 + $0x18] sm:$0xff]  ;;  %v7124_v6 = vmov 0.0   ;;  %vm1427_vm1 = vcmask 130048  }
  0x1b   : > { %5180 = vset.pattern.permute.xlu1 %v5216_v3  ;;  %5179 = vset.pattern.permute.xlu0 %v5216_v3  ;;  %v324_v5 = vld [vmem:[%s5276_s8 + $0x8] sm:$0xff]  ;;  %v327_v8 = vld [vmem:[%s5276_s8 + $0x20] sm:$0xff]  ;;  %v330_v9 = vld [vmem:[%s5276_s8 + $0x38] sm:$0xff]  ;;  %vm779_vm2 = vcmask 523264   ;;  %p4372_p6 = scmp.ne.s32.totalorder %s5265_s25, 1 }
  0x1c   : > { %394 = vperm.xlu1 %5180, %v325_v1   ;;  %388 = vperm.xlu0 %5179, %v323_v2   ;;  %v328_v7 = vld [vmem:[%s5276_s8 + $0x28] sm:$0xff]  ;;  %v329_v10 = vld [vmem:[%s5276_s8 + $0x30] sm:$0xff]  ;;  %v331_v12 = vld [vmem:[%s5276_s8 + $0x40] sm:$0xff] }
  0x1d   : > { %1720 = vmatprep.mubr.f32.mxu1 %v7124_v6  ;;  %v332_v11 = vld [vmem:[%s5276_s8 + $0x48] sm:$0xff]  ;;  %v334_v13 = vld [vmem:[%s5276_s8 + $0x58] sm:$0xff]  ;;  %v333_v14 = vld [vmem:[%s5276_s8 + $0x50] sm:$0xff] }
  0x1e   : > { %v771_v15 = vld [vmem:[%s7115_s0] sm:$0xff]  ;;  %v772_v16 = vld [vmem:[%s7115_s0 + $0x8] sm:$0xff]  ;;  %v773_v18 = vld [vmem:[%s7115_s0 + $0x10] sm:$0xff] }
  0x1f   : > { %v5045_v17 = vpack.c.bf16 %v772_v16, %v771_v15  ;;  %v774_v19 = vld [vmem:[%s7115_s0 + $0x18] sm:$0xff]  ;;  %v775_v21 = vld [vmem:[%s7115_s0 + $0x20] sm:$0xff]  ;;  %v336_v22 = vld [vmem:[%s5276_s8 + $0x68] sm:$0xff] }
  0x20   : > { %397 = vperm.xlu1 %5180, %v326_v4   ;;  %391 = vperm.xlu0 %5179, %v324_v5   ;;  %v5049_v20 = vpack.c.bf16 %v774_v19, %v773_v18  ;;  %v335_v23 = vld [vmem:[%s5276_s8 + $0x60] sm:$0xff]  ;;  %v776_v24 = vld [vmem:[%s7115_s0 + $0x28] sm:$0xff]  ;;  %v777_v25 = vld [vmem:[%s7115_s0 + $0x30] sm:$0xff] }
  0x21   : > { %5046 = vmatprep.subr.bf16.mxu0 %v5045_v17  ;;  %v778_v26 = vld [vmem:[%s7115_s0 + $0x38] sm:$0xff]  ;;  %v1422_v27 = vld [vmem:[%s7119_s4 + $0x8] sm:$0xff]  ;;  %v1425_v28 = vld [vmem:[%s7119_s4 + $0x20] sm:$0xff]  ;;  %v5053_v32 = vpack.c.bf16 %v776_v24, %v775_v21 }
  0x22   : > { %5048 = vmatpush3.bf16.msra.mxu0 %v5045_v17  ;;  %v1421_v29 = vld [vmem:[%s7119_s4] sm:$0xff]  ;;  %v338_v30 = vld [vmem:[%s5276_s8 + $0x78] sm:$0xff]  ;;  %v337_v31 = vld [vmem:[%s5276_s8 + $0x70] sm:$0xff]  ;;  %v5061_v33 = vpack.c.bf16 %v1425_v28, %v1422_v27  ;;  %v5057_v38 = vpack.c.bf16 %v778_v26, %v777_v25 }
  0x23   : > { %5050 = vmatprep.subr.bf16.mxu0 %v5049_v20  ;;  %v1424_v34 = vld [vmem:[%s7119_s4 + $0x18] sm:$0xff]  ;;  %v340_v36 = vld [vmem:[%s5276_s8 + $0x88] sm:$0xff]  ;;  %v339_v37 = vld [vmem:[%s5276_s8 + $0x80] sm:$0xff] }
  0x24   : > { %403 = vperm.xlu1 %5180, %v328_v7   ;;  %400 = vperm.xlu0 %5179, %v327_v8   ;;  %v5367_v35 = vpack.c.bf16 %v1424_v34, %v1421_v29  ;;  %v342_v39 = vld [vmem:[%s5276_s8 + $0x98] sm:$0xff]  ;;  %v341_v40 = vld [vmem:[%s5276_s8 + $0x90] sm:$0xff]  ;;  %v344_v41 = vld [vmem:[%s5276_s8 + $0xa8] sm:$0xff] }
  0x25   : > { %5165 = vmatprep.subr.bf16.mxu1 %v5061_v33  ;;  %v343_v42 = vld [vmem:[%s5276_s8 + $0xa0] sm:$0xff]  ;;  %v346_v43 = vld [vmem:[%s5276_s8 + $0xb8] sm:$0xff]  ;;  %v345_v44 = vld [vmem:[%s5276_s8 + $0xb0] sm:$0xff] }
  0x26   : > { %5052 = vmatpush3.bf16.msra.mxu0 %v5049_v20  ;;  %5166 = vmatpush1.bf16.msra.mxu1 %v5367_v35  ;;  %v348_v45 = vld [vmem:[%s5276_s8 + $0xc8] sm:$0xff]  ;;  %v347_v46 = vld [vmem:[%s5276_s8 + $0xc0] sm:$0xff]  ;;  %v350_v47 = vld [vmem:[%s5276_s8 + $0xd8] sm:$0xff] }
  0x27   : > { %5054 = vmatprep.subr.bf16.mxu0 %v5053_v32  ;;  %2774 = vmatprep.subr.bf16.mxu1 %v5216_v3  ;;  %v349_v48 = vld [vmem:[%s5276_s8 + $0xd0] sm:$0xff]  ;;  %v352_v49 = vld [vmem:[%s5276_s8 + $0xe8] sm:$0xff]  ;;  %v351_v50 = vld [vmem:[%s5276_s8 + $0xe0] sm:$0xff] }
  0x28   : > { %409 = vperm.xlu1 %5180, %v330_v9   ;;  %406 = vperm.xlu0 %5179, %v329_v10   ;;  %v354_v51 = vld [vmem:[%s5276_s8 + $0xf8] sm:$0xff]  ;;  %v353_v52 = vld [vmem:[%s5276_s8 + $0xf0] sm:$0xff]  ;;  %v356_v53 = vld [vmem:[%s5276_s8 + $0x108] sm:$0xff] }
  0x29   : > { %v355_v54 = vld [vmem:[%s5276_s8 + $0x100] sm:$0xff]  ;;  %v358_v55 = vld [vmem:[%s5276_s8 + $0x118] sm:$0xff]  ;;  %v357_v56 = vld [vmem:[%s5276_s8 + $0x110] sm:$0xff] }
  0x2a   : > { %5056 = vmatpush3.bf16.msra.mxu0 %v5053_v32  ;;  %v360_v57 = vld [vmem:[%s5276_s8 + $0x128] sm:$0xff]  ;;  %v359_v58 = vld [vmem:[%s5276_s8 + $0x120] sm:$0xff]  ;;  %v362_v59 = vld [vmem:[%s5276_s8 + $0x138] sm:$0xff] }
  0x2b   : > { %5058 = vmatprep.subr.bf16.mxu0 %v5057_v38  ;;  %v361_v60 = vld [vmem:[%s5276_s8 + $0x130] sm:$0xff]  ;;  %v364_v61 = vld [vmem:[%s5276_s8 + $0x148] sm:$0xff]  ;;  %v363_v62 = vld [vmem:[%s5276_s8 + $0x140] sm:$0xff] }
  0x2c   : > { %415 = vperm.xlu1 %5180, %v332_v11   ;;  %412 = vperm.xlu0 %5179, %v331_v12   ;;  %v366_v63 = vld [vmem:[%s5276_s8 + $0x158] sm:$0xff]  ;;  %v365_v0 = vld [vmem:[%s5276_s8 + $0x150] sm:$0xff]  ;;  %v368_v1 = vld [vmem:[%s5276_s8 + $0x168] sm:$0xff] }
  0x2d   : > { %v367_v2 = vld [vmem:[%s5276_s8 + $0x160] sm:$0xff]  ;;  %v370_v4 = vld [vmem:[%s5276_s8 + $0x178] sm:$0xff]  ;;  %v369_v5 = vld [vmem:[%s5276_s8 + $0x170] sm:$0xff] }
  0x2e   : > { %5060 = vmatpush3.bf16.msra.mxu0 %v5057_v38  ;;  %v372_v7 = vld [vmem:[%s5276_s8 + $0x188] sm:$0xff]  ;;  %v371_v8 = vld [vmem:[%s5276_s8 + $0x180] sm:$0xff]  ;;  %v374_v9 = vld [vmem:[%s5276_s8 + $0x198] sm:$0xff] }
  0x2f   : > { %5062 = vmatprep.subr.bf16.mxu0 %v5061_v33  ;;  %v373_v10 = vld [vmem:[%s5276_s8 + $0x190] sm:$0xff]  ;;  %v376_v11 = vld [vmem:[%s5276_s8 + $0x1a8] sm:$0xff]  ;;  %v375_v12 = vld [vmem:[%s5276_s8 + $0x1a0] sm:$0xff] }
  0x30   : > { %421 = vperm.xlu1 %5180, %v334_v13   ;;  %418 = vperm.xlu0 %5179, %v333_v14   ;;  %v378_v13 = vld [vmem:[%s5276_s8 + $0x1b8] sm:$0xff]  ;;  %v377_v14 = vld [vmem:[%s5276_s8 + $0x1b0] sm:$0xff]  ;;  %v380_v15 = vld [vmem:[%s5276_s8 + $0x1c8] sm:$0xff] }
  0x31   : > { %v379_v16 = vld [vmem:[%s5276_s8 + $0x1c0] sm:$0xff]  ;;  %v382_v17 = vld [vmem:[%s5276_s8 + $0x1d8] sm:$0xff]  ;;  %v381_v18 = vld [vmem:[%s5276_s8 + $0x1d0] sm:$0xff] }
  0x32   : > { %v384_v19 = vld [vmem:[%s5276_s8 + $0x1e8] sm:$0xff]  ;;  %v383_v20 = vld [vmem:[%s5276_s8 + $0x1e0] sm:$0xff]  ;;  %v1363_v21 = vld [vmem:[%s5285_s14 + $0x30] sm:$0xff] }
  0x33   : > { %4170 = vmatmul.mubr.msk.f32.vlgmr.msra.gmra.mrb[0].mxu1 %vm1427_vm1, %v1363_v21  ;;  %v385_v24 = vld [vmem:[%s5276_s8 + $0x1f0] sm:$0xff]  ;;  %v1364_v25 = vld [vmem:[%s5285_s14 + $0x38] sm:$0xff]  ;;  %v5181_v27 = vld [vmem:[%s7120_s5] sm:$0xff]  }
  0x34   : > { %427 = vperm.xlu1 %5180, %v336_v22   ;;  %424 = vperm.xlu0 %5179, %v335_v23   ;;  %v7123_v22 = vlaneseq  ;;  %v386_v23 = vld [vmem:[%s5276_s8 + $0x1f8] sm:$0xff]  ;;  %v1365_v28 = vld [vmem:[%s5285_s14 + $0x40] sm:$0xff]  ;;  %v1366_v32 = vld [vmem:[%s5285_s14 + $0x48] sm:$0xff] }
  0x35   : > { %1726 = vmatprep.mubr.f32.mxu1 %v7124_v6  ;;  %2775 = vmatpush1.bf16.msra.mxu1 %v5181_v27  ;;  %v1367_v38 = vld [vmem:[%s5285_s14 + $0x50] sm:$0xff] }
  0x36   : > { %v5425_v26 = vand.u32 127, %v7123_v22  ;;  %2776 = vmatprep.subr.bf16.mxu1 %v5216_v3 }
  0x37   : > { %4171 = vmatmul.mubr.msk.f32.gmra.mrb[2].mxu1 %vm1427_vm1, %v1364_v25 }
  0x38   : > { %433 = vperm.xlu1 %5180, %v338_v30   ;;  %430 = vperm.xlu0 %5179, %v337_v31  }
  0x39   : > { %1732 = vmatprep.mubr.f32.mxu1 %v7124_v6 }
  0x3b   : > { %4172 = vmatmul.mubr.msk.f32.gmra.mrb[4].mxu1 %vm1427_vm1, %v1365_v28  ;;  %v5562_v28 = vld [vmem:[%s5285_s14 + $0x98] sm:$0xff] }
  0x3c   : > { %439 = vperm.xlu1 %5180, %v340_v36   ;;  %436 = vperm.xlu0 %5179, %v339_v37  }
  0x3d   : > { %1738 = vmatprep.mubr.f32.mxu1 %v7124_v6 }
  0x3f   : > { %4173 = vmatmul.mubr.msk.f32.gmra.mrb[6].mxu1 %vm1427_vm1, %v1366_v32 }
  0x40   : > { %445 = vperm.xlu1 %5180, %v342_v39   ;;  %442 = vperm.xlu0 %5179, %v341_v40  }
  0x41   : > { %1744 = vmatprep.mubr.f32.mxu1 %v7124_v6 }
  0x43   : > { %4174 = vmatmul.mubr.msk.f32.gmra.mrb[8].mxu1 %vm1427_vm1, %v1367_v38 }
  0x44   : > { %451 = vperm.xlu1 %5180, %v344_v41   ;;  %448 = vperm.xlu0 %5179, %v343_v42  }
  0x45   : > { %1750 = vmatprep.mubr.f32.mxu1 %v7124_v6 }
  0x48   : > { %457 = vperm.xlu1 %5180, %v346_v43   ;;  %454 = vperm.xlu0 %5179, %v345_v44   ;;  %v1368_v43 = vld [vmem:[%s5285_s14 + $0x58] sm:$0xff] }
  0x49   : > { %4175 = vmatmul.mubr.msk.f32.gmra.mrb[10].mxu1 %vm1427_vm1, %v1368_v43 }
  0x4a   : > { %1756 = vmatprep.mubr.f32.mxu1 %v7124_v6 }
  0x4c   : > { %463 = vperm.xlu1 %5180, %v348_v45   ;;  %460 = vperm.xlu0 %5179, %v347_v46  }
  0x50   : > { %469 = vperm.xlu1 %5180, %v350_v47   ;;  %466 = vperm.xlu0 %5179, %v349_v48   ;;  %v1369_v48 = vld [vmem:[%s5285_s14 + $0x60] sm:$0xff] }
  0x51   : > { %4176 = vmatmul.mubr.msk.f32.gmra.mrb[12].mxu1 %vm1427_vm1, %v1369_v48  ;;  %v5611_v48 = vld [vmem:[%s5285_s14 + $0xb8] sm:$0xff] }
  0x52   : > { %1762 = vmatprep.mubr.f32.mxu1 %v7124_v6 }
  0x54   : > { %475 = vperm.xlu1 %5180, %v352_v49   ;;  %472 = vperm.xlu0 %5179, %v351_v50  }
  0x58   : > { %481 = vperm.xlu1 %5180, %v354_v51   ;;  %478 = vperm.xlu0 %5179, %v353_v52  }
  0x5c   : > { %487 = vperm.xlu1 %5180, %v356_v53   ;;  %484 = vperm.xlu0 %5179, %v355_v54   ;;  %v1370_v53 = vld [vmem:[%s5285_s14 + $0x68] sm:$0xff] }
  0x5d   : > { %4177 = vmatmul.mubr.msk.f32.gmra.mrb[14].mxu1 %vm1427_vm1, %v1370_v53  ;;  %v5623_v53 = vld [vmem:[%s5285_s14 + $0xc0] sm:$0xff] }
  0x5e   : > { %1768 = vmatprep.mubr.f32.mxu1 %v7124_v6 }
  0x60   : > { %493 = vperm.xlu1 %5180, %v358_v55   ;;  %490 = vperm.xlu0 %5179, %v357_v56  }
  0x64   : > { %499 = vperm.xlu1 %5180, %v360_v57   ;;  %496 = vperm.xlu0 %5179, %v359_v58   ;;  %v1371_v58 = vld [vmem:[%s5285_s14 + $0x70] sm:$0xff] }
  0x65   : > { %4178 = vmatmul.mubr.msk.f32.gmra.mrb[16].mxu1 %vm1427_vm1, %v1371_v58  ;;  %v5635_v58 = vld [vmem:[%s5285_s14 + $0xc8] sm:$0xff] }
  0x66   : > { %1774 = vmatprep.mubr.f32.mxu1 %v7124_v6 }
  0x68   : > { %505 = vperm.xlu1 %5180, %v362_v59   ;;  %502 = vperm.xlu0 %5179, %v361_v60  }
  0x6c   : > { %511 = vperm.xlu1 %5180, %v364_v61   ;;  %508 = vperm.xlu0 %5179, %v363_v62  }
  0x70   : > { %517 = vperm.xlu1 %5180, %v366_v63   ;;  %514 = vperm.xlu0 %5179, %v365_v0   ;;  %v5183_v63 = vld [vmem:[%s7120_s5 + $0x10] sm:$0xff]   ;;  %v1372_v0 = vld [vmem:[%s5285_s14 + $0x78] sm:$0xff] }
  0x71   : > { %4179 = vmatmul.mubr.msk.f32.gmra.mrb[18].mxu1 %vm1427_vm1, %v1372_v0 }
  0x72   : > { %1780 = vmatprep.mubr.f32.mxu1 %v7124_v6 }
  0x74   : > { %523 = vperm.xlu1 %5180, %v368_v1   ;;  %520 = vperm.xlu0 %5179, %v367_v2  }
  0x78   : > { %529 = vperm.xlu1 %5180, %v370_v4   ;;  %526 = vperm.xlu0 %5179, %v369_v5   ;;  %v5184_v4 = vld [vmem:[%s7120_s5 + $0x18] sm:$0xff]  }
  0x7c   : > { %535 = vperm.xlu1 %5180, %v372_v7   ;;  %532 = vperm.xlu0 %5179, %v371_v8   ;;  %v5514_v8 = vld [vmem:[%s5285_s14 + $0x80] sm:$0xff] }
  0x7d   : > { %4180 = vmatmul.mubr.msk.f32.gmra.mrb[20].mxu1 %vm1427_vm1, %v5514_v8 }
  0x7e   : > { %1786 = vmatprep.mubr.f32.mxu1 %v7124_v6 }
  0x80   : > { %541 = vperm.xlu1 %5180, %v374_v9   ;;  %538 = vperm.xlu0 %5179, %v373_v10  }
  0x84   : > { %547 = vperm.xlu1 %5180, %v376_v11   ;;  %544 = vperm.xlu0 %5179, %v375_v12   ;;  %v5185_v11 = vld [vmem:[%s7120_s5 + $0x20] sm:$0xff]  }
  0x88   : > { %553 = vperm.xlu1 %5180, %v378_v13   ;;  %550 = vperm.xlu0 %5179, %v377_v14   ;;  %v5530_v14 = vld [vmem:[%s5285_s14 + $0x88] sm:$0xff] }
  0x89   : > { %4181 = vmatmul.mubr.msk.f32.gmra.mrb[22].mxu1 %vm1427_vm1, %v5530_v14 }
  0x8a   : > { %1792 = vmatprep.mubr.f32.mxu1 %v7124_v6 }
  0x8c   : > { %559 = vperm.xlu1 %5180, %v380_v15   ;;  %556 = vperm.xlu0 %5179, %v379_v16  }
  0x90   : > { %565 = vperm.xlu1 %5180, %v382_v17   ;;  %562 = vperm.xlu0 %5179, %v381_v18   ;;  %v5186_v17 = vld [vmem:[%s7120_s5 + $0x28] sm:$0xff]  }
  0x94   : > { %571 = vperm.xlu1 %5180, %v384_v19   ;;  %568 = vperm.xlu0 %5179, %v383_v20   ;;  %v5546_v20 = vld [vmem:[%s5285_s14 + $0x90] sm:$0xff] }
  0x95   : > { %4182 = vmatmul.mubr.msk.f32.gmra.mrb[24].mxu1 %vm1427_vm1, %v5546_v20 }
  0x96   : > { %1798 = vmatprep.mubr.f32.mxu1 %v7124_v6 }
  0x98   : > { %577 = vperm.xlu1 %5180, %v386_v23   ;;  %574 = vperm.xlu0 %5179, %v385_v24   ;;  %v5187_v24 = vld [vmem:[%s7120_s5 + $0x30] sm:$0xff]  }
  0x99   : > { %4183 = vmatmul.mubr.msk.f32.gmra.mrb[26].mxu1 %vm1427_vm1, %v5562_v28 }
  0x9a   : > { %1804 = vmatprep.mubr.f32.mxu1 %v7124_v6 }
  0x9b   : > { %v395_v29 = vpop.permute.xlu1 %394  ;;  %v389_v30 = vpop.permute.xlu0 %388 }
  0x9c   : > { %vm579_vm3 = vcmp.eq.s32.totalorder %v5425_v26, %v389_v30  ;;  %vm581_vm4 = vcmp.eq.s32.totalorder %v5425_v26, %v395_v29 }
  0x9d   : > { %v4036_v31 = vsel %vm579_vm3, 1.0, %v7124_v6  ;;  %v4038_v36 = vsel %vm581_vm4, 1.0, %v7124_v6 }
  0x9e   : > { %4721 = vmatprep.mubr.msk.f32.mxu0 %vm779_vm2, %v4036_v31 }
  0x9f   : > { %v398_v33 = vpop.permute.xlu1 %397  ;;  %v392_v34 = vpop.permute.xlu0 %391 }
  0xa0   : > { %vm580_vm5 = vcmp.eq.s32.totalorder %v5425_v26, %v392_v34  ;;  %vm582_vm6 = vcmp.eq.s32.totalorder %v5425_v26, %v398_v33  ;;  %v5575_v33 = vld [vmem:[%s5285_s14 + $0xa0] sm:$0xff] }
  0xa1   : > { %v4037_v37 = vsel %vm580_vm5, 1.0, %v7124_v6  ;;  %v4039_v41 = vsel %vm582_vm6, 1.0, %v7124_v6  ;;  %4184 = vmatmul.mubr.msk.f32.gmra.mrb[28].mxu1 %vm1427_vm1, %v5575_v33 }
  0xa2   : > { %4722 = vmatmul.mubr.msk.f32.vlgmr.msra.gmra.mrb[0].mxu0 %vm779_vm2, %v4037_v37  ;;  %1810 = vmatprep.mubr.f32.mxu1 %v7124_v6 }
  0xa3   : > { %v404_v39 = vpop.permute.xlu1 %403  ;;  %v401_v40 = vpop.permute.xlu0 %400  ;;  %4724 = vmatprep.mubr.msk.f32.mxu0 %vm779_vm2, %v4038_v36  ;;  %5064 = vmatpush1.bf16.msra.mxu0 %v5367_v35  ;;  %v5182_v35 = vld [vmem:[%s7120_s5 + $0x8] sm:$0xff]  }
  0xa4   : > { %vm583_vm7 = vcmp.eq.s32.totalorder %v5425_v26, %v401_v40  ;;  %vm584_vm8 = vcmp.eq.s32.totalorder %v5425_v26, %v404_v39  ;;  %2777 = vmatpush1.bf16.msra.mxu1 %v5182_v35  ;;  %v5587_v39 = vld [vmem:[%s5285_s14 + $0xa8] sm:$0xff]  ;;  %v5599_v35 = vld [vmem:[%s5285_s14 + $0xb0] sm:$0xff] }
  0xa5   : > { %v4040_v42 = vsel %vm583_vm7, 1.0, %v7124_v6  ;;  %v4041_v46 = vsel %vm584_vm8, 1.0, %v7124_v6  ;;  %2778 = vmatprep.subr.bf16.mxu1 %v5216_v3  ;;  %4185 = vmatmul.mubr.msk.f32.gmra.mrb[30].mxu1 %vm1427_vm1, %v5587_v39 }
  0xa6   : > { %4725 = vmatmul.mubr.msk.f32.gmra.mrb[2].mxu0 %vm779_vm2, %v4039_v41  ;;  %1816 = vmatprep.mubr.f32.mxu1 %v7124_v6 }
  0xa7   : > { %v410_v44 = vpop.permute.xlu1 %409  ;;  %v407_v45 = vpop.permute.xlu0 %406  ;;  %4727 = vmatprep.mubr.msk.f32.mxu0 %vm779_vm2, %v4040_v42 }
  0xa8   : > { %vm585_vm9 = vcmp.eq.s32.totalorder %v5425_v26, %v407_v45  ;;  %vm586_vm10 = vcmp.eq.s32.totalorder %v5425_v26, %v410_v44  ;;  %2779 = vmatpush1.bf16.msra.mxu1 %v5183_v63  ;;  %v5647_v63 = vld [vmem:[%s5285_s14 + $0xd0] sm:$0xff] }
  0xa9   : > { %v4042_v47 = vsel %vm585_vm9, 1.0, %v7124_v6  ;;  %v4043_v51 = vsel %vm586_vm10, 1.0, %v7124_v6  ;;  %2780 = vmatprep.subr.bf16.mxu1 %v5216_v3  ;;  %4186 = vmatmul.mubr.msk.f32.gmra.mrb[32].mxu1 %vm1427_vm1, %v5599_v35 }
  0xaa   : > { %4728 = vmatmul.mubr.msk.f32.gmra.mrb[4].mxu0 %vm779_vm2, %v4041_v46  ;;  %1822 = vmatprep.mubr.f32.mxu1 %v7124_v6 }
  0xab   : > { %v416_v49 = vpop.permute.xlu1 %415  ;;  %v413_v50 = vpop.permute.xlu0 %412  ;;  %4730 = vmatprep.mubr.msk.f32.mxu0 %vm779_vm2, %v4042_v47 }
  0xac   : > { %vm587_vm11 = vcmp.eq.s32.totalorder %v5425_v26, %v413_v50  ;;  %vm588_vm12 = vcmp.eq.s32.totalorder %v5425_v26, %v416_v49  ;;  %2781 = vmatpush1.bf16.msra.mxu1 %v5184_v4 }
  0xad   : > { %v4044_v52 = vsel %vm587_vm11, 1.0, %v7124_v6  ;;  %v4045_v56 = vsel %vm588_vm12, 1.0, %v7124_v6  ;;  %2782 = vmatprep.subr.bf16.mxu1 %v5216_v3  ;;  %4187 = vmatmul.mubr.msk.f32.gmra.mrb[34].mxu1 %vm1427_vm1, %v5611_v48 }
  0xae   : > { %4731 = vmatmul.mubr.msk.f32.gmra.mrb[6].mxu0 %vm779_vm2, %v4043_v51  ;;  %1828 = vmatprep.mubr.f32.mxu1 %v7124_v6 }
  0xaf   : > { %v422_v54 = vpop.permute.xlu1 %421  ;;  %v419_v55 = vpop.permute.xlu0 %418  ;;  %4733 = vmatprep.mubr.msk.f32.mxu0 %vm779_vm2, %v4044_v52 }
  0xb0   : > { %vm589_vm13 = vcmp.eq.s32.totalorder %v5425_v26, %v419_v55  ;;  %vm590_vm14 = vcmp.eq.s32.totalorder %v5425_v26, %v422_v54  ;;  %2783 = vmatpush1.bf16.msra.mxu1 %v5185_v11 }
  0xb1   : > { %v4046_v57 = vsel %vm589_vm13, 1.0, %v7124_v6  ;;  %v4047_v61 = vsel %vm590_vm14, 1.0, %v7124_v6  ;;  %2784 = vmatprep.subr.bf16.mxu1 %v5216_v3  ;;  %4188 = vmatmul.mubr.msk.f32.gmra.mrb[36].mxu1 %vm1427_vm1, %v5623_v53 }
  0xb2   : > { %4734 = vmatmul.mubr.msk.f32.gmra.mrb[8].mxu0 %vm779_vm2, %v4045_v56  ;;  %1834 = vmatprep.mubr.f32.mxu1 %v7124_v6 }
  0xb3   : > { %v428_v59 = vpop.permute.xlu1 %427  ;;  %v425_v60 = vpop.permute.xlu0 %424  ;;  %4736 = vmatprep.mubr.msk.f32.mxu0 %vm779_vm2, %v4046_v57 }
  0xb4   : > { %vm591_vm15 = vcmp.eq.s32.totalorder %v5425_v26, %v425_v60  ;;  %vm592_vm0 = vcmp.eq.s32.totalorder %v5425_v26, %v428_v59  ;;  %2785 = vmatpush1.bf16.msra.mxu1 %v5186_v17 }
  0xb5   : > { %v4048_v62 = vsel %vm591_vm15, 1.0, %v7124_v6  ;;  %v4049_v5 = vsel %vm592_vm0, 1.0, %v7124_v6  ;;  %2786 = vmatprep.subr.bf16.mxu1 %v5216_v3  ;;  %4189 = vmatmul.mubr.msk.f32.gmra.mrb[38].mxu1 %vm1427_vm1, %v5635_v58 }
  0xb6   : > { %4737 = vmatmul.mubr.msk.f32.gmra.mrb[10].mxu0 %vm779_vm2, %v4047_v61  ;;  %1840 = vmatprep.mubr.f32.mxu1 %v7124_v6 }
  0xb7   : > { %v434_v1 = vpop.permute.xlu1 %433  ;;  %v431_v2 = vpop.permute.xlu0 %430  ;;  %4739 = vmatprep.mubr.msk.f32.mxu0 %vm779_vm2, %v4048_v62 }
  0xb8   : > { %vm593_vm3 = vcmp.eq.s32.totalorder %v5425_v26, %v431_v2  ;;  %vm594_vm4 = vcmp.eq.s32.totalorder %v5425_v26, %v434_v1  ;;  %2787 = vmatpush1.bf16.msra.mxu1 %v5187_v24 }
  0xb9   : > { %v4050_v7 = vsel %vm593_vm3, 1.0, %v7124_v6  ;;  %v4051_v12 = vsel %vm594_vm4, 1.0, %v7124_v6  ;;  %2788 = vmatprep.subr.bf16.mxu1 %v5216_v3  ;;  %4190 = vmatmul.mubr.msk.f32.gmra.mrb[40].mxu1 %vm1427_vm1, %v5647_v63 }
  0xba   : > { %4740 = vmatmul.mubr.msk.f32.gmra.mrb[12].mxu0 %vm779_vm2, %v4049_v5  ;;  %1846 = vmatprep.mubr.f32.mxu1 %v7124_v6  ;;  %v5659_v5 = vld [vmem:[%s5285_s14 + $0xd8] sm:$0xff] }
  0xbb   : > { %v440_v9 = vpop.permute.xlu1 %439  ;;  %v437_v10 = vpop.permute.xlu0 %436  ;;  %4742 = vmatprep.mubr.msk.f32.mxu0 %vm779_vm2, %v4050_v7 }
  0xbc   : > { %vm595_vm5 = vcmp.eq.s32.totalorder %v5425_v26, %v437_v10  ;;  %vm596_vm6 = vcmp.eq.s32.totalorder %v5425_v26, %v440_v9 }
  0xbd   : > { %v4052_v13 = vsel %vm595_vm5, 1.0, %v7124_v6  ;;  %v4053_v18 = vsel %vm596_vm6, 1.0, %v7124_v6  ;;  %4191 = vmatmul.mubr.msk.f32.gmra.mrb[42].mxu1 %vm1427_vm1, %v5659_v5 }
  0xbe   : > { %4743 = vmatmul.mubr.msk.f32.gmra.mrb[14].mxu0 %vm779_vm2, %v4051_v12  ;;  %1852 = vmatprep.mubr.f32.mxu1 %v7124_v6  ;;  %v5671_v12 = vld [vmem:[%s5285_s14 + $0xe0] sm:$0xff] }
  0xbf   : > { %v446_v15 = vpop.permute.xlu1 %445  ;;  %v443_v16 = vpop.permute.xlu0 %442  ;;  %4745 = vmatprep.mubr.msk.f32.mxu0 %vm779_vm2, %v4052_v13 }
  0xc0   : > { %vm597_vm7 = vcmp.eq.s32.totalorder %v5425_v26, %v443_v16  ;;  %vm598_vm8 = vcmp.eq.s32.totalorder %v5425_v26, %v446_v15 }
  0xc1   : > { %v4054_v19 = vsel %vm597_vm7, 1.0, %v7124_v6  ;;  %v4055_v25 = vsel %vm598_vm8, 1.0, %v7124_v6  ;;  %4192 = vmatmul.mubr.msk.f32.gmra.mrb[44].mxu1 %vm1427_vm1, %v5671_v12 }
  0xc2   : > { %4746 = vmatmul.mubr.msk.f32.gmra.mrb[16].mxu0 %vm779_vm2, %v4053_v18  ;;  %1858 = vmatprep.mubr.f32.mxu1 %v7124_v6  ;;  %v5683_v18 = vld [vmem:[%s5285_s14 + $0xe8] sm:$0xff] }
  0xc3   : > { %v452_v21 = vpop.permute.xlu1 %451  ;;  %v449_v23 = vpop.permute.xlu0 %448  ;;  %4748 = vmatprep.mubr.msk.f32.mxu0 %vm779_vm2, %v4054_v19 }
  0xc4   : > { %vm599_vm9 = vcmp.eq.s32.totalorder %v5425_v26, %v449_v23  ;;  %vm600_vm10 = vcmp.eq.s32.totalorder %v5425_v26, %v452_v21 }
  0xc5   : > { %v4056_v27 = vsel %vm599_vm9, 1.0, %v7124_v6  ;;  %v4057_v31 = vsel %vm600_vm10, 1.0, %v7124_v6  ;;  %4193 = vmatmul.mubr.msk.f32.gmra.mrb[46].mxu1 %vm1427_vm1, %v5683_v18 }
  0xc6   : > { %4749 = vmatmul.mubr.msk.f32.gmra.mrb[18].mxu0 %vm779_vm2, %v4055_v25  ;;  %1864 = vmatprep.mubr.f32.mxu1 %v7124_v6  ;;  %v5695_v25 = vld [vmem:[%s5285_s14 + $0xf0] sm:$0xff] }
  0xc7   : > { %v458_v29 = vpop.permute.xlu1 %457  ;;  %v455_v30 = vpop.permute.xlu0 %454  ;;  %4751 = vmatprep.mubr.msk.f32.mxu0 %vm779_vm2, %v4056_v27 }
  0xc8   : > { %vm601_vm11 = vcmp.eq.s32.totalorder %v5425_v26, %v455_v30  ;;  %vm602_vm12 = vcmp.eq.s32.totalorder %v5425_v26, %v458_v29 }
  0xc9   : > { %v4058_v32 = vsel %vm601_vm11, 1.0, %v7124_v6  ;;  %v4059_v37 = vsel %vm602_vm12, 1.0, %v7124_v6  ;;  %4194 = vmatmul.mubr.msk.f32.gmra.mrb[48].mxu1 %vm1427_vm1, %v5695_v25 }
  0xca   : > { %4752 = vmatmul.mubr.msk.f32.gmra.mrb[20].mxu0 %vm779_vm2, %v4057_v31  ;;  %1870 = vmatprep.mubr.f32.mxu1 %v7124_v6 }
  0xcb   : > { %v464_v34 = vpop.permute.xlu1 %463  ;;  %v461_v36 = vpop.permute.xlu0 %460  ;;  %4754 = vmatprep.mubr.msk.f32.mxu0 %vm779_vm2, %v4058_v32  ;;  %v5707_v32 = vld [vmem:[%s5285_s14 + $0xf8] sm:$0xff] }
  0xcc   : > { %vm603_vm13 = vcmp.eq.s32.totalorder %v5425_v26, %v461_v36  ;;  %vm604_vm14 = vcmp.eq.s32.totalorder %v5425_v26, %v464_v34 }
  0xcd   : > { %v4060_v38 = vsel %vm603_vm13, 1.0, %v7124_v6  ;;  %v4061_v42 = vsel %vm604_vm14, 1.0, %v7124_v6  ;;  %4195 = vmatmul.mubr.msk.f32.gmra.mrb[50].mxu1 %vm1427_vm1, %v5707_v32 }
  0xce   : > { %4755 = vmatmul.mubr.msk.f32.gmra.mrb[22].mxu0 %vm779_vm2, %v4059_v37  ;;  %1876 = vmatprep.mubr.f32.mxu1 %v7124_v6 }
  0xcf   : > { %v470_v40 = vpop.permute.xlu1 %469  ;;  %v467_v41 = vpop.permute.xlu0 %466  ;;  %4757 = vmatprep.mubr.msk.f32.mxu0 %vm779_vm2, %v4060_v38 }
  0xd0   : > { %vm605_vm15 = vcmp.eq.s32.totalorder %v5425_v26, %v467_v41  ;;  %vm606_vm0 = vcmp.eq.s32.totalorder %v5425_v26, %v470_v40  ;;  %v5719_v40 = vld [vmem:[%s5285_s14 + $0x100] sm:$0xff] }
  0xd1   : > { %v4062_v43 = vsel %vm605_vm15, 1.0, %v7124_v6  ;;  %v4063_v46 = vsel %vm606_vm0, 1.0, %v7124_v6  ;;  %4196 = vmatmul.mubr.msk.f32.gmra.mrb[52].mxu1 %vm1427_vm1, %v5719_v40 }
  0xd2   : > { %4758 = vmatmul.mubr.msk.f32.gmra.mrb[24].mxu0 %vm779_vm2, %v4061_v42  ;;  %1882 = vmatprep.mubr.f32.mxu1 %v7124_v6 }
  0xd3   : > { %v476_v44 = vpop.permute.xlu1 %475  ;;  %v473_v45 = vpop.permute.xlu0 %472  ;;  %4760 = vmatprep.mubr.msk.f32.mxu0 %vm779_vm2, %v4062_v43 }
  0xd4   : > { %vm607_vm3 = vcmp.eq.s32.totalorder %v5425_v26, %v473_v45  ;;  %vm608_vm4 = vcmp.eq.s32.totalorder %v5425_v26, %v476_v44  ;;  %v5731_v45 = vld [vmem:[%s5285_s14 + $0x108] sm:$0xff] }
  0xd5   : > { %v4064_v47 = vsel %vm607_vm3, 1.0, %v7124_v6  ;;  %v4065_v51 = vsel %vm608_vm4, 1.0, %v7124_v6  ;;  %4197 = vmatmul.mubr.msk.f32.gmra.mrb[54].mxu1 %vm1427_vm1, %v5731_v45 }
  0xd6   : > { %4761 = vmatmul.mubr.msk.f32.gmra.mrb[26].mxu0 %vm779_vm2, %v4063_v46  ;;  %v5188_v46 = vld [vmem:[%s7120_s5 + $0x38] sm:$0xff]   ;;  %1888 = vmatprep.mubr.f32.mxu1 %v7124_v6 }
  0xd7   : > { %v482_v49 = vpop.permute.xlu1 %481  ;;  %v479_v50 = vpop.permute.xlu0 %478  ;;  %4763 = vmatprep.mubr.msk.f32.mxu0 %vm779_vm2, %v4064_v47  ;;  %2789 = vmatpush1.bf16.msra.mxu1 %v5188_v46  ;;  %v5857_v46 = vld [vmem:[%s5285_s14 + $0x158] sm:$0xff] }
  0xd8   : > { %vm609_vm5 = vcmp.eq.s32.totalorder %v5425_v26, %v479_v50  ;;  %vm610_vm6 = vcmp.eq.s32.totalorder %v5425_v26, %v482_v49  ;;  %2790 = vmatprep.subr.bf16.mxu1 %v5216_v3 }
  0xd9   : > { %v4066_v52 = vsel %vm609_vm5, 1.0, %v7124_v6  ;;  %v4067_v56 = vsel %vm610_vm6, 1.0, %v7124_v6 }
  0xda   : > { %4764 = vmatmul.mubr.msk.f32.gmra.mrb[28].mxu0 %vm779_vm2, %v4065_v51 }
  0xdb   : > { %v488_v54 = vpop.permute.xlu1 %487  ;;  %v485_v55 = vpop.permute.xlu0 %484  ;;  %4766 = vmatprep.mubr.msk.f32.mxu0 %vm779_vm2, %v4066_v52  ;;  %v5747_v52 = vld [vmem:[%s5285_s14 + $0x110] sm:$0xff] }
  0xdc   : > { %vm611_vm7 = vcmp.eq.s32.totalorder %v5425_v26, %v485_v55  ;;  %vm612_vm8 = vcmp.eq.s32.totalorder %v5425_v26, %v488_v54  ;;  %4198 = vmatmul.mubr.msk.f32.gmra.mrb[56].mxu1 %vm1427_vm1, %v5747_v52 }
  0xdd   : > { %v4068_v57 = vsel %vm611_vm7, 1.0, %v7124_v6  ;;  %v4069_v61 = vsel %vm612_vm8, 1.0, %v7124_v6  ;;  %1894 = vmatprep.mubr.f32.mxu1 %v7124_v6 }
  0xde   : > { %4767 = vmatmul.mubr.msk.f32.gmra.mrb[30].mxu0 %vm779_vm2, %v4067_v56 }
  0xdf   : > { %v494_v59 = vpop.permute.xlu1 %493  ;;  %v491_v60 = vpop.permute.xlu0 %490  ;;  %4769 = vmatprep.mubr.msk.f32.mxu0 %vm779_vm2, %v4068_v57 }
  0xe0   : > { %vm613_vm9 = vcmp.eq.s32.totalorder %v5425_v26, %v491_v60  ;;  %vm614_vm10 = vcmp.eq.s32.totalorder %v5425_v26, %v494_v59  ;;  %v5759_v59 = vld [vmem:[%s5285_s14 + $0x118] sm:$0xff] }
  0xe1   : > { %v4070_v62 = vsel %vm613_vm9, 1.0, %v7124_v6  ;;  %v4071_v2 = vsel %vm614_vm10, 1.0, %v7124_v6  ;;  %4199 = vmatmul.mubr.msk.f32.gmra.mrb[58].mxu1 %vm1427_vm1, %v5759_v59 }
  0xe2   : > { %4770 = vmatmul.mubr.msk.f32.gmra.mrb[32].mxu0 %vm779_vm2, %v4069_v61  ;;  %1900 = vmatprep.mubr.f32.mxu1 %v7124_v6 }
  0xe3   : > { %v500_v0 = vpop.permute.xlu1 %499  ;;  %v497_v1 = vpop.permute.xlu0 %496  ;;  %4772 = vmatprep.mubr.msk.f32.mxu0 %vm779_vm2, %v4070_v62 }
  0xe4   : > { %vm615_vm11 = vcmp.eq.s32.totalorder %v5425_v26, %v497_v1  ;;  %vm616_vm12 = vcmp.eq.s32.totalorder %v5425_v26, %v500_v0  ;;  %v5771_v1 = vld [vmem:[%s5285_s14 + $0x120] sm:$0xff] }
  0xe5   : > { %v4072_v4 = vsel %vm615_vm11, 1.0, %v7124_v6  ;;  %v4073_v10 = vsel %vm616_vm12, 1.0, %v7124_v6  ;;  %4200 = vmatmul.mubr.msk.f32.gmra.mrb[60].mxu1 %vm1427_vm1, %v5771_v1 }
  0xe6   : > { %4773 = vmatmul.mubr.msk.f32.gmra.mrb[34].mxu0 %vm779_vm2, %v4071_v2  ;;  %1906 = vmatprep.mubr.f32.mxu1 %v7124_v6 }
  0xe7   : > { %v506_v7 = vpop.permute.xlu1 %505  ;;  %v503_v9 = vpop.permute.xlu0 %502  ;;  %4775 = vmatprep.mubr.msk.f32.mxu0 %vm779_vm2, %v4072_v4 }
  0xe8   : > { %vm617_vm13 = vcmp.eq.s32.totalorder %v5425_v26, %v503_v9  ;;  %vm618_vm14 = vcmp.eq.s32.totalorder %v5425_v26, %v506_v7 }
  0xe9   : > { %v4074_v11 = vsel %vm617_vm13, 1.0, %v7124_v6  ;;  %v4075_v16 = vsel %vm618_vm14, 1.0, %v7124_v6 }
  0xea   : > { %4776 = vmatmul.mubr.msk.f32.gmra.mrb[36].mxu0 %vm779_vm2, %v4073_v10  ;;  %v5189_v10 = vld [vmem:[%s7120_s5 + $0x40] sm:$0xff]  }
  0xeb   : > { %v512_v13 = vpop.permute.xlu1 %511  ;;  %v509_v15 = vpop.permute.xlu0 %508  ;;  %4778 = vmatprep.mubr.msk.f32.mxu0 %vm779_vm2, %v4074_v11  ;;  %v5786_v11 = vld [vmem:[%s5285_s14 + $0x128] sm:$0xff]  ;;  %2791 = vmatpush1.bf16.msra.mxu1 %v5189_v10 }
  0xec   : > { %vm619_vm15 = vcmp.eq.s32.totalorder %v5425_v26, %v509_v15  ;;  %vm620_vm0 = vcmp.eq.s32.totalorder %v5425_v26, %v512_v13  ;;  %2792 = vmatprep.subr.bf16.mxu1 %v5216_v3  ;;  %4201 = vmatmul.mubr.msk.f32.gmra.mrb[62].mxu1 %vm1427_vm1, %v5786_v11  ;;  %v5954_v10 = vld [vmem:[%s5285_s14 + $0x1a8] sm:$0xff] }
  0xed   : > { %v4076_v17 = vsel %vm619_vm15, 1.0, %v7124_v6  ;;  %v4077_v23 = vsel %vm620_vm0, 1.0, %v7124_v6  ;;  %1912 = vmatprep.mubr.f32.mxu1 %v7124_v6 }
  0xee   : > { %4779 = vmatmul.mubr.msk.f32.gmra.mrb[38].mxu0 %vm779_vm2, %v4075_v16 }
  0xef   : > { %v518_v19 = vpop.permute.xlu1 %517  ;;  %v515_v21 = vpop.permute.xlu0 %514  ;;  %4781 = vmatprep.mubr.msk.f32.mxu0 %vm779_vm2, %v4076_v17 }
  0xf0   : > { %vm621_vm3 = vcmp.eq.s32.totalorder %v5425_v26, %v515_v21  ;;  %vm622_vm4 = vcmp.eq.s32.totalorder %v5425_v26, %v518_v19  ;;  %v5799_v19 = vld [vmem:[%s5285_s14 + $0x130] sm:$0xff] }
  0xf1   : > { %v4078_v24 = vsel %vm621_vm3, 1.0, %v7124_v6  ;;  %v4079_v30 = vsel %vm622_vm4, 1.0, %v7124_v6  ;;  %4202 = vmatmul.mubr.msk.f32.gmra.mrb[64].mxu1 %vm1427_vm1, %v5799_v19 }
  0xf2   : > { %4782 = vmatmul.mubr.msk.f32.gmra.mrb[40].mxu0 %vm779_vm2, %v4077_v23  ;;  %1918 = vmatprep.mubr.f32.mxu1 %v7124_v6 }
  0xf3   : > { %v524_v27 = vpop.permute.xlu1 %523  ;;  %v521_v29 = vpop.permute.xlu0 %520  ;;  %4784 = vmatprep.mubr.msk.f32.mxu0 %vm779_vm2, %v4078_v24 }
  0xf4   : > { %vm623_vm5 = vcmp.eq.s32.totalorder %v5425_v26, %v521_v29  ;;  %vm624_vm6 = vcmp.eq.s32.totalorder %v5425_v26, %v524_v27  ;;  %v5811_v29 = vld [vmem:[%s5285_s14 + $0x138] sm:$0xff] }
  0xf5   : > { %v4080_v31 = vsel %vm623_vm5, 1.0, %v7124_v6  ;;  %v4081_v37 = vsel %vm624_vm6, 1.0, %v7124_v6  ;;  %4203 = vmatmul.mubr.msk.f32.gmra.mrb[66].mxu1 %vm1427_vm1, %v5811_v29 }
  0xf6   : > { %4785 = vmatmul.mubr.msk.f32.gmra.mrb[42].mxu0 %vm779_vm2, %v4079_v30  ;;  %1924 = vmatprep.mubr.f32.mxu1 %v7124_v6 }
  0xf7   : > { %v530_v34 = vpop.permute.xlu1 %529  ;;  %v527_v36 = vpop.permute.xlu0 %526  ;;  %4787 = vmatprep.mubr.msk.f32.mxu0 %vm779_vm2, %v4080_v31 }
  0xf8   : > { %vm625_vm7 = vcmp.eq.s32.totalorder %v5425_v26, %v527_v36  ;;  %vm626_vm8 = vcmp.eq.s32.totalorder %v5425_v26, %v530_v34 }
  0xf9   : > { %v4082_v38 = vsel %vm625_vm7, 1.0, %v7124_v6  ;;  %v4083_v43 = vsel %vm626_vm8, 1.0, %v7124_v6 }
  0xfa   : > { %4788 = vmatmul.mubr.msk.f32.gmra.mrb[44].mxu0 %vm779_vm2, %v4081_v37  ;;  %v5823_v37 = vld [vmem:[%s5285_s14 + $0x140] sm:$0xff] }
  0xfb   : > { %v536_v41 = vpop.permute.xlu1 %535  ;;  %v533_v42 = vpop.permute.xlu0 %532  ;;  %4790 = vmatprep.mubr.msk.f32.mxu0 %vm779_vm2, %v4082_v38  ;;  %v5190_v38 = vld [vmem:[%s7120_s5 + $0x48] sm:$0xff]   ;;  %4204 = vmatmul.mubr.msk.f32.gmra.mrb[68].mxu1 %vm1427_vm1, %v5823_v37 }
  0xfc   : > { %vm627_vm9 = vcmp.eq.s32.totalorder %v5425_v26, %v533_v42  ;;  %vm628_vm10 = vcmp.eq.s32.totalorder %v5425_v26, %v536_v41  ;;  %2793 = vmatpush1.bf16.msra.mxu1 %v5190_v38  ;;  %1930 = vmatprep.mubr.f32.mxu1 %v7124_v6  ;;  %v1357_v42 = vld [vmem:[%s5285_s14] sm:$0xff] }
  0xfd   : > { %v4084_v44 = vsel %vm627_vm9, 1.0, %v7124_v6  ;;  %v4085_v50 = vsel %vm628_vm10, 1.0, %v7124_v6  ;;  %2794 = vmatprep.subr.bf16.mxu1 %v5216_v3 }
  0xfe   : > { %4791 = vmatmul.mubr.msk.f32.gmra.mrb[46].mxu0 %vm779_vm2, %v4083_v43  ;;  %v5845_v43 = vld [vmem:[%s5285_s14 + $0x150] sm:$0xff] }
  0xff   : > { %v542_v47 = vpop.permute.xlu1 %541  ;;  %v539_v49 = vpop.permute.xlu0 %538  ;;  %4793 = vmatprep.mubr.msk.f32.mxu0 %vm779_vm2, %v4084_v44  ;;  %v5849_v44 = vld [vmem:[%s5285_s14 + $0x8] sm:$0xff] }
 0x100   : > { %vm629_vm11 = vcmp.eq.s32.totalorder %v5425_v26, %v539_v49  ;;  %vm630_vm12 = vcmp.eq.s32.totalorder %v5425_v26, %v542_v47  ;;  %v5861_v47 = vld [vmem:[%s5285_s14 + $0x10] sm:$0xff] }
 0x101   : > { %v4086_v51 = vsel %vm629_vm11, 1.0, %v7124_v6  ;;  %v4087_v56 = vsel %vm630_vm12, 1.0, %v7124_v6  ;;  %v5191_v49 = vld [vmem:[%s7120_s5 + $0x50] sm:$0xff]  }
 0x102   : > { %4794 = vmatmul.mubr.msk.f32.gmra.mrb[48].mxu0 %vm779_vm2, %v4085_v50  ;;  %v5872_v50 = vld [vmem:[%s5285_s14 + $0x160] sm:$0xff]  ;;  %2795 = vmatpush1.bf16.msra.mxu1 %v5191_v49 }
 0x103   : > { %v548_v54 = vpop.permute.xlu1 %547  ;;  %v545_v55 = vpop.permute.xlu0 %544  ;;  %4796 = vmatprep.mubr.msk.f32.mxu0 %vm779_vm2, %v4086_v51  ;;  %v5876_v51 = vld [vmem:[%s5285_s14 + $0x18] sm:$0xff]  ;;  %2796 = vmatprep.subr.bf16.mxu1 %v5216_v3 }
 0x104   : > { %vm631_vm13 = vcmp.eq.s32.totalorder %v5425_v26, %v545_v55  ;;  %vm632_vm14 = vcmp.eq.s32.totalorder %v5425_v26, %v548_v54  ;;  %v5885_v54 = vld [vmem:[%s5285_s14 + $0x168] sm:$0xff]  ;;  %v5889_v55 = vld [vmem:[%s5285_s14 + $0x20] sm:$0xff] }
 0x105   : > { %v4088_v57 = vsel %vm631_vm13, 1.0, %v7124_v6  ;;  %v4089_v62 = vsel %vm632_vm14, 1.0, %v7124_v6 }
 0x106   : > { %4797 = vmatmul.mubr.msk.f32.gmra.mrb[50].mxu0 %vm779_vm2, %v4087_v56  ;;  %v5897_v56 = vld [vmem:[%s5285_s14 + $0x170] sm:$0xff] }
 0x107   : > { %v554_v60 = vpop.permute.xlu1 %553  ;;  %v551_v61 = vpop.permute.xlu0 %550  ;;  %4799 = vmatprep.mubr.msk.f32.mxu0 %vm779_vm2, %v4088_v57  ;;  %v5901_v57 = vld [vmem:[%s5285_s14 + $0x28] sm:$0xff] }
 0x108   : > { %vm633_vm15 = vcmp.eq.s32.totalorder %v5425_v26, %v551_v61  ;;  %vm634_vm0 = vcmp.eq.s32.totalorder %v5425_v26, %v554_v60  ;;  %v5909_v60 = vld [vmem:[%s5285_s14 + $0x178] sm:$0xff] }
 0x109   : > { %v4090_v0 = vsel %vm633_vm15, 1.0, %v7124_v6  ;;  %v4091_v7 = vsel %vm634_vm0, 1.0, %v7124_v6  ;;  %v5192_v61 = vld [vmem:[%s7120_s5 + $0x58] sm:$0xff]  }
 0x10a   : > { %4800 = vmatmul.mubr.msk.f32.gmra.mrb[52].mxu0 %vm779_vm2, %v4089_v62  ;;  %v5919_v62 = vld [vmem:[%s5285_s14 + $0x180] sm:$0xff]  ;;  %2797 = vmatpush1.bf16.msra.mxu1 %v5192_v61 }
 0x10b   : > { %v560_v2 = vpop.permute.xlu1 %559  ;;  %v557_v4 = vpop.permute.xlu0 %556  ;;  %4802 = vmatprep.mubr.msk.f32.mxu0 %vm779_vm2, %v4090_v0  ;;  %2798 = vmatprep.subr.bf16.mxu1 %v5216_v3  ;;  %v5926_v0 = vld [vmem:[%s5285_s14 + $0x188] sm:$0xff] }
 0x10c   : > { %vm635_vm3 = vcmp.eq.s32.totalorder %v5425_v26, %v557_v4  ;;  %vm636_vm4 = vcmp.eq.s32.totalorder %v5425_v26, %v560_v2  ;;  %v5932_v2 = vld [vmem:[%s5285_s14 + $0x190] sm:$0xff]  ;;  %v5938_v4 = vld [vmem:[%s5285_s14 + $0x198] sm:$0xff] }
 0x10d   : > { %v4092_v9 = vsel %vm635_vm3, 1.0, %v7124_v6  ;;  %v4093_v16 = vsel %vm636_vm4, 1.0, %v7124_v6 }
 0x10e   : > { %4803 = vmatmul.mubr.msk.f32.gmra.mrb[54].mxu0 %vm779_vm2, %v4091_v7  ;;  %v5193_v7 = vld [vmem:[%s7120_s5 + $0x60] sm:$0xff]  }
 0x10f   : > { %v566_v13 = vpop.permute.xlu1 %565  ;;  %v563_v15 = vpop.permute.xlu0 %562  ;;  %4805 = vmatprep.mubr.msk.f32.mxu0 %vm779_vm2, %v4092_v9  ;;  %2799 = vmatpush1.bf16.msra.mxu1 %v5193_v7  ;;  %v5948_v9 = vld [vmem:[%s5285_s14 + $0x1a0] sm:$0xff] }
 0x110   : > { %vm637_vm5 = vcmp.eq.s32.totalorder %v5425_v26, %v563_v15  ;;  %vm638_vm6 = vcmp.eq.s32.totalorder %v5425_v26, %v566_v13  ;;  %2800 = vmatprep.subr.bf16.mxu1 %v5216_v3  ;;  %v5960_v13 = vld [vmem:[%s5285_s14 + $0x1b0] sm:$0xff]  ;;  %v5194_v15 = vld [vmem:[%s7120_s5 + $0x68] sm:$0xff]  }
 0x111   : > { %v4094_v17 = vsel %vm637_vm5, 1.0, %v7124_v6  ;;  %v4095_v24 = vsel %vm638_vm6, 1.0, %v7124_v6 }
 0x112   : > { %4806 = vmatmul.mubr.msk.f32.gmra.mrb[56].mxu0 %vm779_vm2, %v4093_v16  ;;  %v5969_v16 = vld [vmem:[%s5285_s14 + $0x1b8] sm:$0xff] }
 0x113   : > { %v572_v21 = vpop.permute.xlu1 %571  ;;  %v569_v23 = vpop.permute.xlu0 %568  ;;  %4808 = vmatprep.mubr.msk.f32.mxu0 %vm779_vm2, %v4094_v17  ;;  %2801 = vmatpush1.bf16.msra.mxu1 %v5194_v15  ;;  %v5976_v17 = vld [vmem:[%s5285_s14 + $0x1c0] sm:$0xff]  ;;  %v6014_v15 = vld [vmem:[%s5285_s14 + $0x1e8] sm:$0xff] }
 0x114   : > { %vm639_vm7 = vcmp.eq.s32.totalorder %v5425_v26, %v569_v23  ;;  %vm640_vm8 = vcmp.eq.s32.totalorder %v5425_v26, %v572_v21  ;;  %2802 = vmatprep.subr.bf16.mxu1 %v5216_v3  ;;  %v5982_v21 = vld [vmem:[%s5285_s14 + $0x1c8] sm:$0xff]  ;;  %v5988_v23 = vld [vmem:[%s5285_s14 + $0x1d0] sm:$0xff]  ;;  %7136 = vst [vmem:[#allocation7_spill] sm:$0xff] %v6014_v15 }
 0x115   : > { %v4096_v27 = vsel %vm639_vm7, 1.0, %v7124_v6  ;;  %v4097_v34 = vsel %vm640_vm8, 1.0, %v7124_v6  ;;  %7131 = vst [vmem:[#allocation2_spill] sm:$0xff] %v5988_v23 }
 0x116   : > { %4809 = vmatmul.mubr.msk.f32.gmra.mrb[58].mxu0 %vm779_vm2, %v4095_v24  ;;  %v5195_v24 = vld [vmem:[%s7120_s5 + $0x70] sm:$0xff]  }
 0x117   : > { %v578_v30 = vpop.permute.xlu1 %577  ;;  %v575_v31 = vpop.permute.xlu0 %574  ;;  %4811 = vmatprep.mubr.msk.f32.mxu0 %vm779_vm2, %v4096_v27  ;;  %2803 = vmatpush1.bf16.msra.mxu1 %v5195_v24  ;;  %v5998_v27 = vld [vmem:[%s5285_s14 + $0x1d8] sm:$0xff] }
 0x118   : > { %vm641_vm9 = vcmp.eq.s32.totalorder %v5425_v26, %v575_v31  ;;  %vm642_vm10 = vcmp.eq.s32.totalorder %v5425_v26, %v578_v30  ;;  %v5836_v26 = vld [vmem:[%s5285_s14 + $0x148] sm:$0xff]  ;;  %2804 = vmatprep.subr.bf16.mxu1 %v5216_v3  ;;  %7132 = vst [vmem:[#allocation3_spill] sm:$0xff] %v5998_v27  ;;  %v1722_v30 = vpop.f32.mrb[0].mxu1 }
 0x119   : > { %v4098_v36 = vsel %vm641_vm9, 1.0, %v7124_v6  ;;  %v4099_v41 = vsel %vm642_vm10, 1.0, %v7124_v6  ;;  %4205 = vmatmul.mubr.msk.f32.gmra.mrb[70].mxu1 %vm1427_vm1, %v5836_v26  ;;  %v2466_v31 = vmax.f32 %v1722_v30, 0.0 }
 0x11a   : > { %4812 = vmatmul.mubr.msk.f32.gmra.mrb[60].mxu0 %vm779_vm2, %v4097_v34  ;;  %1936 = vmatprep.mubr.f32.mxu1 %v7124_v6  ;;  %v1724_v34 = vpop.f32.mrb[1].mxu1 }
 0x11b   : > { %4814 = vmatprep.mubr.msk.f32.mxu0 %vm779_vm2, %v4098_v36  ;;  %v2467_v36 = vmax.f32 %v1724_v34, 0.0  ;;  %v1728_v38 = vpop.f32.mrb[2].mxu1 }
 0x11c   : > { %v1730_v3 = vpop.f32.mrb[3].mxu1 }
 0x11d   : > { %4206 = vmatmul.mubr.msk.f32.gmra.mrb[72].mxu1 %vm1427_vm1, %v5845_v43  ;;  %v2469_v49 = vmax.f32 %v1730_v3, 0.0  ;;  %v1734_v24 = vpop.f32.mrb[4].mxu1 }
 0x11e   : > { %4815 = vmatmul.mubr.msk.f32.gmra.mrb[62].mxu0 %vm779_vm2, %v4099_v41  ;;  %1942 = vmatprep.mubr.f32.mxu1 %v7124_v6  ;;  %v6004_v41 = vld [vmem:[%s5285_s14 + $0x1e0] sm:$0xff]  ;;  %v1736_v30 = vpop.f32.mrb[5].mxu1  ;;  %v2470_v34 = vmax.f32 %v1734_v24, 0.0 }
 0x11f   : > { %1684 = vmatprep.mubr.f32.mxu0 %v7124_v6  ;;  %7133 = vst [vmem:[#allocation4_spill] sm:$0xff] %v6004_v41  ;;  %v6010_v7 = vpack.c.bf16 %v2469_v49, %v2467_v36  ;;  %v5196_v36 = vld [vmem:[%s7120_s5 + $0x78] sm:$0xff]  }
 0x120   : > { %2805 = vmatpush1.bf16.msra.mxu1 %v5196_v36 }
 0x121   : > { %4207 = vmatmul.mubr.msk.f32.gmra.mrb[74].mxu1 %vm1427_vm1, %v5857_v46  ;;  %7135 = vst [vmem:[#allocation6_spill] sm:$0xff] %v6010_v7  ;;  %v7141_v7 = vmov 0.0  }
 0x122   : > { %4164 = vmatmul.mubr.msk.f32.vlgmr.msra.gmra.mrb[64].mxu0 %vm1427_vm1, %v1357_v42  ;;  %1948 = vmatprep.mubr.f32.mxu1 %v7124_v6 }
 0x123   : > { %1690 = vmatprep.mubr.f32.mxu0 %v7124_v6 }
 0x125   : > { %4208 = vmatmul.mubr.msk.f32.gmra.mrb[76].mxu1 %vm1427_vm1, %v5872_v50 }
 0x126   : > { %4165 = vmatmul.mubr.msk.f32.gmra.mrb[66].mxu0 %vm1427_vm1, %v5849_v44  ;;  %1954 = vmatprep.mubr.f32.mxu1 %v7124_v6 }
 0x127   : > { %1696 = vmatprep.mubr.f32.mxu0 %v7124_v6 }
 0x129   : > { %4209 = vmatmul.mubr.msk.f32.gmra.mrb[78].mxu1 %vm1427_vm1, %v5885_v54 }
 0x12a   : > { %4166 = vmatmul.mubr.msk.f32.gmra.mrb[68].mxu0 %vm1427_vm1, %v5861_v47  ;;  %1960 = vmatprep.mubr.f32.mxu1 %v7124_v6 }
 0x12b   : > { %1702 = vmatprep.mubr.f32.mxu0 %v7124_v6 }
 0x12d   : > { %4210 = vmatmul.mubr.msk.f32.gmra.mrb[80].mxu1 %vm1427_vm1, %v5897_v56 }
 0x12e   : > { %4167 = vmatmul.mubr.msk.f32.gmra.mrb[70].mxu0 %vm1427_vm1, %v5876_v51  ;;  %1966 = vmatprep.mubr.f32.mxu1 %v7124_v6 }
 0x12f   : > { %1708 = vmatprep.mubr.f32.mxu0 %v7124_v6 }
 0x131   : > { %4211 = vmatmul.mubr.msk.f32.gmra.mrb[82].mxu1 %vm1427_vm1, %v5909_v60 }
 0x132   : > { %4168 = vmatmul.mubr.msk.f32.gmra.mrb[72].mxu0 %vm1427_vm1, %v5889_v55  ;;  %1972 = vmatprep.mubr.f32.mxu1 %v7124_v6 }
 0x133   : > { %1714 = vmatprep.mubr.f32.mxu0 %v7124_v6 }
 0x135   : > { %4212 = vmatmul.mubr.msk.f32.gmra.mrb[84].mxu1 %vm1427_vm1, %v5919_v62 }
 0x136   : > { %4169 = vmatmul.mubr.msk.f32.gmra.mrb[74].mxu0 %vm1427_vm1, %v5901_v57  ;;  %1978 = vmatprep.mubr.f32.mxu1 %v7124_v6 }
 0x137   : > { %4821 = vmatprep.mubr.msk.f32.mxu0 %vm1427_vm1, %v1357_v42  ;;  %v2468_v42 = vmax.f32 %v1728_v38, 0.0  ;;  %v2471_v38 = vmax.f32 %v1736_v30, 0.0 }
 0x139   : > { %4213 = vmatmul.mubr.msk.f32.gmra.mrb[86].mxu1 %vm1427_vm1, %v5926_v0  ;;  %v6006_v61 = vpack.c.bf16 %v2468_v42, %v2466_v31  ;;  %v6020_v31 = vld [vmem:[%s5285_s14 + $0x1f0] sm:$0xff]  ;;  %v1740_v42 = vpop.f32.mrb[6].mxu1 }
 0x13a   : > { %1984 = vmatprep.mubr.f32.mxu1 %v7124_v6  ;;  %7137 = vst [vmem:[#allocation8_spill] sm:$0xff] %v6020_v31  ;;  %v2472_v3 = vmax.f32 %v1740_v42, 0.0  ;;  %v1742_v49 = vpop.f32.mrb[7].mxu1 }
 0x13b   : > { %7134 = vst [vmem:[#allocation5_spill] sm:$0xff] %v6006_v61  ;;  %v2473_v61 = vmax.f32 %v1742_v49, 0.0  ;;  %v1746_v30 = vpop.f32.mrb[8].mxu1 }
 0x13c   : > { %v1748_v36 = vpop.f32.mrb[9].mxu1 }
 0x13d   : > { %4214 = vmatmul.mubr.msk.f32.gmra.mrb[88].mxu1 %vm1427_vm1, %v5932_v2 }
 0x13e   : > { %1990 = vmatprep.mubr.f32.mxu1 %v7124_v6 }
 0x141   : > { %4215 = vmatmul.mubr.msk.f32.gmra.mrb[90].mxu1 %vm1427_vm1, %v5938_v4 }
 0x142   : > { %1996 = vmatprep.mubr.f32.mxu1 %v7124_v6 }
 0x145   : > { %4216 = vmatmul.mubr.msk.f32.gmra.mrb[92].mxu1 %vm1427_vm1, %v5948_v9 }
 0x146   : > { %2002 = vmatprep.mubr.f32.mxu1 %v7124_v6 }
 0x149   : > { %4217 = vmatmul.mubr.msk.f32.gmra.mrb[94].mxu1 %vm1427_vm1, %v5954_v10 }
 0x14a   : > { %2008 = vmatprep.mubr.f32.mxu1 %v7124_v6 }
 0x14d   : > { %4218 = vmatmul.mubr.msk.f32.gmra.mrb[96].mxu1 %vm1427_vm1, %v5960_v13 }
 0x14e   : > { %2014 = vmatprep.mubr.f32.mxu1 %v7124_v6 }
 0x151   : > { %4219 = vmatmul.mubr.msk.f32.gmra.mrb[98].mxu1 %vm1427_vm1, %v5969_v16 }
 0x152   : > { %2020 = vmatprep.mubr.f32.mxu1 %v7124_v6 }
 0x155   : > { %4220 = vmatmul.mubr.msk.f32.gmra.mrb[100].mxu1 %vm1427_vm1, %v5976_v17 }
 0x156   : > { %2026 = vmatprep.mubr.f32.mxu1 %v7124_v6 }
 0x159   : > { %4221 = vmatmul.mubr.msk.f32.gmra.mrb[102].mxu1 %vm1427_vm1, %v5982_v21 }
 0x15a   : > { %2032 = vmatprep.mubr.f32.mxu1 %v7124_v6 }
 0x15d   : > { %4222 = vmatmul.mubr.msk.f32.gmra.mrb[104].mxu1 %vm1427_vm1, %v5988_v23 }
 0x15e   : > { %2038 = vmatprep.mubr.f32.mxu1 %v7124_v6 }
 0x161   : > { %4223 = vmatmul.mubr.msk.f32.gmra.mrb[106].mxu1 %vm1427_vm1, %v5998_v27 }
 0x162   : > { %2044 = vmatprep.mubr.f32.mxu1 %v7124_v6 }
 0x165   : > { %4224 = vmatmul.mubr.msk.f32.gmra.mrb[108].mxu1 %vm1427_vm1, %v6004_v41  ;;  %v6037_v41 = vpack.c.bf16 %v2473_v61, %v2471_v38  ;;  %v1752_v61 = vpop.f32.mrb[10].mxu1 }
 0x166   : > { %2050 = vmatprep.mubr.f32.mxu1 %v7124_v6 }
 0x167   : > { %7143 = vst [vmem:[#allocation13_spill] sm:$0xff] %v6037_v41 }
 0x169   : > { %4225 = vmatmul.mubr.msk.f32.gmra.mrb[110].mxu1 %vm1427_vm1, %v6014_v15  ;;  %v6035_v15 = vld [vmem:[%s5285_s14 + $0x1f8] sm:$0xff] }
 0x16a   : > { %2056 = vmatprep.mubr.f32.mxu1 %v7124_v6  ;;  %v6031_v6 = vpack.c.bf16 %v2472_v3, %v2470_v34  ;;  %7142 = vst [vmem:[#allocation12_spill] sm:$0xff] %v6035_v15  ;;  %v1423_v34 = vld [vmem:[%s7119_s4 + $0x10] sm:$0xff]  ;;  %v2475_v3 = vmax.f32 %v1748_v36, 0.0 }
 0x16c   : > { %7140 = vst [vmem:[#allocation11_spill] sm:$0xff] %v6031_v6 }
 0x16d   : > { %4226 = vmatmul.mubr.msk.f32.gmra.mrb[112].mxu1 %vm1427_vm1, %v6020_v31 }
 0x16e   : > { %2062 = vmatprep.mubr.f32.mxu1 %v7141_v7  ;;  %v1426_v7 = vld [vmem:[%s7119_s4 + $0x28] sm:$0xff] }
 0x16f   : > { %v5065_v38 = vpack.c.bf16 %v1426_v7, %v1423_v34 }
 0x171   : > { %4227 = vmatmul.mubr.msk.f32.gmra.mrb[114].mxu1 %vm1427_vm1, %v6035_v15  ;;  %5066 = vmatprep.subr.bf16.mxu0 %v5065_v38 }
 0x172   : > { %5068 = vmatpush3.bf16.msra.mxu0 %v5065_v38 }
 0x175   : > { %v6025_v22 = vpop.f32.mrb[0].mxu0  ;;  %4822 = vmatmul.mubr.msk.f32.vlgmr.msra.gmra.mrb[76].mxu0 %vm1427_vm1, %v5849_v44 }
 0x176   : > { %7138 = vst [vmem:[#allocation9_spill] sm:$0xff] %v6025_v22  ;;  %v6029_v24 = vpop.f32.mrb[1].mxu0  ;;  %v2474_v22 = vmax.f32 %v1746_v30, 0.0  ;;  %4824 = vmatprep.mubr.msk.f32.mxu0 %vm1427_vm1, %v5861_v47 }
 0x177   : > { %7139 = vst [vmem:[#allocation10_spill] sm:$0xff] %v6029_v24  ;;  %v2476_v24 = vmax.f32 %v1752_v61, 0.0 }
 0x179   : > { %v6039_v42 = vpop.f32.mrb[2].mxu0  ;;  %v6055_v30 = vpack.c.bf16 %v2476_v24, %v2474_v22  ;;  %4825 = vmatmul.mubr.msk.f32.gmra.mrb[78].mxu0 %vm1427_vm1, %v5876_v51  ;;  %v5197_v51 = vld [vmem:[%s5285_s14 + $0x30] sm:$0xff] }
 0x17a   : > { %7144 = vst [vmem:[#allocation14_spill] sm:$0xff] %v6039_v42  ;;  %v6043_v49 = vpop.f32.mrb[3].mxu0  ;;  %v1754_v42 = vpop.f32.mrb[11].mxu1  ;;  %4827 = vmatprep.mubr.msk.f32.mxu0 %vm1427_vm1, %v5889_v55 }
 0x17b   : > { %7145 = vst [vmem:[#allocation15_spill] sm:$0xff] %v6043_v49  ;;  %v2477_v41 = vmax.f32 %v1754_v42, 0.0  ;;  %v1758_v31 = vpop.f32.mrb[12].mxu1 }
 0x17c   : > { %v1760_v23 = vpop.f32.mrb[13].mxu1  ;;  %v2478_v34 = vmax.f32 %v1758_v31, 0.0 }
 0x17d   : > { %v6051_v6 = vpop.f32.mrb[4].mxu0  ;;  %v6057_v49 = vpack.c.bf16 %v2477_v41, %v2475_v3  ;;  %v1764_v42 = vpop.f32.mrb[14].mxu1  ;;  %v2479_v22 = vmax.f32 %v1760_v23, 0.0  ;;  %4828 = vmatmul.mubr.msk.f32.gmra.mrb[80].mxu0 %vm1427_vm1, %v5901_v57 }
 0x17e   : > { %7146 = vst [vmem:[#allocation16_spill] sm:$0xff] %v6051_v6  ;;  %v6053_v15 = vpop.f32.mrb[5].mxu0  ;;  %v2480_v24 = vmax.f32 %v1764_v42, 0.0  ;;  %v1766_v7 = vpop.f32.mrb[15].mxu1  ;;  %4830 = vmatprep.mubr.msk.f32.mxu0 %vm1427_vm1, %v5197_v51 }
 0x17f   : > { %7147 = vst [vmem:[#allocation17_spill] sm:$0xff] %v6053_v15  ;;  %v2481_v61 = vmax.f32 %v1766_v7, 0.0  ;;  %v1770_v31 = vpop.f32.mrb[16].mxu1 }
 0x180   : > { %v6073_v44 = vpack.c.bf16 %v2480_v24, %v2478_v34  ;;  %v1772_v3 = vpop.f32.mrb[17].mxu1  ;;  %v2482_v34 = vmax.f32 %v1770_v31, 0.0 }
 0x181   : > { %v6059_v27 = vpop.f32.mrb[6].mxu0  ;;  %v6077_v47 = vpack.c.bf16 %v2481_v61, %v2479_v22  ;;  %v2483_v24 = vmax.f32 %v1772_v3, 0.0  ;;  %v1776_v7 = vpop.f32.mrb[18].mxu1 }
 0x182   : > { %7148 = vst [vmem:[#allocation18_spill] sm:$0xff] %v6059_v27  ;;  %v6063_v36 = vpop.f32.mrb[7].mxu0  ;;  %v2484_v22 = vmax.f32 %v1776_v7, 0.0  ;;  %v1778_v61 = vpop.f32.mrb[19].mxu1 }
 0x183   : > { %7149 = vst [vmem:[#allocation19_spill] sm:$0xff] %v6063_v36  ;;  %v2485_v57 = vmax.f32 %v1778_v61, 0.0  ;;  %v1782_v3 = vpop.f32.mrb[20].mxu1  ;;  %v5203_v36 = vld [vmem:[%s5285_s14 + $0x60] sm:$0xff] }
 0x184   : > { %v1784_v7 = vpop.f32.mrb[21].mxu1  ;;  %v2486_v61 = vmax.f32 %v1782_v3, 0.0 }
 0x185   : > { %v6067_v41 = vpop.f32.mrb[8].mxu0  ;;  %v6097_v31 = vpack.c.bf16 %v2485_v57, %v2483_v24 }
 0x186   : > { %7150 = vst [vmem:[#allocation20_spill] sm:$0xff] %v6067_v41  ;;  %v6071_v38 = vpop.f32.mrb[9].mxu0 }
 0x187   : > { %7151 = vst [vmem:[#allocation21_spill] sm:$0xff] %v6071_v38  ;;  %v5199_v38 = vld [vmem:[%s5285_s14 + $0x40] sm:$0xff] }
 0x189   : > { %v6079_v23 = vpop.f32.mrb[10].mxu0 }
 0x18a   : > { %7152 = vst [vmem:[#allocation22_spill] sm:$0xff] %v6079_v23  ;;  %v6083_v42 = vpop.f32.mrb[11].mxu0  ;;  %v5198_v23 = vld [vmem:[%s5285_s14 + $0x38] sm:$0xff] }
 0x18b   : > { %7153 = vst [vmem:[#allocation23_spill] sm:$0xff] %v6083_v42  ;;  %4831 = vmatmul.mubr.msk.f32.gmra.mrb[82].mxu0 %vm1427_vm1, %v5198_v23  ;;  %v6095_v42 = vpack.c.bf16 %v2484_v22, %v2482_v34  ;;  %v1788_v34 = vpop.f32.mrb[22].mxu1 }
 0x18c   : > { %4833 = vmatprep.mubr.msk.f32.mxu0 %vm1427_vm1, %v5199_v38  ;;  %v2487_v38 = vmax.f32 %v1784_v7, 0.0  ;;  %v2488_v24 = vmax.f32 %v1788_v34, 0.0  ;;  %v1790_v57 = vpop.f32.mrb[23].mxu1 }
 0x18d   : > { %v6087_v55 = vpop.f32.mrb[12].mxu0  ;;  %v1794_v3 = vpop.f32.mrb[24].mxu1 }
 0x18e   : > { %7154 = vst [vmem:[#allocation24_spill] sm:$0xff] %v6087_v55  ;;  %v6091_v41 = vpop.f32.mrb[13].mxu0  ;;  %v5200_v55 = vld [vmem:[%s5285_s14 + $0x48] sm:$0xff]  ;;  %v1796_v34 = vpop.f32.mrb[25].mxu1 }
 0x18f   : > { %7155 = vst [vmem:[#allocation25_spill] sm:$0xff] %v6091_v41  ;;  %4834 = vmatmul.mubr.msk.f32.gmra.mrb[84].mxu0 %vm1427_vm1, %v5200_v55  ;;  %v5201_v41 = vld [vmem:[%s5285_s14 + $0x50] sm:$0xff]  ;;  %v2489_v55 = vmax.f32 %v1790_v57, 0.0  ;;  %v2490_v57 = vmax.f32 %v1794_v3, 0.0 }
 0x190   : > { %4836 = vmatprep.mubr.msk.f32.mxu0 %vm1427_vm1, %v5201_v41 }
 0x191   : > { %v6099_v51 = vpop.f32.mrb[14].mxu0  ;;  %v6117_v41 = vpack.c.bf16 %v2489_v55, %v2487_v38  ;;  %v5206_v55 = vld [vmem:[%s5285_s14 + $0x78] sm:$0xff] }
 0x192   : > { %7156 = vst [vmem:[#allocation26_spill] sm:$0xff] %v6099_v51  ;;  %v6103_v23 = vpop.f32.mrb[15].mxu0  ;;  %v5202_v51 = vld [vmem:[%s5285_s14 + $0x58] sm:$0xff] }
 0x193   : > { %7157 = vst [vmem:[#allocation27_spill] sm:$0xff] %v6103_v23  ;;  %4837 = vmatmul.mubr.msk.f32.gmra.mrb[86].mxu0 %vm1427_vm1, %v5202_v51  ;;  %v6115_v23 = vpack.c.bf16 %v2488_v24, %v2486_v61  ;;  %v5205_v51 = vld [vmem:[%s5285_s14 + $0x70] sm:$0xff] }
 0x194   : > { %4839 = vmatprep.mubr.msk.f32.mxu0 %vm1427_vm1, %v5203_v36  ;;  %v1800_v36 = vpop.f32.mrb[26].mxu1 }
 0x195   : > { %v6107_v22 = vpop.f32.mrb[16].mxu0  ;;  %v2492_v24 = vmax.f32 %v1800_v36, 0.0  ;;  %v1802_v38 = vpop.f32.mrb[27].mxu1 }
 0x196   : > { %7158 = vst [vmem:[#allocation28_spill] sm:$0xff] %v6107_v22  ;;  %v6111_v27 = vpop.f32.mrb[17].mxu0  ;;  %v5204_v22 = vld [vmem:[%s5285_s14 + $0x68] sm:$0xff]  ;;  %v2493_v15 = vmax.f32 %v1802_v38, 0.0  ;;  %v1806_v3 = vpop.f32.mrb[28].mxu1 }
 0x197   : > { %7159 = vst [vmem:[#allocation29_spill] sm:$0xff] %v6111_v27  ;;  %4840 = vmatmul.mubr.msk.f32.gmra.mrb[88].mxu0 %vm1427_vm1, %v5204_v22  ;;  %v2491_v27 = vmax.f32 %v1796_v34, 0.0  ;;  %v6135_v22 = vpack.c.bf16 %v2492_v24, %v2490_v57  ;;  %v2494_v38 = vmax.f32 %v1806_v3, 0.0 }
 0x198   : > { %4842 = vmatprep.mubr.msk.f32.mxu0 %vm1427_vm1, %v5205_v51  ;;  %v1808_v51 = vpop.f32.mrb[29].mxu1 }
 0x199   : > { %v6119_v7 = vpop.f32.mrb[18].mxu0 }
 0x19a   : > { %7160 = vst [vmem:[#allocation30_spill] sm:$0xff] %v6119_v7  ;;  %v6123_v6 = vpop.f32.mrb[19].mxu0 }
 0x19b   : > { %7161 = vst [vmem:[#allocation31_spill] sm:$0xff] %v6123_v6  ;;  %4843 = vmatmul.mubr.msk.f32.gmra.mrb[90].mxu0 %vm1427_vm1, %v5206_v55  ;;  %v6137_v6 = vpack.c.bf16 %v2493_v15, %v2491_v27  ;;  %v2495_v55 = vmax.f32 %v1808_v51, 0.0 }
 0x19c   : > { %4845 = vmatprep.mubr.msk.f32.mxu0 %vm1427_vm1, %v5514_v8 }
 0x19d   : > { %v6127_v61 = vpop.f32.mrb[20].mxu0 }
 0x19e   : > { %7162 = vst [vmem:[#allocation32_spill] sm:$0xff] %v6127_v61  ;;  %v6131_v7 = vpop.f32.mrb[21].mxu0  ;;  %v1812_v61 = vpop.f32.mrb[30].mxu1 }
 0x19f   : > { %4846 = vmatmul.mubr.msk.f32.gmra.mrb[92].mxu0 %vm1427_vm1, %v5530_v14  ;;  %v2496_v57 = vmax.f32 %v1812_v61, 0.0  ;;  %v1814_v27 = vpop.f32.mrb[31].mxu1 }
 0x1a0   : > { %4848 = vmatprep.mubr.msk.f32.mxu0 %vm1427_vm1, %v5546_v20  ;;  %v2497_v24 = vmax.f32 %v1814_v27, 0.0  ;;  %v1818_v20 = vpop.f32.mrb[32].mxu1 }
 0x1a1   : > { %v6139_v34 = vpop.f32.mrb[22].mxu0  ;;  %v6155_v14 = vpack.c.bf16 %v2496_v57, %v2494_v38  ;;  %v1820_v51 = vpop.f32.mrb[33].mxu1 }
 0x1a2   : > { %7163 = vst [vmem:[#allocation33_spill] sm:$0xff] %v6139_v34  ;;  %v6143_v36 = vpop.f32.mrb[23].mxu0  ;;  %v6157_v34 = vpack.c.bf16 %v2497_v24, %v2495_v55  ;;  %v2499_v27 = vmax.f32 %v1820_v51, 0.0 }
 0x1a3   : > { %4849 = vmatmul.mubr.msk.f32.gmra.mrb[94].mxu0 %vm1427_vm1, %v5562_v28  ;;  %v2498_v28 = vmax.f32 %v1818_v20, 0.0 }
 0x1a4   : > { %4851 = vmatprep.mubr.msk.f32.mxu0 %vm1427_vm1, %v5575_v33 }
 0x1a5   : > { %v6147_v8 = vpop.f32.mrb[24].mxu0 }
 0x1a6   : > { %7164 = vst [vmem:[#allocation34_spill] sm:$0xff] %v6147_v8  ;;  %v6151_v15 = vpop.f32.mrb[25].mxu0  ;;  %v1824_v8 = vpop.f32.mrb[34].mxu1 }
 0x1a7   : > { %4852 = vmatmul.mubr.msk.f32.gmra.mrb[96].mxu0 %vm1427_vm1, %v5587_v39  ;;  %v2500_v38 = vmax.f32 %v1824_v8, 0.0  ;;  %v1826_v55 = vpop.f32.mrb[35].mxu1 }
 0x1a8   : > { %4854 = vmatprep.mubr.msk.f32.mxu0 %vm1427_vm1, %v5599_v35  ;;  %v2501_v24 = vmax.f32 %v1826_v55, 0.0  ;;  %v1830_v35 = vpop.f32.mrb[36].mxu1 }
 0x1a9   : > { %v6159_v3 = vpop.f32.mrb[26].mxu0  ;;  %v6175_v39 = vpack.c.bf16 %v2500_v38, %v2498_v28  ;;  %v1832_v51 = vpop.f32.mrb[37].mxu1 }
 0x1aa   : > { %7165 = vst [vmem:[#allocation35_spill] sm:$0xff] %v6159_v3  ;;  %v6163_v61 = vpop.f32.mrb[27].mxu0  ;;  %v6177_v3 = vpack.c.bf16 %v2501_v24, %v2499_v27  ;;  %v2503_v55 = vmax.f32 %v1832_v51, 0.0 }
 0x1ab   : > { %4855 = vmatmul.mubr.msk.f32.gmra.mrb[98].mxu0 %vm1427_vm1, %v5611_v48  ;;  %v2502_v48 = vmax.f32 %v1830_v35, 0.0 }
 0x1ac   : > { %4857 = vmatprep.mubr.msk.f32.mxu0 %vm1427_vm1, %v5623_v53 }
 0x1ad   : > { %v6167_v33 = vpop.f32.mrb[28].mxu0 }
 0x1ae   : > { %7166 = vst [vmem:[#allocation36_spill] sm:$0xff] %v6167_v33  ;;  %v6171_v57 = vpop.f32.mrb[29].mxu0  ;;  %v1836_v33 = vpop.f32.mrb[38].mxu1 }
 0x1af   : > { %4858 = vmatmul.mubr.msk.f32.gmra.mrb[100].mxu0 %vm1427_vm1, %v5635_v58  ;;  %v2504_v28 = vmax.f32 %v1836_v33, 0.0  ;;  %v1838_v27 = vpop.f32.mrb[39].mxu1 }
 0x1b0   : > { %4860 = vmatprep.mubr.msk.f32.mxu0 %vm1427_vm1, %v5647_v63  ;;  %v2505_v24 = vmax.f32 %v1838_v27, 0.0  ;;  %v1842_v63 = vpop.f32.mrb[40].mxu1 }
 0x1b1   : > { %v6179_v20 = vpop.f32.mrb[30].mxu0  ;;  %v6195_v58 = vpack.c.bf16 %v2504_v28, %v2502_v48  ;;  %v1844_v51 = vpop.f32.mrb[41].mxu1 }
 0x1b2   : > { %7167 = vst [vmem:[#allocation37_spill] sm:$0xff] %v6179_v20  ;;  %v6183_v8 = vpop.f32.mrb[31].mxu0  ;;  %v6197_v20 = vpack.c.bf16 %v2505_v24, %v2503_v55  ;;  %v2507_v27 = vmax.f32 %v1844_v51, 0.0 }
 0x1b3   : > { %4861 = vmatmul.mubr.msk.f32.gmra.mrb[102].mxu0 %vm1427_vm1, %v5659_v5  ;;  %v2506_v5 = vmax.f32 %v1842_v63, 0.0 }
 0x1b4   : > { %4863 = vmatprep.mubr.msk.f32.mxu0 %vm1427_vm1, %v5671_v12 }
 0x1b5   : > { %v6187_v53 = vpop.f32.mrb[32].mxu0 }
 0x1b6   : > { %7168 = vst [vmem:[#allocation38_spill] sm:$0xff] %v6187_v53  ;;  %v6191_v38 = vpop.f32.mrb[33].mxu0  ;;  %v1848_v53 = vpop.f32.mrb[42].mxu1 }
 0x1b7   : > { %7169 = vst [vmem:[#allocation39_spill] sm:$0xff] %v6191_v38  ;;  %4864 = vmatmul.mubr.msk.f32.gmra.mrb[104].mxu0 %vm1427_vm1, %v5683_v18  ;;  %v2508_v48 = vmax.f32 %v1848_v53, 0.0  ;;  %v1850_v55 = vpop.f32.mrb[43].mxu1 }
 0x1b8   : > { %4866 = vmatprep.mubr.msk.f32.mxu0 %vm1427_vm1, %v5695_v25  ;;  %v2509_v24 = vmax.f32 %v1850_v55, 0.0  ;;  %v1854_v25 = vpop.f32.mrb[44].mxu1 }
 0x1b9   : > { %v6199_v35 = vpop.f32.mrb[34].mxu0  ;;  %v6215_v18 = vpack.c.bf16 %v2508_v48, %v2506_v5  ;;  %v1856_v51 = vpop.f32.mrb[45].mxu1 }
 0x1ba   : > { %7170 = vst [vmem:[#allocation40_spill] sm:$0xff] %v6199_v35  ;;  %v6203_v33 = vpop.f32.mrb[35].mxu0  ;;  %v6217_v35 = vpack.c.bf16 %v2509_v24, %v2507_v27  ;;  %v2511_v55 = vmax.f32 %v1856_v51, 0.0 }
 0x1bb   : > { %7171 = vst [vmem:[#allocation41_spill] sm:$0xff] %v6203_v33  ;;  %4867 = vmatmul.mubr.msk.f32.gmra.mrb[106].mxu0 %vm1427_vm1, %v5707_v32  ;;  %v2510_v32 = vmax.f32 %v1854_v25, 0.0 }
 0x1bc   : > { %4869 = vmatprep.mubr.msk.f32.mxu0 %vm1427_vm1, %v5719_v40 }
 0x1bd   : > { %v6207_v12 = vpop.f32.mrb[36].mxu0 }
 0x1be   : > { %7172 = vst [vmem:[#allocation42_spill] sm:$0xff] %v6207_v12  ;;  %v6211_v28 = vpop.f32.mrb[37].mxu0  ;;  %v1860_v12 = vpop.f32.mrb[46].mxu1 }
 0x1bf   : > { %7173 = vst [vmem:[#allocation43_spill] sm:$0xff] %v6211_v28  ;;  %4870 = vmatmul.mubr.msk.f32.gmra.mrb[108].mxu0 %vm1427_vm1, %v5731_v45  ;;  %v2512_v5 = vmax.f32 %v1860_v12, 0.0  ;;  %v1862_v27 = vpop.f32.mrb[47].mxu1 }
 0x1c0   : > { %4872 = vmatprep.mubr.msk.f32.mxu0 %vm1427_vm1, %v5747_v52  ;;  %v2513_v24 = vmax.f32 %v1862_v27, 0.0  ;;  %v1866_v52 = vpop.f32.mrb[48].mxu1 }
 0x1c1   : > { %v6219_v63 = vpop.f32.mrb[38].mxu0  ;;  %v6235_v45 = vpack.c.bf16 %v2512_v5, %v2510_v32  ;;  %v1868_v51 = vpop.f32.mrb[49].mxu1 }
 0x1c2   : > { %7174 = vst [vmem:[#allocation44_spill] sm:$0xff] %v6219_v63  ;;  %v6223_v53 = vpop.f32.mrb[39].mxu0  ;;  %v6237_v63 = vpack.c.bf16 %v2513_v24, %v2511_v55  ;;  %v2515_v27 = vmax.f32 %v1868_v51, 0.0 }
 0x1c3   : > { %7175 = vst [vmem:[#allocation45_spill] sm:$0xff] %v6223_v53  ;;  %4873 = vmatmul.mubr.msk.f32.gmra.mrb[110].mxu0 %vm1427_vm1, %v5759_v59  ;;  %v2514_v59 = vmax.f32 %v1866_v52, 0.0 }
 0x1c4   : > { %4875 = vmatprep.mubr.msk.f32.mxu0 %vm1427_vm1, %v5771_v1 }
 0x1c5   : > { %v6227_v40 = vpop.f32.mrb[40].mxu0 }
 0x1c6   : > { %7176 = vst [vmem:[#allocation46_spill] sm:$0xff] %v6227_v40  ;;  %v6231_v48 = vpop.f32.mrb[41].mxu0  ;;  %v1872_v40 = vpop.f32.mrb[50].mxu1 }
 0x1c7   : > { %7177 = vst [vmem:[#allocation47_spill] sm:$0xff] %v6231_v48  ;;  %4876 = vmatmul.mubr.msk.f32.gmra.mrb[112].mxu0 %vm1427_vm1, %v5786_v11  ;;  %v2516_v32 = vmax.f32 %v1872_v40, 0.0  ;;  %v1874_v55 = vpop.f32.mrb[51].mxu1 }
 0x1c8   : > { %4878 = vmatprep.mubr.msk.f32.mxu0 %vm1427_vm1, %v5799_v19  ;;  %v2517_v24 = vmax.f32 %v1874_v55, 0.0  ;;  %v1878_v19 = vpop.f32.mrb[52].mxu1 }
 0x1c9   : > { %v6239_v25 = vpop.f32.mrb[42].mxu0  ;;  %v6255_v11 = vpack.c.bf16 %v2516_v32, %v2514_v59  ;;  %v1880_v51 = vpop.f32.mrb[53].mxu1 }
 0x1ca   : > { %7178 = vst [vmem:[#allocation48_spill] sm:$0xff] %v6239_v25  ;;  %v6243_v12 = vpop.f32.mrb[43].mxu0  ;;  %v6257_v25 = vpack.c.bf16 %v2517_v24, %v2515_v27  ;;  %v2519_v55 = vmax.f32 %v1880_v51, 0.0 }
 0x1cb   : > { %7179 = vst [vmem:[#allocation49_spill] sm:$0xff] %v6243_v12  ;;  %4879 = vmatmul.mubr.msk.f32.gmra.mrb[114].mxu0 %vm1427_vm1, %v5811_v29  ;;  %v2518_v29 = vmax.f32 %v1878_v19, 0.0  ;;  %v7205_v12 = vld [vmem:[#allocation12_spill] sm:$0xff] }
 0x1cc   : > { %4881 = vmatprep.mubr.msk.f32.mxu0 %vm1427_vm1, %v5823_v37 }
 0x1cd   : > { %v6247_v1 = vpop.f32.mrb[44].mxu0 }
 0x1ce   : > { %7180 = vst [vmem:[#allocation50_spill] sm:$0xff] %v6247_v1  ;;  %v6251_v5 = vpop.f32.mrb[45].mxu0  ;;  %v1884_v1 = vpop.f32.mrb[54].mxu1 }
 0x1cf   : > { %7181 = vst [vmem:[#allocation51_spill] sm:$0xff] %v6251_v5  ;;  %4882 = vmatmul.mubr.msk.f32.gmra.mrb[116].mxu0 %vm1427_vm1, %v5836_v26  ;;  %v2520_v59 = vmax.f32 %v1884_v1, 0.0  ;;  %v1886_v27 = vpop.f32.mrb[55].mxu1 }
 0x1d0   : > { %4884 = vmatprep.mubr.msk.f32.mxu0 %vm1427_vm1, %v5845_v43  ;;  %v2521_v24 = vmax.f32 %v1886_v27, 0.0  ;;  %v1890_v43 = vpop.f32.mrb[56].mxu1 }
 0x1d1   : > { %v6259_v52 = vpop.f32.mrb[46].mxu0  ;;  %v6275_v26 = vpack.c.bf16 %v2520_v59, %v2518_v29  ;;  %v1892_v51 = vpop.f32.mrb[57].mxu1 }
 0x1d2   : > { %7182 = vst [vmem:[#allocation52_spill] sm:$0xff] %v6259_v52  ;;  %v6263_v40 = vpop.f32.mrb[47].mxu0  ;;  %v6277_v52 = vpack.c.bf16 %v2521_v24, %v2519_v55  ;;  %v2523_v27 = vmax.f32 %v1892_v51, 0.0 }
 0x1d3   : > { %7183 = vst [vmem:[#allocation53_spill] sm:$0xff] %v6263_v40  ;;  %4885 = vmatmul.mubr.msk.f32.gmra.mrb[118].mxu0 %vm1427_vm1, %v5857_v46  ;;  %v2522_v46 = vmax.f32 %v1890_v43, 0.0 }
 0x1d4   : > { %4887 = vmatprep.mubr.msk.f32.mxu0 %vm1427_vm1, %v5872_v50 }
 0x1d5   : > { %v6267_v37 = vpop.f32.mrb[48].mxu0 }
 0x1d6   : > { %7184 = vst [vmem:[#allocation54_spill] sm:$0xff] %v6267_v37  ;;  %v6271_v32 = vpop.f32.mrb[49].mxu0  ;;  %v1896_v37 = vpop.f32.mrb[58].mxu1 }
 0x1d7   : > { %7185 = vst [vmem:[#allocation55_spill] sm:$0xff] %v6271_v32  ;;  %4888 = vmatmul.mubr.msk.f32.gmra.mrb[120].mxu0 %vm1427_vm1, %v5885_v54  ;;  %v2524_v29 = vmax.f32 %v1896_v37, 0.0  ;;  %v1898_v55 = vpop.f32.mrb[59].mxu1 }
 0x1d8   : > { %4890 = vmatprep.mubr.msk.f32.mxu0 %vm1427_vm1, %v5897_v56  ;;  %v2525_v24 = vmax.f32 %v1898_v55, 0.0  ;;  %v1902_v56 = vpop.f32.mrb[60].mxu1 }
 0x1d9   : > { %v6279_v19 = vpop.f32.mrb[50].mxu0  ;;  %v6295_v54 = vpack.c.bf16 %v2524_v29, %v2522_v46  ;;  %v1904_v51 = vpop.f32.mrb[61].mxu1 }
 0x1da   : > { %7186 = vst [vmem:[#allocation56_spill] sm:$0xff] %v6279_v19  ;;  %v6283_v1 = vpop.f32.mrb[51].mxu0  ;;  %v6297_v19 = vpack.c.bf16 %v2525_v24, %v2523_v27  ;;  %v2527_v55 = vmax.f32 %v1904_v51, 0.0 }
 0x1db   : > { %7187 = vst [vmem:[#allocation57_spill] sm:$0xff] %v6283_v1  ;;  %4891 = vmatmul.mubr.msk.f32.gmra.mrb[122].mxu0 %vm1427_vm1, %v5909_v60  ;;  %v2526_v60 = vmax.f32 %v1902_v56, 0.0  ;;  %v7204_v1 = vld [vmem:[#allocation8_spill] sm:$0xff] }
 0x1dc   : > { %4893 = vmatprep.mubr.msk.f32.mxu0 %vm1427_vm1, %v5919_v62 }
 0x1dd   : > { %v6287_v50 = vpop.f32.mrb[52].mxu0 }
 0x1de   : > { %7188 = vst [vmem:[#allocation58_spill] sm:$0xff] %v6287_v50  ;;  %v6291_v59 = vpop.f32.mrb[53].mxu0  ;;  %v1908_v50 = vpop.f32.mrb[62].mxu1 }
 0x1df   : > { %7189 = vst [vmem:[#allocation59_spill] sm:$0xff] %v6291_v59  ;;  %4894 = vmatmul.mubr.msk.f32.gmra.mrb[124].mxu0 %vm1427_vm1, %v5926_v0  ;;  %v2528_v46 = vmax.f32 %v1908_v50, 0.0  ;;  %v1910_v27 = vpop.f32.mrb[63].mxu1 }
 0x1e0   : > { %4896 = vmatprep.mubr.msk.f32.mxu0 %vm1427_vm1, %v5932_v2  ;;  %v2529_v24 = vmax.f32 %v1910_v27, 0.0  ;;  %v1914_v2 = vpop.f32.mrb[64].mxu1 }
 0x1e1   : > { %v6299_v43 = vpop.f32.mrb[54].mxu0  ;;  %v6315_v0 = vpack.c.bf16 %v2528_v46, %v2526_v60  ;;  %v1916_v51 = vpop.f32.mrb[65].mxu1 }
 0x1e2   : > { %7190 = vst [vmem:[#allocation60_spill] sm:$0xff] %v6299_v43  ;;  %v6303_v37 = vpop.f32.mrb[55].mxu0  ;;  %v6317_v43 = vpack.c.bf16 %v2529_v24, %v2527_v55  ;;  %v2531_v27 = vmax.f32 %v1916_v51, 0.0 }
 0x1e3   : > { %7191 = vst [vmem:[#allocation61_spill] sm:$0xff] %v6303_v37  ;;  %4897 = vmatmul.mubr.msk.f32.gmra.mrb[126].mxu0 %vm1427_vm1, %v5938_v4  ;;  %v2530_v4 = vmax.f32 %v1914_v2, 0.0 }
 0x1e4   : > { %4899 = vmatprep.mubr.msk.f32.mxu0 %vm1427_vm1, %v5948_v9 }
 0x1e5   : > { %v6307_v62 = vpop.f32.mrb[56].mxu0 }
 0x1e6   : > { %7192 = vst [vmem:[#allocation62_spill] sm:$0xff] %v6307_v62  ;;  %v6311_v29 = vpop.f32.mrb[57].mxu0  ;;  %v1920_v62 = vpop.f32.mrb[66].mxu1 }
 0x1e7   : > { %7193 = vst [vmem:[#allocation63_spill] sm:$0xff] %v6311_v29  ;;  %4900 = vmatmul.mubr.msk.f32.gmra.mrb[128].mxu0 %vm1427_vm1, %v5954_v10  ;;  %v2532_v60 = vmax.f32 %v1920_v62, 0.0  ;;  %v1922_v55 = vpop.f32.mrb[67].mxu1 }
 0x1e8   : > { %4902 = vmatprep.mubr.msk.f32.mxu0 %vm1427_vm1, %v5960_v13  ;;  %v2533_v24 = vmax.f32 %v1922_v55, 0.0  ;;  %v1926_v13 = vpop.f32.mrb[68].mxu1 }
 0x1e9   : > { %v6319_v56 = vpop.f32.mrb[58].mxu0  ;;  %v6335_v10 = vpack.c.bf16 %v2532_v60, %v2530_v4  ;;  %v1928_v51 = vpop.f32.mrb[69].mxu1  ;;  %v2534_v55 = vmax.f32 %v1926_v13, 0.0 }
 0x1ea   : > { %7194 = vst [vmem:[#allocation64_spill] sm:$0xff] %v6319_v56  ;;  %v6323_v50 = vpop.f32.mrb[59].mxu0  ;;  %v6337_v56 = vpack.c.bf16 %v2533_v24, %v2531_v27  ;;  %v7201_v27 = vld [vmem:[#allocation3_spill] sm:$0xff] }
 0x1eb   : > { %7195 = vst [vmem:[#allocation65_spill] sm:$0xff] %v6323_v50  ;;  %4903 = vmatmul.mubr.msk.f32.gmra.mrb[130].mxu0 %vm1427_vm1, %v5969_v16  ;;  %v7200_v16 = vld [vmem:[#allocation2_spill] sm:$0xff]  ;;  %v7202_v50 = vld [vmem:[#allocation4_spill] sm:$0xff] }
 0x1ec   : > { %4905 = vmatprep.mubr.msk.f32.mxu0 %vm1427_vm1, %v5976_v17 }
 0x1ed   : > { %v6327_v9 = vpop.f32.mrb[60].mxu0 }
 0x1ee   : > { %7196 = vst [vmem:[#allocation66_spill] sm:$0xff] %v6327_v9  ;;  %v6331_v46 = vpop.f32.mrb[61].mxu0  ;;  %v2535_v9 = vmax.f32 %v1928_v51, 0.0  ;;  %v7203_v51 = vld [vmem:[#allocation7_spill] sm:$0xff] }
 0x1ef   : > { %7197 = vst [vmem:[#allocation67_spill] sm:$0xff] %v6331_v46  ;;  %4906 = vmatmul.mubr.msk.f32.gmra.mrb[132].mxu0 %vm1427_vm1, %v5982_v21  ;;  %v1932_v46 = vpop.f32.mrb[70].mxu1 }
 0x1f0   : > { %4908 = vmatprep.mubr.msk.f32.mxu0 %vm1427_vm1, %v7200_v16  ;;  %v2536_v4 = vmax.f32 %v1932_v46, 0.0  ;;  %v1934_v60 = vpop.f32.mrb[71].mxu1 }
 0x1f1   : > { %v6339_v2 = vpop.f32.mrb[62].mxu0  ;;  %v1938_v29 = vpop.f32.mrb[72].mxu1 }
 0x1f2   : > { %7198 = vst [vmem:[#allocation68_spill] sm:$0xff] %v6339_v2  ;;  %v6343_v62 = vpop.f32.mrb[63].mxu0  ;;  %v2537_v2 = vmax.f32 %v1934_v60, 0.0  ;;  %v6351_v21 = vpack.c.bf16 %v2536_v4, %v2534_v55  ;;  %v1940_v13 = vpop.f32.mrb[73].mxu1  ;;  %v2538_v32 = vmax.f32 %v1938_v29, 0.0 }
 0x1f3   : > { %7199 = vst [vmem:[#allocation69_spill] sm:$0xff] %v6343_v62  ;;  %4909 = vmatmul.mubr.msk.f32.gmra.mrb[134].mxu0 %vm1427_vm1, %v7201_v27  ;;  %v2539_v55 = vmax.f32 %v1940_v13, 0.0 }
 0x1f4   : > { %4911 = vmatprep.mubr.msk.f32.mxu0 %vm1427_vm1, %v7202_v50  ;;  %v6353_v62 = vpack.c.bf16 %v2537_v2, %v2535_v9  ;;  %v1944_v4 = vpop.f32.mrb[74].mxu1 }
 0x1f5   : > { %v1686_v17 = vpop.f32.mrb[64].mxu0  ;;  %v2540_v40 = vmax.f32 %v1944_v4, 0.0  ;;  %v1946_v5 = vpop.f32.mrb[75].mxu1 }
 0x1f6   : > { %v1688_v24 = vpop.f32.mrb[65].mxu0  ;;  %v2454_v46 = vmax.f32 %v1686_v17, 0.0  ;;  %v2541_v17 = vmax.f32 %v1946_v5, 0.0 }
 0x1f7   : > { %4912 = vmatmul.mubr.msk.f32.gmra.mrb[136].mxu0 %vm1427_vm1, %v7203_v51  ;;  %v2455_v60 = vmax.f32 %v1688_v24, 0.0 }
 0x1f8   : > { %4914 = vmatprep.mubr.msk.f32.mxu0 %vm1427_vm1, %v7204_v1  ;;  %v6363_v1 = vpack.c.bf16 %v2541_v17, %v2539_v55 }
 0x1f9   : > { %v1692_v16 = vpop.f32.mrb[66].mxu0 }
 0x1fa   : > { %v2456_v37 = vmax.f32 %v1692_v16, 0.0  ;;  %v1694_v59 = vpop.f32.mrb[67].mxu0  ;;  %v6361_v16 = vpack.c.bf16 %v2540_v40, %v2538_v32 }
 0x1fb   : > { %v2457_v27 = vmax.f32 %v1694_v59, 0.0  ;;  %4915 = vmatmul.mubr.msk.f32.gmra.mrb[138].mxu0 %vm1427_vm1, %v7205_v12  ;;  %v1950_v59 = vpop.f32.mrb[76].mxu1 }
 0x1fc   : > { %v2582_v50 = vpack.c.bf16 %v2456_v37, %v2454_v46  ;;  %v1952_v37 = vpop.f32.mrb[77].mxu1  ;;  %v2542_v4 = vmax.f32 %v1950_v59, 0.0 }
 0x1fd   : > { %v2583_v9 = vpack.c.bf16 %v2457_v27, %v2455_v60  ;;  %v1698_v2 = vpop.f32.mrb[68].mxu0  ;;  %v2543_v53 = vmax.f32 %v1952_v37, 0.0  ;;  %v1956_v12 = vpop.f32.mrb[78].mxu1 }
 0x1fe   : > { %v1700_v51 = vpop.f32.mrb[69].mxu0  ;;  %v2458_v24 = vmax.f32 %v1698_v2, 0.0  ;;  %v1958_v40 = vpop.f32.mrb[79].mxu1 }
 0x1ff   : > { %2806 = vmatprep.mubr.bf16.mxu1 %v2583_v9  ;;  %v2459_v60 = vmax.f32 %v1700_v51, 0.0  ;;  %v2544_v9 = vmax.f32 %v1956_v12, 0.0 }
 0x200   : > { %2807 = vmatmul.mubr.bf16.vlgmr.msra.gmra.mrb[116].mxu1 %v2582_v50  ;;  %v2545_v50 = vmax.f32 %v1958_v40, 0.0  ;;  %v1962_v2 = vpop.f32.mrb[80].mxu1 }
 0x201   : > { %v1704_v29 = vpop.f32.mrb[70].mxu0  ;;  %v6365_v55 = vpack.c.bf16 %v2544_v9, %v2542_v4  ;;  %v1964_v51 = vpop.f32.mrb[81].mxu1 }
 0x202   : > { %v2460_v13 = vmax.f32 %v1704_v29, 0.0  ;;  %v1706_v46 = vpop.f32.mrb[71].mxu0  ;;  %v6367_v17 = vpack.c.bf16 %v2545_v50, %v2543_v53  ;;  %v2547_v12 = vmax.f32 %v1964_v51, 0.0 }
 0x203   : > { %v2461_v27 = vmax.f32 %v1706_v46, 0.0 }
 0x204   : > { %v2584_v48 = vpack.c.bf16 %v2460_v13, %v2458_v24  ;;  %v1968_v33 = vpop.f32.mrb[82].mxu1 }
 0x205   : > { %v2585_v28 = vpack.c.bf16 %v2461_v27, %v2459_v60  ;;  %v1710_v5 = vpop.f32.mrb[72].mxu0  ;;  %v2546_v60 = vmax.f32 %v1962_v2, 0.0  ;;  %v2548_v40 = vmax.f32 %v1968_v33, 0.0  ;;  %v7207_v33 = vld [vmem:[#allocation5_spill] sm:$0xff] }
 0x206   : > { %v1712_v32 = vpop.f32.mrb[73].mxu0  ;;  %v2462_v46 = vmax.f32 %v1710_v5, 0.0  ;;  %v7206_v5 = vld [vmem:[#allocation6_spill] sm:$0xff] }
 0x207   : > { %2814 = vmatprep.mubr.bf16.mxu1 %v2585_v28  ;;  %v2463_v37 = vmax.f32 %v1712_v32, 0.0  ;;  %v1970_v28 = vpop.f32.mrb[83].mxu1 }
 0x208   : > { %2815 = vmatmul.mubr.bf16.gmra.mrb[120].mxu1 %v2584_v48  ;;  %v2549_v4 = vmax.f32 %v1970_v28, 0.0  ;;  %v6369_v48 = vpack.c.bf16 %v2548_v40, %v2546_v60  ;;  %v1974_v9 = vpop.f32.mrb[84].mxu1 }
 0x209   : > { %v1716_v29 = vpop.f32.mrb[74].mxu0  ;;  %v1976_v50 = vpop.f32.mrb[85].mxu1  ;;  %v2550_v32 = vmax.f32 %v1974_v9, 0.0 }
 0x20a   : > { %v2464_v59 = vmax.f32 %v1716_v29, 0.0  ;;  %v1718_v24 = vpop.f32.mrb[75].mxu0  ;;  %v6371_v53 = vpack.c.bf16 %v2549_v4, %v2547_v12  ;;  %v2551_v29 = vmax.f32 %v1976_v50, 0.0  ;;  %v7209_v50 = vld [vmem:[#allocation11_spill] sm:$0xff] }
 0x20b   : > { %v2465_v13 = vmax.f32 %v1718_v24, 0.0 }
 0x20c   : > { %v2586_v27 = vpack.c.bf16 %v2464_v59, %v2462_v46  ;;  %v1980_v2 = vpop.f32.mrb[86].mxu1 }
 0x20d   : > { %v2587_v38 = vpack.c.bf16 %v2465_v13, %v2463_v37  ;;  %v2552_v46 = vmax.f32 %v1980_v2, 0.0  ;;  %v1982_v51 = vpop.f32.mrb[87].mxu1  ;;  %v7208_v13 = vld [vmem:[#allocation13_spill] sm:$0xff] }
 0x20e   : > { %v2553_v59 = vmax.f32 %v1982_v51, 0.0 }
 0x20f   : > { %2822 = vmatprep.mubr.bf16.mxu1 %v2587_v38  ;;  %v6374_v24 = vpack.c.bf16 %v2552_v46, %v2550_v32 }
 0x210   : > { %2823 = vmatmul.mubr.bf16.gmra.mrb[124].mxu1 %v2586_v27  ;;  %v6377_v38 = vpack.c.bf16 %v2553_v59, %v2551_v29  ;;  %v1986_v37 = vpop.f32.mrb[88].mxu1 }
 0x211   : > { %2830 = vmatprep.mubr.bf16.mxu1 %v7206_v5  ;;  %v1988_v60 = vpop.f32.mrb[89].mxu1  ;;  %v2554_v27 = vmax.f32 %v1986_v37, 0.0 }
 0x212   : > { %v2555_v12 = vmax.f32 %v1988_v60, 0.0 }
 0x214   : > { %v1992_v40 = vpop.f32.mrb[90].mxu1 }
 0x215   : > { %v2556_v28 = vmax.f32 %v1992_v40, 0.0  ;;  %v1994_v4 = vpop.f32.mrb[91].mxu1 }
 0x216   : > { %v2557_v9 = vmax.f32 %v1994_v4, 0.0 }
 0x217   : > { %v6380_v5 = vpack.c.bf16 %v2556_v28, %v2554_v27 }
 0x218   : > { %2831 = vmatmul.mubr.bf16.gmra.mrb[128].mxu1 %v7207_v33  ;;  %v6383_v32 = vpack.c.bf16 %v2557_v9, %v2555_v12  ;;  %v1998_v2 = vpop.f32.mrb[92].mxu1 }
 0x219   : > { %2838 = vmatprep.mubr.bf16.mxu1 %v7208_v13  ;;  %v2000_v29 = vpop.f32.mrb[93].mxu1  ;;  %v2558_v46 = vmax.f32 %v1998_v2, 0.0 }
 0x21a   : > { %v2559_v51 = vmax.f32 %v2000_v29, 0.0 }
 0x21c   : > { %v2004_v59 = vpop.f32.mrb[94].mxu1 }
 0x21d   : > { %v2560_v33 = vmax.f32 %v2004_v59, 0.0  ;;  %v2006_v37 = vpop.f32.mrb[95].mxu1 }
 0x21e   : > { %v2561_v13 = vmax.f32 %v2006_v37, 0.0 }
 0x21f   : > { %v6386_v60 = vpack.c.bf16 %v2560_v33, %v2558_v46 }
 0x220   : > { %2839 = vmatmul.mubr.bf16.gmra.mrb[132].mxu1 %v7209_v50  ;;  %v6389_v27 = vpack.c.bf16 %v2561_v13, %v2559_v51  ;;  %v2010_v40 = vpop.f32.mrb[96].mxu1 }
 0x221   : > { %2846 = vmatprep.mubr.bf16.mxu1 %v6057_v49  ;;  %v2012_v12 = vpop.f32.mrb[97].mxu1  ;;  %v2562_v28 = vmax.f32 %v2010_v40, 0.0 }
 0x222   : > { %v2563_v4 = vmax.f32 %v2012_v12, 0.0 }
 0x224   : > { %v2016_v49 = vpop.f32.mrb[98].mxu1 }
 0x225   : > { %v2564_v9 = vmax.f32 %v2016_v49, 0.0  ;;  %v2018_v50 = vpop.f32.mrb[99].mxu1 }
 0x226   : > { %v2565_v2 = vmax.f32 %v2018_v50, 0.0  ;;  %v3193_v50 = vld [vmem:[%s7121_s6 + $0x10] sm:$0xff] }
 0x227   : > { %v6392_v29 = vpack.c.bf16 %v2564_v9, %v2562_v28  ;;  %v3191_v28 = vld [vmem:[%s7121_s6] sm:$0xff] }
 0x228   : > { %2847 = vmatmul.mubr.bf16.gmra.mrb[136].mxu1 %v6055_v30  ;;  %v6395_v46 = vpack.c.bf16 %v2565_v2, %v2563_v4  ;;  %v2022_v59 = vpop.f32.mrb[100].mxu1  ;;  %v3194_v2 = vld [vmem:[%s7121_s6 + $0x18] sm:$0xff] }
 0x229   : > { %2854 = vmatprep.mubr.bf16.mxu1 %v6077_v47  ;;  %v2024_v30 = vpop.f32.mrb[101].mxu1  ;;  %v2566_v51 = vmax.f32 %v2022_v59, 0.0  ;;  %v5073_v59 = vpack.c.bf16 %v3194_v2, %v3193_v50  ;;  %v3198_v50 = vld [vmem:[%s7121_s6 + $0x38] sm:$0xff] }
 0x22a   : > { %v2567_v33 = vmax.f32 %v2024_v30, 0.0 }
 0x22c   : > { %v2028_v47 = vpop.f32.mrb[102].mxu1 }
 0x22d   : > { %v2568_v37 = vmax.f32 %v2028_v47, 0.0  ;;  %v2030_v13 = vpop.f32.mrb[103].mxu1 }
 0x22e   : > { %v2569_v40 = vmax.f32 %v2030_v13, 0.0  ;;  %v3195_v13 = vld [vmem:[%s7121_s6 + $0x20] sm:$0xff] }
 0x22f   : > { %v6398_v12 = vpack.c.bf16 %v2568_v37, %v2566_v51 }
 0x230   : > { %2855 = vmatmul.mubr.bf16.gmra.mrb[140].mxu1 %v6073_v44  ;;  %v3192_v44 = vld [vmem:[%s7121_s6 + $0x8] sm:$0xff]  ;;  %v2034_v4 = vpop.f32.mrb[104].mxu1 }
 0x231   : > { %2862 = vmatprep.mubr.bf16.mxu1 %v6097_v31  ;;  %v6407_v31 = vpack.c.bf16 %v2569_v40, %v2567_v33  ;;  %v5069_v49 = vpack.c.bf16 %v3192_v44, %v3191_v28  ;;  %v2036_v9 = vpop.f32.mrb[105].mxu1  ;;  %v2570_v30 = vmax.f32 %v2034_v4, 0.0  ;;  %v3196_v40 = vld [vmem:[%s7121_s6 + $0x28] sm:$0xff] }
 0x232   : > { %v5077_v4 = vpack.c.bf16 %v3196_v40, %v3195_v13 }
 0x233   : > { %5070 = vmatprep.subr.bf16.mxu0 %v5069_v49 }
 0x234   : > { %5072 = vmatpush3.bf16.msra.mxu0 %v5069_v49  ;;  %v2040_v51 = vpop.f32.mrb[106].mxu1 }
 0x235   : > { %5074 = vmatprep.subr.bf16.mxu0 %v5073_v59  ;;  %v2572_v33 = vmax.f32 %v2040_v51, 0.0  ;;  %v2042_v47 = vpop.f32.mrb[107].mxu1 }
 0x236   : > { %v2573_v37 = vmax.f32 %v2042_v47, 0.0  ;;  %v3199_v47 = vld [vmem:[%s7121_s6 + $0x40] sm:$0xff] }
 0x238   : > { %2863 = vmatmul.mubr.bf16.gmra.mrb[144].mxu1 %v6095_v42  ;;  %v2571_v42 = vmax.f32 %v2036_v9, 0.0  ;;  %5076 = vmatpush3.bf16.msra.mxu0 %v5073_v59  ;;  %v2046_v44 = vpop.f32.mrb[108].mxu1  ;;  %v3197_v9 = vld [vmem:[%s7121_s6 + $0x30] sm:$0xff] }
 0x239   : > { %2870 = vmatprep.mubr.bf16.mxu1 %v6117_v41  ;;  %v6416_v41 = vpack.c.bf16 %v2572_v33, %v2570_v30  ;;  %v2048_v49 = vpop.f32.mrb[109].mxu1  ;;  %5078 = vmatprep.subr.bf16.mxu0 %v5077_v4  ;;  %v5081_v2 = vpack.c.bf16 %v3198_v50, %v3197_v9  ;;  %v2574_v59 = vmax.f32 %v2046_v44, 0.0  ;;  %v3202_v9 = vld [vmem:[%s7121_s6 + $0x58] sm:$0xff] }
 0x23a   : > { %v6425_v28 = vpack.c.bf16 %v2573_v37, %v2571_v42  ;;  %v3200_v37 = vld [vmem:[%s7121_s6 + $0x48] sm:$0xff] }
 0x23b   : > { %v5085_v44 = vpack.c.bf16 %v3200_v37, %v3199_v47 }
 0x23c   : > { %5080 = vmatpush3.bf16.msra.mxu0 %v5077_v4  ;;  %v2052_v30 = vpop.f32.mrb[110].mxu1 }
 0x23d   : > { %5082 = vmatprep.subr.bf16.mxu0 %v5081_v2  ;;  %v2576_v42 = vmax.f32 %v2052_v30, 0.0  ;;  %v2054_v51 = vpop.f32.mrb[111].mxu1 }
 0x23e   : > { %v2577_v33 = vmax.f32 %v2054_v51, 0.0  ;;  %v3203_v51 = vld [vmem:[%s7121_s6 + $0x60] sm:$0xff] }
 0x240   : > { %2871 = vmatmul.mubr.bf16.gmra.mrb[148].mxu1 %v6115_v23  ;;  %v2575_v23 = vmax.f32 %v2048_v49, 0.0  ;;  %5084 = vmatpush3.bf16.msra.mxu0 %v5081_v2  ;;  %v2058_v40 = vpop.f32.mrb[112].mxu1  ;;  %v3201_v49 = vld [vmem:[%s7121_s6 + $0x50] sm:$0xff] }
 0x241   : > { %2878 = vmatprep.mubr.bf16.mxu1 %v6137_v6  ;;  %v6434_v6 = vpack.c.bf16 %v2576_v42, %v2574_v59  ;;  %v2060_v4 = vpop.f32.mrb[113].mxu1  ;;  %5086 = vmatprep.subr.bf16.mxu0 %v5085_v44  ;;  %v5089_v50 = vpack.c.bf16 %v3202_v9, %v3201_v49  ;;  %v2578_v2 = vmax.f32 %v2058_v40, 0.0  ;;  %v3205_v40 = vld [vmem:[%s7121_s6 + $0x70] sm:$0xff] }
 0x242   : > { %v6443_v13 = vpack.c.bf16 %v2577_v33, %v2575_v23  ;;  %v3204_v33 = vld [vmem:[%s7121_s6 + $0x68] sm:$0xff] }
 0x243   : > { %v5093_v37 = vpack.c.bf16 %v3204_v33, %v3203_v51 }
 0x244   : > { %5088 = vmatpush3.bf16.msra.mxu0 %v5085_v44  ;;  %v2064_v59 = vpop.f32.mrb[114].mxu1  ;;  %v3206_v44 = vld [vmem:[%s7121_s6 + $0x78] sm:$0xff] }
 0x245   : > { %5090 = vmatprep.subr.bf16.mxu0 %v5089_v50  ;;  %v2580_v23 = vmax.f32 %v2064_v59, 0.0  ;;  %v2066_v30 = vpop.f32.mrb[115].mxu1  ;;  %v5097_v49 = vpack.c.bf16 %v3206_v44, %v3205_v40 }
 0x246   : > { %v2581_v42 = vmax.f32 %v2066_v30, 0.0 }
 0x248   : > { %2879 = vmatmul.mubr.bf16.gmra.mrb[152].mxu1 %v6135_v22  ;;  %v2579_v22 = vmax.f32 %v2060_v4, 0.0  ;;  %5092 = vmatpush3.bf16.msra.mxu0 %v5089_v50  ;;  %v6470_v4 = vpop.f32.mrb[76].mxu0 }
 0x249   : > { %2886 = vmatprep.mubr.bf16.mxu1 %v6157_v34  ;;  %v6452_v34 = vpack.c.bf16 %v2580_v23, %v2578_v2  ;;  %5094 = vmatprep.subr.bf16.mxu0 %v5093_v37  ;;  %v6472_v9 = vpop.f32.mrb[77].mxu0 }
 0x24a   : > { %v6461_v47 = vpack.c.bf16 %v2581_v42, %v2579_v22 }
 0x24c   : > { %5096 = vmatpush3.bf16.msra.mxu0 %v5093_v37 }
 0x24d   : > { %5098 = vmatprep.subr.bf16.mxu0 %v5097_v49 }
 0x250   : > { %2887 = vmatmul.mubr.bf16.gmra.mrb[156].mxu1 %v6155_v14  ;;  %5100 = vmatpush3.bf16.msra.mxu0 %v5097_v49  ;;  %v6476_v14 = vpop.f32.mrb[78].mxu0 }
 0x251   : > { %2894 = vmatprep.mubr.bf16.mxu1 %v6177_v3  ;;  %v6478_v3 = vpop.f32.mrb[79].mxu0 }
 0x252   : > { %v6482_v50 = vpop.f32.mrb[80].mxu0 }
 0x253   : > { %v6484_v2 = vpop.f32.mrb[81].mxu0 }
 0x258   : > { %2895 = vmatmul.mubr.bf16.gmra.mrb[160].mxu1 %v6175_v39 }
 0x259   : > { %2902 = vmatprep.mubr.bf16.mxu1 %v6197_v20 }
 0x25e   : > { %v6488_v22 = vpop.f32.mrb[82].mxu0 }
 0x25f   : > { %v6490_v39 = vpop.f32.mrb[83].mxu0 }
 0x260   : > { %2903 = vmatmul.mubr.bf16.gmra.mrb[164].mxu1 %v6195_v58 }
 0x261   : > { %2910 = vmatprep.mubr.bf16.mxu1 %v6217_v35 }
 0x262   : > { %v6494_v20 = vpop.f32.mrb[84].mxu0 }
 0x263   : > { %v6496_v58 = vpop.f32.mrb[85].mxu0 }
 0x266   : > { %v6500_v35 = vpop.f32.mrb[86].mxu0 }
 0x268   : > { %2911 = vmatmul.mubr.bf16.gmra.mrb[168].mxu1 %v6215_v18  ;;  %v6502_v18 = vpop.f32.mrb[87].mxu0 }
 0x269   : > { %2918 = vmatprep.mubr.bf16.mxu1 %v6237_v63 }
 0x26a   : > { %v6506_v63 = vpop.f32.mrb[88].mxu0 }
 0x270   : > { %2919 = vmatmul.mubr.bf16.gmra.mrb[172].mxu1 %v6235_v45  ;;  %v6508_v45 = vpop.f32.mrb[89].mxu0 }
 0x271   : > { %2926 = vmatprep.mubr.bf16.mxu1 %v6257_v25  ;;  %v6512_v25 = vpop.f32.mrb[90].mxu0 }
 0x278   : > { %2927 = vmatmul.mubr.bf16.gmra.mrb[176].mxu1 %v6255_v11  ;;  %v6514_v11 = vpop.f32.mrb[91].mxu0 }
 0x279   : > { %2934 = vmatprep.mubr.bf16.mxu1 %v6277_v52  ;;  %v6518_v52 = vpop.f32.mrb[92].mxu0 }
 0x280   : > { %2935 = vmatmul.mubr.bf16.gmra.mrb[180].mxu1 %v6275_v26  ;;  %v6520_v26 = vpop.f32.mrb[93].mxu0 }
 0x281   : > { %2942 = vmatprep.mubr.bf16.mxu1 %v6297_v19  ;;  %v6524_v19 = vpop.f32.mrb[94].mxu0 }
 0x288   : > { %2943 = vmatmul.mubr.bf16.gmra.mrb[184].mxu1 %v6295_v54  ;;  %v6526_v54 = vpop.f32.mrb[95].mxu0 }
 0x289   : > { %2950 = vmatprep.mubr.bf16.mxu1 %v6317_v43  ;;  %v6530_v43 = vpop.f32.mrb[96].mxu0 }
 0x290   : > { %2951 = vmatmul.mubr.bf16.gmra.mrb[188].mxu1 %v6315_v0  ;;  %v6532_v0 = vpop.f32.mrb[97].mxu0 }
 0x291   : > { %2958 = vmatprep.mubr.bf16.mxu1 %v6337_v56  ;;  %v6536_v56 = vpop.f32.mrb[98].mxu0 }
 0x298   : > { %2959 = vmatmul.mubr.bf16.gmra.mrb[192].mxu1 %v6335_v10  ;;  %v6538_v10 = vpop.f32.mrb[99].mxu0 }
 0x299   : > { %2966 = vmatprep.mubr.bf16.mxu1 %v6353_v62  ;;  %v6542_v62 = vpop.f32.mrb[100].mxu0 }
 0x2a0   : > { %2967 = vmatmul.mubr.bf16.gmra.mrb[196].mxu1 %v6351_v21  ;;  %v6544_v21 = vpop.f32.mrb[101].mxu0 }
 0x2a1   : > { %2974 = vmatprep.mubr.bf16.mxu1 %v6363_v1  ;;  %v6548_v1 = vpop.f32.mrb[102].mxu0 }
 0x2a8   : > { %2975 = vmatmul.mubr.bf16.gmra.mrb[200].mxu1 %v6361_v16  ;;  %v6550_v16 = vpop.f32.mrb[103].mxu0 }
 0x2a9   : > { %2982 = vmatprep.mubr.bf16.mxu1 %v6367_v17  ;;  %v6554_v17 = vpop.f32.mrb[104].mxu0 }
 0x2b0   : > { %2983 = vmatmul.mubr.bf16.gmra.mrb[204].mxu1 %v6365_v55  ;;  %v6556_v55 = vpop.f32.mrb[105].mxu0 }
 0x2b1   : > { %2990 = vmatprep.mubr.bf16.mxu1 %v6371_v53  ;;  %v6560_v53 = vpop.f32.mrb[106].mxu0 }
 0x2b8   : > { %2991 = vmatmul.mubr.bf16.gmra.mrb[208].mxu1 %v6369_v48  ;;  %v6562_v48 = vpop.f32.mrb[107].mxu0 }
 0x2b9   : > { %2998 = vmatprep.mubr.bf16.mxu1 %v6377_v38  ;;  %v6567_v23 = vpop.f32.mrb[108].mxu0 }
 0x2ba   : > { %v6569_v42 = vpop.f32.mrb[109].mxu0 }
 0x2bb   : > { %v6577_v49 = vpop.f32.mrb[110].mxu0 }
 0x2c0   : > { %2999 = vmatmul.mubr.bf16.gmra.mrb[212].mxu1 %v6374_v24  ;;  %v7210_v24 = vld [vmem:[#allocation10_spill] sm:$0xff] }
 0x2c1   : > { %3006 = vmatprep.mubr.bf16.mxu1 %v6383_v32 }
 0x2c8   : > { %3007 = vmatmul.mubr.bf16.gmra.mrb[216].mxu1 %v6380_v5 }
 0x2c9   : > { %3014 = vmatprep.mubr.bf16.mxu1 %v6389_v27  ;;  %v7211_v27 = vld [vmem:[#allocation9_spill] sm:$0xff] }
 0x2d0   : > { %3015 = vmatmul.mubr.bf16.gmra.mrb[220].mxu1 %v6386_v60 }
 0x2d1   : > { %3022 = vmatprep.mubr.bf16.mxu1 %v6395_v46  ;;  %v7212_v46 = vld [vmem:[#allocation15_spill] sm:$0xff] }
 0x2d3   : > { %v2808_v38 = vpop.f32.mrb[116].mxu1 }
 0x2d4   : > { %v3063_v59 = vmul.f32 %v2808_v38, %v7210_v24  ;;  %v2810_v32 = vpop.f32.mrb[117].mxu1  ;;  %v6579_v24 = vpop.f32.mrb[111].mxu0 }
 0x2d5   : > { %v2811_v30 = vpop.f32.mrb[118].mxu1 }
 0x2d6   : > { %v3127_v5 = vmul.f32 %v3063_v59, %v6472_v9  ;;  %v3064_v51 = vmul.f32 %v7211_v27, %v2811_v30  ;;  %v2813_v33 = vpop.f32.mrb[119].mxu1  ;;  %v7213_v59 = vld [vmem:[#allocation14_spill] sm:$0xff]  ;;  %v7214_v30 = vld [vmem:[#allocation17_spill] sm:$0xff] }
 0x2d8   : > { %v3128_v37 = vmul.f32 %v6470_v4, %v3064_v51  ;;  %3023 = vmatmul.mubr.bf16.gmra.mrb[224].mxu1 %v6392_v29  ;;  %4949 = vmatprep.mubr.f32.mxu0 %v3127_v5  ;;  %v6587_v51 = vpop.f32.mrb[112].mxu0 }
 0x2d9   : > { %3030 = vmatprep.mubr.bf16.mxu1 %v6407_v31 }
 0x2da   : > { %4950 = vmatmul.mubr.f32.vlgmr.msra.gmra.mrb[140].mxu0 %v3128_v37  ;;  %v6589_v37 = vpop.f32.mrb[113].mxu0 }
 0x2db   : > { %v2816_v60 = vpop.f32.mrb[120].mxu1 }
 0x2dc   : > { %v3065_v40 = vmul.f32 %v2816_v60, %v7212_v46  ;;  %v2818_v44 = vpop.f32.mrb[121].mxu1  ;;  %v7215_v60 = vld [vmem:[#allocation16_spill] sm:$0xff] }
 0x2dd   : > { %v2819_v38 = vpop.f32.mrb[122].mxu1 }
 0x2de   : > { %v3129_v9 = vmul.f32 %v3065_v40, %v6478_v3  ;;  %v3066_v32 = vmul.f32 %v7213_v59, %v2819_v38  ;;  %v2821_v4 = vpop.f32.mrb[123].mxu1  ;;  %v7216_v40 = vld [vmem:[#allocation19_spill] sm:$0xff] }
 0x2df   : > { %v7217_v4 = vld [vmem:[#allocation18_spill] sm:$0xff] }
 0x2e0   : > { %v3130_v29 = vmul.f32 %v6476_v14, %v3066_v32  ;;  %3031 = vmatmul.mubr.bf16.gmra.mrb[228].mxu1 %v6398_v12  ;;  %4952 = vmatprep.mubr.f32.mxu0 %v3129_v9  ;;  %v6597_v9 = vpop.f32.mrb[114].mxu0 }
 0x2e1   : > { %3038 = vmatprep.mubr.bf16.mxu1 %v6425_v28  ;;  %v6599_v32 = vpop.f32.mrb[115].mxu0 }
 0x2e2   : > { %4953 = vmatmul.mubr.f32.gmra.mrb[142].mxu0 %v3130_v29 }
 0x2e3   : > { %v2824_v31 = vpop.f32.mrb[124].mxu1 }
 0x2e4   : > { %v3067_v5 = vmul.f32 %v2824_v31, %v7214_v30  ;;  %v2826_v27 = vpop.f32.mrb[125].mxu1  ;;  %v7218_v31 = vld [vmem:[#allocation21_spill] sm:$0xff] }
 0x2e5   : > { %v2827_v33 = vpop.f32.mrb[126].mxu1  ;;  %v6607_v27 = vpop.f32.mrb[116].mxu0 }
 0x2e6   : > { %v3131_v3 = vmul.f32 %v3067_v5, %v6484_v2  ;;  %v3068_v46 = vmul.f32 %v7215_v60, %v2827_v33  ;;  %v2829_v14 = vpop.f32.mrb[127].mxu1  ;;  %v7219_v60 = vld [vmem:[#allocation20_spill] sm:$0xff] }
 0x2e7   : > { %v7220_v14 = vld [vmem:[#allocation23_spill] sm:$0xff] }
 0x2e8   : > { %v3132_v12 = vmul.f32 %v6482_v50, %v3068_v46  ;;  %3039 = vmatmul.mubr.bf16.gmra.mrb[232].mxu1 %v6416_v41  ;;  %4955 = vmatprep.mubr.f32.mxu0 %v3131_v3  ;;  %v6609_v3 = vpop.f32.mrb[117].mxu0 }
 0x2e9   : > { %3046 = vmatprep.mubr.bf16.mxu1 %v6443_v13 }
 0x2ea   : > { %4956 = vmatmul.mubr.f32.gmra.mrb[144].mxu0 %v3132_v12 }
 0x2eb   : > { %v2832_v28 = vpop.f32.mrb[128].mxu1 }
 0x2ec   : > { %v3069_v44 = vmul.f32 %v2832_v28, %v7216_v40  ;;  %v2834_v38 = vpop.f32.mrb[129].mxu1  ;;  %v6616_v40 = vpop.f32.mrb[118].mxu0 }
 0x2ed   : > { %v2835_v59 = vpop.f32.mrb[130].mxu1  ;;  %v6618_v38 = vpop.f32.mrb[119].mxu0 }
 0x2ee   : > { %v3133_v2 = vmul.f32 %v3069_v44, %v6490_v39  ;;  %v3070_v29 = vmul.f32 %v7217_v4, %v2835_v59  ;;  %v2837_v50 = vpop.f32.mrb[131].mxu1  ;;  %v7221_v59 = vld [vmem:[#allocation22_spill] sm:$0xff] }
 0x2f0   : > { %v3134_v41 = vmul.f32 %v6488_v22, %v3070_v29  ;;  %3047 = vmatmul.mubr.bf16.gmra.mrb[236].mxu1 %v6434_v6  ;;  %4958 = vmatprep.mubr.f32.mxu0 %v3133_v2  ;;  %v7222_v29 = vld [vmem:[#allocation25_spill] sm:$0xff] }
 0x2f1   : > { %3054 = vmatprep.mubr.bf16.mxu1 %v6461_v47 }
 0x2f2   : > { %4959 = vmatmul.mubr.f32.gmra.mrb[146].mxu0 %v3134_v41 }
 0x2f3   : > { %v2840_v13 = vpop.f32.mrb[132].mxu1 }
 0x2f4   : > { %v3071_v30 = vmul.f32 %v2840_v13, %v7218_v31  ;;  %v2842_v5 = vpop.f32.mrb[133].mxu1  ;;  %v6624_v13 = vpop.f32.mrb[120].mxu0 }
 0x2f5   : > { %v2843_v33 = vpop.f32.mrb[134].mxu1 }
 0x2f6   : > { %v3135_v39 = vmul.f32 %v3071_v30, %v6496_v58  ;;  %v3072_v46 = vmul.f32 %v7219_v60, %v2843_v33  ;;  %v2845_v22 = vpop.f32.mrb[135].mxu1  ;;  %v6626_v30 = vpop.f32.mrb[121].mxu0  ;;  %v7223_v33 = vld [vmem:[#allocation24_spill] sm:$0xff] }
 0x2f8   : > { %v3136_v6 = vmul.f32 %v6494_v20, %v3072_v46  ;;  %3055 = vmatmul.mubr.bf16.gmra.mrb[240].mxu1 %v6452_v34  ;;  %4961 = vmatprep.mubr.f32.mxu0 %v3135_v39  ;;  %v7224_v46 = vld [vmem:[#allocation27_spill] sm:$0xff] }
 0x2fa   : > { %4962 = vmatmul.mubr.f32.gmra.mrb[148].mxu0 %v3136_v6 }
 0x2fb   : > { %v2848_v47 = vpop.f32.mrb[136].mxu1 }
 0x2fc   : > { %v3073_v12 = vmul.f32 %v2848_v47, %v7220_v14  ;;  %v2850_v28 = vpop.f32.mrb[137].mxu1  ;;  %v6632_v47 = vpop.f32.mrb[122].mxu0 }
 0x2fd   : > { %v2851_v44 = vpop.f32.mrb[138].mxu1 }
 0x2fe   : > { %v3137_v58 = vmul.f32 %v3073_v12, %v6502_v18  ;;  %v3074_v2 = vmul.f32 %v7221_v59, %v2851_v44  ;;  %v2853_v4 = vpop.f32.mrb[139].mxu1  ;;  %v6634_v12 = vpop.f32.mrb[123].mxu0  ;;  %v7225_v44 = vld [vmem:[#allocation26_spill] sm:$0xff] }
 0x300   : > { %v3138_v20 = vmul.f32 %v6500_v35, %v3074_v2  ;;  %4964 = vmatprep.mubr.f32.mxu0 %v3137_v58  ;;  %v7226_v2 = vld [vmem:[#allocation29_spill] sm:$0xff] }
 0x302   : > { %4965 = vmatmul.mubr.f32.gmra.mrb[150].mxu0 %v3138_v20 }
 0x303   : > { %v2856_v34 = vpop.f32.mrb[140].mxu1 }
 0x304   : > { %v3075_v50 = vmul.f32 %v2856_v34, %v7222_v29  ;;  %v2858_v41 = vpop.f32.mrb[141].mxu1  ;;  %v6640_v34 = vpop.f32.mrb[124].mxu0 }
 0x305   : > { %v2859_v31 = vpop.f32.mrb[142].mxu1 }
 0x306   : > { %v3139_v5 = vmul.f32 %v3075_v50, %v6508_v45  ;;  %v3076_v18 = vmul.f32 %v7223_v33, %v2859_v31  ;;  %v2861_v39 = vpop.f32.mrb[143].mxu1  ;;  %v6642_v50 = vpop.f32.mrb[125].mxu0  ;;  %v7227_v31 = vld [vmem:[#allocation28_spill] sm:$0xff] }
 0x308   : > { %v3140_v60 = vmul.f32 %v6506_v63, %v3076_v18  ;;  %4967 = vmatprep.mubr.f32.mxu0 %v3139_v5  ;;  %v7228_v18 = vld [vmem:[#allocation31_spill] sm:$0xff] }
 0x30a   : > { %4968 = vmatmul.mubr.f32.gmra.mrb[152].mxu0 %v3140_v60 }
 0x30b   : > { %v2864_v35 = vpop.f32.mrb[144].mxu1 }
 0x30c   : > { %v3077_v22 = vmul.f32 %v2864_v35, %v7224_v46  ;;  %v2866_v6 = vpop.f32.mrb[145].mxu1  ;;  %v6648_v35 = vpop.f32.mrb[126].mxu0 }
 0x30d   : > { %v2867_v14 = vpop.f32.mrb[146].mxu1 }
 0x30e   : > { %v3141_v28 = vmul.f32 %v3077_v22, %v6514_v11  ;;  %v3078_v45 = vmul.f32 %v7225_v44, %v2867_v14  ;;  %v2869_v58 = vpop.f32.mrb[147].mxu1  ;;  %v6650_v22 = vpop.f32.mrb[127].mxu0  ;;  %v7229_v14 = vld [vmem:[#allocation30_spill] sm:$0xff] }
 0x310   : > { %v3142_v59 = vmul.f32 %v6512_v25, %v3078_v45  ;;  %4970 = vmatprep.mubr.f32.mxu0 %v3141_v28 }
 0x312   : > { %4971 = vmatmul.mubr.f32.gmra.mrb[154].mxu0 %v3142_v59 }
 0x313   : > { %v2872_v63 = vpop.f32.mrb[148].mxu1 }
 0x314   : > { %v3079_v4 = vmul.f32 %v2872_v63, %v7226_v2  ;;  %v2874_v20 = vpop.f32.mrb[149].mxu1 }
 0x315   : > { %v2875_v29 = vpop.f32.mrb[150].mxu1 }
 0x316   : > { %v3143_v41 = vmul.f32 %v3079_v4, %v6520_v26  ;;  %v3080_v11 = vmul.f32 %v7227_v31, %v2875_v29  ;;  %v2877_v5 = vpop.f32.mrb[151].mxu1 }
 0x318   : > { %v3144_v33 = vmul.f32 %v6518_v52, %v3080_v11  ;;  %4973 = vmatprep.mubr.f32.mxu0 %v3143_v41  ;;  %v6655_v52 = vpop.f32.mrb[128].mxu0 }
 0x319   : > { %v6657_v45 = vpop.f32.mrb[129].mxu0 }
 0x31a   : > { %4974 = vmatmul.mubr.f32.gmra.mrb[156].mxu0 %v3144_v33  ;;  %v6659_v58 = vpop.f32.mrb[130].mxu0 }
 0x31b   : > { %v2880_v25 = vpop.f32.mrb[152].mxu1  ;;  %v6662_v4 = vpop.f32.mrb[131].mxu0 }
 0x31c   : > { %v3081_v39 = vmul.f32 %v2880_v25, %v7228_v18  ;;  %v2882_v60 = vpop.f32.mrb[153].mxu1  ;;  %v6664_v20 = vpop.f32.mrb[132].mxu0 }
 0x31d   : > { %v2883_v46 = vpop.f32.mrb[154].mxu1  ;;  %v6668_v11 = vpop.f32.mrb[133].mxu0 }
 0x31e   : > { %v3145_v6 = vmul.f32 %v3081_v39, %v6526_v54  ;;  %v3082_v26 = vmul.f32 %v7229_v14, %v2883_v46  ;;  %v2885_v28 = vpop.f32.mrb[155].mxu1  ;;  %v6670_v5 = vpop.f32.mrb[134].mxu0 }
 0x31f   : > { %v6673_v25 = vpop.f32.mrb[135].mxu0 }
 0x320   : > { %v3146_v44 = vmul.f32 %v6524_v19, %v3082_v26  ;;  %4976 = vmatprep.mubr.f32.mxu0 %v3145_v6  ;;  %v7230_v19 = vld [vmem:[#allocation32_spill] sm:$0xff] }
 0x322   : > { %4977 = vmatmul.mubr.f32.gmra.mrb[158].mxu0 %v3146_v44 }
 0x323   : > { %v2888_v59 = vpop.f32.mrb[156].mxu1 }
 0x324   : > { %v3083_v63 = vmul.f32 %v2888_v59, %v6131_v7  ;;  %v2890_v2 = vpop.f32.mrb[157].mxu1  ;;  %v6675_v7 = vpop.f32.mrb[136].mxu0 }
 0x325   : > { %v2891_v54 = vpop.f32.mrb[158].mxu1  ;;  %v6677_v18 = vpop.f32.mrb[137].mxu0 }
 0x326   : > { %v3147_v29 = vmul.f32 %v3083_v63, %v6532_v0  ;;  %v3084_v41 = vmul.f32 %v7230_v19, %v2891_v54  ;;  %v2893_v31 = vpop.f32.mrb[159].mxu1  ;;  %v6679_v60 = vpop.f32.mrb[138].mxu0  ;;  %v7232_v19 = vld [vmem:[#allocation34_spill] sm:$0xff] }
 0x327   : > { %v6682_v6 = vpop.f32.mrb[139].mxu0 }
 0x328   : > { %v3148_v33 = vmul.f32 %v6530_v43, %v3084_v41  ;;  %4979 = vmatprep.mubr.f32.mxu0 %v3147_v29  ;;  %v7231_v43 = vld [vmem:[#allocation33_spill] sm:$0xff] }
 0x32a   : > { %4980 = vmatmul.mubr.f32.gmra.mrb[160].mxu0 %v3148_v33 }
 0x32b   : > { %v2896_v39 = vpop.f32.mrb[160].mxu1 }
 0x32c   : > { %v3085_v0 = vmul.f32 %v2896_v39, %v6143_v36  ;;  %v2898_v46 = vpop.f32.mrb[161].mxu1 }
 0x32d   : > { %v2899_v14 = vpop.f32.mrb[162].mxu1 }
 0x32e   : > { %v3149_v26 = vmul.f32 %v3085_v0, %v6538_v10  ;;  %v3086_v28 = vmul.f32 %v7231_v43, %v2899_v14  ;;  %v2901_v44 = vpop.f32.mrb[163].mxu1  ;;  %v7233_v14 = vld [vmem:[#allocation35_spill] sm:$0xff] }
 0x330   : > { %v3150_v59 = vmul.f32 %v6536_v56, %v3086_v28  ;;  %4982 = vmatprep.mubr.f32.mxu0 %v3149_v26 }
 0x332   : > { %4983 = vmatmul.mubr.f32.gmra.mrb[162].mxu0 %v3150_v59 }
 0x333   : > { %v2904_v63 = vpop.f32.mrb[164].mxu1 }
 0x334   : > { %v3087_v2 = vmul.f32 %v2904_v63, %v6151_v15  ;;  %v2906_v54 = vpop.f32.mrb[165].mxu1  ;;  %v7234_v63 = vld [vmem:[#allocation36_spill] sm:$0xff] }
 0x335   : > { %v2907_v29 = vpop.f32.mrb[166].mxu1 }
 0x336   : > { %v3151_v36 = vmul.f32 %v3087_v2, %v6544_v21  ;;  %v3088_v41 = vmul.f32 %v7232_v19, %v2907_v29  ;;  %v2909_v31 = vpop.f32.mrb[167].mxu1 }
 0x338   : > { %v3152_v33 = vmul.f32 %v6542_v62, %v3088_v41  ;;  %4985 = vmatprep.mubr.f32.mxu0 %v3151_v36  ;;  %v7235_v41 = vld [vmem:[#allocation37_spill] sm:$0xff] }
 0x33a   : > { %4986 = vmatmul.mubr.f32.gmra.mrb[164].mxu0 %v3152_v33 }
 0x33b   : > { %v2912_v10 = vpop.f32.mrb[168].mxu1 }
 0x33c   : > { %v3089_v39 = vmul.f32 %v2912_v10, %v6163_v61  ;;  %v2914_v56 = vpop.f32.mrb[169].mxu1  ;;  %v7236_v10 = vld [vmem:[#allocation39_spill] sm:$0xff] }
 0x33d   : > { %v2915_v0 = vpop.f32.mrb[170].mxu1 }
 0x33e   : > { %v3153_v46 = vmul.f32 %v3089_v39, %v6550_v16  ;;  %v3090_v15 = vmul.f32 %v7233_v14, %v2915_v0  ;;  %v2917_v26 = vpop.f32.mrb[171].mxu1 }
 0x33f   : > { %v7238_v26 = vld [vmem:[#allocation41_spill] sm:$0xff] }
 0x340   : > { %v3154_v43 = vmul.f32 %v6548_v1, %v3090_v15  ;;  %4988 = vmatprep.mubr.f32.mxu0 %v3153_v46  ;;  %v7237_v46 = vld [vmem:[#allocation38_spill] sm:$0xff] }
 0x342   : > { %4989 = vmatmul.mubr.f32.gmra.mrb[166].mxu0 %v3154_v43 }
 0x343   : > { %v2920_v21 = vpop.f32.mrb[172].mxu1 }
 0x344   : > { %v3091_v28 = vmul.f32 %v2920_v21, %v6171_v57  ;;  %v2922_v62 = vpop.f32.mrb[173].mxu1 }
 0x345   : > { %v2923_v44 = vpop.f32.mrb[174].mxu1  ;;  %v7239_v62 = vld [vmem:[#allocation40_spill] sm:$0xff] }
 0x346   : > { %v3155_v59 = vmul.f32 %v3091_v28, %v6556_v55  ;;  %v3092_v61 = vmul.f32 %v7234_v63, %v2923_v44  ;;  %v2925_v2 = vpop.f32.mrb[175].mxu1 }
 0x348   : > { %v3156_v54 = vmul.f32 %v6554_v17, %v3092_v61  ;;  %4991 = vmatprep.mubr.f32.mxu0 %v3155_v59  ;;  %v7240_v61 = vld [vmem:[#allocation43_spill] sm:$0xff] }
 0x34a   : > { %4992 = vmatmul.mubr.f32.gmra.mrb[168].mxu0 %v3156_v54 }
 0x34b   : > { %v2928_v16 = vpop.f32.mrb[176].mxu1 }
 0x34c   : > { %v3093_v29 = vmul.f32 %v2928_v16, %v6183_v8  ;;  %v2930_v1 = vpop.f32.mrb[177].mxu1 }
 0x34d   : > { %v2931_v36 = vpop.f32.mrb[178].mxu1 }
 0x34e   : > { %v3157_v19 = vmul.f32 %v3093_v29, %v6562_v48  ;;  %v3094_v57 = vmul.f32 %v7235_v41, %v2931_v36  ;;  %v2933_v31 = vpop.f32.mrb[179].mxu1  ;;  %v7241_v29 = vld [vmem:[#allocation42_spill] sm:$0xff]  ;;  %v7242_v41 = vld [vmem:[#allocation45_spill] sm:$0xff] }
 0x350   : > { %v3158_v33 = vmul.f32 %v6560_v53, %v3094_v57  ;;  %4994 = vmatprep.mubr.f32.mxu0 %v3157_v19 }
 0x352   : > { %4995 = vmatmul.mubr.f32.gmra.mrb[170].mxu0 %v3158_v33 }
 0x353   : > { %v2936_v55 = vpop.f32.mrb[180].mxu1 }
 0x354   : > { %v3095_v39 = vmul.f32 %v2936_v55, %v7236_v10  ;;  %v2938_v17 = vpop.f32.mrb[181].mxu1  ;;  %v7243_v55 = vld [vmem:[#allocation44_spill] sm:$0xff] }
 0x355   : > { %v2939_v56 = vpop.f32.mrb[182].mxu1 }
 0x356   : > { %v3159_v0 = vmul.f32 %v3095_v39, %v6569_v42  ;;  %v3096_v8 = vmul.f32 %v7237_v46, %v2939_v56  ;;  %v2941_v14 = vpop.f32.mrb[183].mxu1  ;;  %v7244_v56 = vld [vmem:[#allocation47_spill] sm:$0xff] }
 0x357   : > { %v7245_v14 = vld [vmem:[#allocation46_spill] sm:$0xff] }
 0x358   : > { %v3160_v15 = vmul.f32 %v6567_v23, %v3096_v8  ;;  %4997 = vmatprep.mubr.f32.mxu0 %v3159_v0 }
 0x35a   : > { %4998 = vmatmul.mubr.f32.gmra.mrb[172].mxu0 %v3160_v15 }
 0x35b   : > { %v2944_v48 = vpop.f32.mrb[184].mxu1 }
 0x35c   : > { %v3097_v43 = vmul.f32 %v2944_v48, %v7238_v26  ;;  %v2946_v53 = vpop.f32.mrb[185].mxu1 }
 0x35d   : > { %v2947_v21 = vpop.f32.mrb[186].mxu1 }
 0x35e   : > { %v3161_v28 = vmul.f32 %v3097_v43, %v6579_v24  ;;  %v3098_v44 = vmul.f32 %v7239_v62, %v2947_v21  ;;  %v2949_v59 = vpop.f32.mrb[187].mxu1  ;;  %v7246_v43 = vld [vmem:[#allocation49_spill] sm:$0xff]  ;;  %v7247_v62 = vld [vmem:[#allocation48_spill] sm:$0xff] }
 0x360   : > { %v3162_v63 = vmul.f32 %v6577_v49, %v3098_v44  ;;  %5000 = vmatprep.mubr.f32.mxu0 %v3161_v28 }
 0x362   : > { %5001 = vmatmul.mubr.f32.gmra.mrb[174].mxu0 %v3162_v63 }
 0x363   : > { %v2952_v42 = vpop.f32.mrb[188].mxu1 }
 0x364   : > { %v3099_v2 = vmul.f32 %v2952_v42, %v7240_v61  ;;  %v2954_v23 = vpop.f32.mrb[189].mxu1  ;;  %v7248_v42 = vld [vmem:[#allocation51_spill] sm:$0xff] }
 0x365   : > { %v2955_v54 = vpop.f32.mrb[190].mxu1 }
 0x366   : > { %v3163_v16 = vmul.f32 %v3099_v2, %v6589_v37  ;;  %v3100_v1 = vmul.f32 %v7241_v29, %v2955_v54  ;;  %v2957_v36 = vpop.f32.mrb[191].mxu1  ;;  %v7249_v54 = vld [vmem:[#allocation50_spill] sm:$0xff] }
 0x367   : > { %v7250_v36 = vld [vmem:[#allocation53_spill] sm:$0xff] }
 0x368   : > { %v3164_v19 = vmul.f32 %v6587_v51, %v3100_v1  ;;  %5003 = vmatprep.mubr.f32.mxu0 %v3163_v16 }
 0x36a   : > { %5004 = vmatmul.mubr.f32.gmra.mrb[176].mxu0 %v3164_v19 }
 0x36b   : > { %v2960_v24 = vpop.f32.mrb[192].mxu1 }
 0x36c   : > { %v3101_v57 = vmul.f32 %v2960_v24, %v7242_v41  ;;  %v2962_v49 = vpop.f32.mrb[193].mxu1 }
 0x36d   : > { %v2963_v31 = vpop.f32.mrb[194].mxu1 }
 0x36e   : > { %v3165_v33 = vmul.f32 %v3101_v57, %v6599_v32  ;;  %v3102_v10 = vmul.f32 %v7243_v55, %v2963_v31  ;;  %v2965_v39 = vpop.f32.mrb[195].mxu1  ;;  %v7251_v57 = vld [vmem:[#allocation52_spill] sm:$0xff]  ;;  %v7252_v55 = vld [vmem:[#allocation55_spill] sm:$0xff] }
 0x370   : > { %v3166_v17 = vmul.f32 %v6597_v9, %v3102_v10  ;;  %5006 = vmatprep.mubr.f32.mxu0 %v3165_v33 }
 0x372   : > { %5007 = vmatmul.mubr.f32.gmra.mrb[178].mxu0 %v3166_v17 }
 0x373   : > { %v2968_v37 = vpop.f32.mrb[196].mxu1 }
 0x374   : > { %v3103_v0 = vmul.f32 %v2968_v37, %v7244_v56  ;;  %v2970_v51 = vpop.f32.mrb[197].mxu1  ;;  %v7253_v37 = vld [vmem:[#allocation54_spill] sm:$0xff] }
 0x375   : > { %v2971_v46 = vpop.f32.mrb[198].mxu1 }
 0x376   : > { %v3167_v8 = vmul.f32 %v3103_v0, %v6609_v3  ;;  %v3104_v15 = vmul.f32 %v7245_v14, %v2971_v46  ;;  %v2973_v48 = vpop.f32.mrb[199].mxu1  ;;  %v7254_v46 = vld [vmem:[#allocation57_spill] sm:$0xff] }
 0x377   : > { %v7255_v48 = vld [vmem:[#allocation56_spill] sm:$0xff] }
 0x378   : > { %v3168_v26 = vmul.f32 %v6607_v27, %v3104_v15  ;;  %5009 = vmatprep.mubr.f32.mxu0 %v3167_v8 }
 0x37a   : > { %5010 = vmatmul.mubr.f32.gmra.mrb[180].mxu0 %v3168_v26 }
 0x37b   : > { %v2976_v32 = vpop.f32.mrb[200].mxu1 }
 0x37c   : > { %v3105_v53 = vmul.f32 %v2976_v32, %v7246_v43  ;;  %v2978_v9 = vpop.f32.mrb[201].mxu1 }
 0x37d   : > { %v2979_v21 = vpop.f32.mrb[202].mxu1 }
 0x37e   : > { %v3169_v28 = vmul.f32 %v3105_v53, %v6618_v38  ;;  %v3106_v44 = vmul.f32 %v7247_v62, %v2979_v21  ;;  %v2981_v59 = vpop.f32.mrb[203].mxu1  ;;  %v7256_v53 = vld [vmem:[#allocation59_spill] sm:$0xff]  ;;  %v7257_v62 = vld [vmem:[#allocation58_spill] sm:$0xff] }
 0x380   : > { %v3170_v63 = vmul.f32 %v6616_v40, %v3106_v44  ;;  %5012 = vmatprep.mubr.f32.mxu0 %v3169_v28 }
 0x382   : > { %5013 = vmatmul.mubr.f32.gmra.mrb[182].mxu0 %v3170_v63 }
 0x383   : > { %v2984_v3 = vpop.f32.mrb[204].mxu1 }
 0x384   : > { %v3107_v61 = vmul.f32 %v2984_v3, %v7248_v42  ;;  %v2986_v27 = vpop.f32.mrb[205].mxu1  ;;  %v7258_v3 = vld [vmem:[#allocation61_spill] sm:$0xff] }
 0x385   : > { %v2987_v2 = vpop.f32.mrb[206].mxu1 }
 0x386   : > { %v3171_v23 = vmul.f32 %v3107_v61, %v6626_v30  ;;  %v3108_v16 = vmul.f32 %v7249_v54, %v2987_v2  ;;  %v2989_v29 = vpop.f32.mrb[207].mxu1 }
 0x388   : > { %v3172_v1 = vmul.f32 %v6624_v13, %v3108_v16  ;;  %5015 = vmatprep.mubr.f32.mxu0 %v3171_v23  ;;  %v7259_v23 = vld [vmem:[#allocation60_spill] sm:$0xff] }
 0x38a   : > { %5016 = vmatmul.mubr.f32.gmra.mrb[184].mxu0 %v3172_v1 }
 0x38b   : > { %v2992_v38 = vpop.f32.mrb[208].mxu1 }
 0x38c   : > { %v3109_v19 = vmul.f32 %v2992_v38, %v7250_v36  ;;  %v2994_v40 = vpop.f32.mrb[209].mxu1  ;;  %v7260_v38 = vld [vmem:[#allocation63_spill] sm:$0xff] }
 0x38d   : > { %v2995_v24 = vpop.f32.mrb[210].mxu1 }
 0x38e   : > { %v3173_v41 = vmul.f32 %v3109_v19, %v6634_v12  ;;  %v3110_v49 = vmul.f32 %v7251_v57, %v2995_v24  ;;  %v2997_v31 = vpop.f32.mrb[211].mxu1 }
 0x390   : > { %v3174_v33 = vmul.f32 %v6632_v47, %v3110_v49  ;;  %5018 = vmatprep.mubr.f32.mxu0 %v3173_v41  ;;  %v7261_v41 = vld [vmem:[#allocation62_spill] sm:$0xff] }
 0x392   : > { %5019 = vmatmul.mubr.f32.gmra.mrb[186].mxu0 %v3174_v33 }
 0x393   : > { %v3000_v30 = vpop.f32.mrb[212].mxu1 }
 0x394   : > { %v3111_v10 = vmul.f32 %v3000_v30, %v7252_v55  ;;  %v3002_v13 = vpop.f32.mrb[213].mxu1  ;;  %v7262_v55 = vld [vmem:[#allocation65_spill] sm:$0xff] }
 0x395   : > { %v3003_v39 = vpop.f32.mrb[214].mxu1 }
 0x396   : > { %v3175_v17 = vmul.f32 %v3111_v10, %v6642_v50  ;;  %v3112_v56 = vmul.f32 %v7253_v37, %v3003_v39  ;;  %v3005_v0 = vpop.f32.mrb[215].mxu1  ;;  %v7263_v37 = vld [vmem:[#allocation64_spill] sm:$0xff] }
 0x398   : > { %v3176_v51 = vmul.f32 %v6640_v34, %v3112_v56  ;;  %5021 = vmatprep.mubr.f32.mxu0 %v3175_v17 }
 0x39a   : > { %5022 = vmatmul.mubr.f32.gmra.mrb[188].mxu0 %v3176_v51 }
 0x39b   : > { %v3008_v12 = vpop.f32.mrb[216].mxu1 }
 0x39c   : > { %v3113_v8 = vmul.f32 %v3008_v12, %v7254_v46  ;;  %v3010_v47 = vpop.f32.mrb[217].mxu1 }
 0x39d   : > { %v3011_v14 = vpop.f32.mrb[218].mxu1 }
 0x39e   : > { %v3177_v15 = vmul.f32 %v3113_v8, %v6650_v22  ;;  %v3114_v26 = vmul.f32 %v7255_v48, %v3011_v14  ;;  %v3013_v32 = vpop.f32.mrb[219].mxu1  ;;  %v7264_v8 = vld [vmem:[#allocation67_spill] sm:$0xff] }
 0x39f   : > { %v7265_v32 = vld [vmem:[#allocation66_spill] sm:$0xff] }
 0x3a0   : > { %v3178_v43 = vmul.f32 %v6648_v35, %v3114_v26  ;;  %5024 = vmatprep.mubr.f32.mxu0 %v3177_v15 }
 0x3a2   : > { %5025 = vmatmul.mubr.f32.gmra.mrb[190].mxu0 %v3178_v43 }
 0x3a3   : > { %v3016_v50 = vpop.f32.mrb[220].mxu1 }
 0x3a4   : > { %v3115_v9 = vmul.f32 %v3016_v50, %v7256_v53  ;;  %v3018_v34 = vpop.f32.mrb[221].mxu1 }
 0x3a5   : > { %v3019_v21 = vpop.f32.mrb[222].mxu1  ;;  %v7266_v34 = vld [vmem:[#allocation69_spill] sm:$0xff] }
 0x3a6   : > { %v3179_v28 = vmul.f32 %v3115_v9, %v6657_v45  ;;  %v3116_v44 = vmul.f32 %v7257_v62, %v3019_v21  ;;  %v3021_v59 = vpop.f32.mrb[223].mxu1 }
 0x3a8   : > { %v3180_v63 = vmul.f32 %v6655_v52, %v3116_v44  ;;  %5027 = vmatprep.mubr.f32.mxu0 %v3179_v28 }
 0x3aa   : > { %5028 = vmatmul.mubr.f32.gmra.mrb[192].mxu0 %v3180_v63  ;;  %v7267_v63 = vld [vmem:[#allocation68_spill] sm:$0xff] }
 0x3ab   : > { %v3024_v22 = vpop.f32.mrb[224].mxu1 }
 0x3ac   : > { %v3117_v42 = vmul.f32 %v3024_v22, %v7258_v3  ;;  %v3026_v35 = vpop.f32.mrb[225].mxu1 }
 0x3ad   : > { %v3027_v61 = vpop.f32.mrb[226].mxu1  ;;  %v6748_v27 = vpop.f32.mrb[140].mxu0 }
 0x3ae   : > { %v3181_v2 = vmul.f32 %v3117_v42, %v6662_v4  ;;  %v3118_v54 = vmul.f32 %v7259_v23, %v3027_v61  ;;  %v3029_v16 = vpop.f32.mrb[227].mxu1  ;;  %v6752_v45 = vpop.f32.mrb[141].mxu0 }
 0x3af   : > { %v5103_v29 = vpack.c.bf16 %v6748_v27, %v6752_v45 }
 0x3b0   : > { %v3182_v52 = vmul.f32 %v6659_v58, %v3118_v54  ;;  %5030 = vmatprep.mubr.f32.mxu0 %v3181_v2 }
 0x3b2   : > { %5031 = vmatmul.mubr.f32.gmra.mrb[194].mxu0 %v3182_v52 }
 0x3b3   : > { %v3032_v1 = vpop.f32.mrb[228].mxu1 }
 0x3b4   : > { %v3119_v36 = vmul.f32 %v3032_v1, %v7260_v38  ;;  %v3034_v19 = vpop.f32.mrb[229].mxu1  ;;  %v7268_v38 = vlaneseq }
 0x3b5   : > { %v3035_v40 = vpop.f32.mrb[230].mxu1  ;;  %v6758_v24 = vpop.f32.mrb[142].mxu0 }
 0x3b6   : > { %v3183_v4 = vmul.f32 %v3119_v36, %v6668_v11  ;;  %v3120_v57 = vmul.f32 %v7261_v41, %v3035_v40  ;;  %v3037_v49 = vpop.f32.mrb[231].mxu1  ;;  %v6762_v31 = vpop.f32.mrb[143].mxu0  ;;  %v6789_v36 = vshrl.u32 %v7268_v38, 7  ;;  %v6797_v40 = vld [vmem:[%s299_s11] sm:$0xf] }
 0x3b7   : > { %v5107_v33 = vpack.c.bf16 %v6758_v24, %v6762_v31  ;;  %v5218_v49 = vmov 1.0  }
 0x3b8   : > { %v3184_v58 = vmul.f32 %v6664_v20, %v3120_v57  ;;  %5033 = vmatprep.mubr.f32.mxu0 %v3183_v4  ;;  %v6817_v24 = vadd.s32 24, %v6789_v36 }
 0x3ba   : > { %5034 = vmatmul.mubr.f32.gmra.mrb[196].mxu0 %v3184_v58 }
 0x3bb   : > { %v3040_v30 = vpop.f32.mrb[232].mxu1 }
 0x3bc   : > { %v3121_v10 = vmul.f32 %v3040_v30, %v7262_v55  ;;  %v3042_v13 = vpop.f32.mrb[233].mxu1 }
 0x3bd   : > { %v3043_v39 = vpop.f32.mrb[234].mxu1  ;;  %v6768_v17 = vpop.f32.mrb[144].mxu0 }
 0x3be   : > { %v3185_v11 = vmul.f32 %v3121_v10, %v6673_v25  ;;  %v3122_v56 = vmul.f32 %v7263_v37, %v3043_v39  ;;  %v3045_v0 = vpop.f32.mrb[235].mxu1  ;;  %v3293_v51 = vpop.f32.mrb[145].mxu0 }
 0x3bf   : > { %v5111_v12 = vpack.c.bf16 %v6768_v17, %v3293_v51  ;;  %v6822_v51 = vadd.s32 32, %v6789_v36 }
 0x3c0   : > { %v3186_v46 = vmul.f32 %v6670_v5, %v3122_v56  ;;  %5036 = vmatprep.mubr.f32.mxu0 %v3185_v11  ;;  %v6812_v56 = vadd.s32 16, %v6789_v36 }
 0x3c2   : > { %5037 = vmatmul.mubr.f32.gmra.mrb[198].mxu0 %v3186_v46 }
 0x3c3   : > { %v3048_v20 = vpop.f32.mrb[236].mxu1 }
 0x3c4   : > { %v3123_v47 = vmul.f32 %v3048_v20, %v7264_v8  ;;  %v3050_v14 = vpop.f32.mrb[237].mxu1 }
 0x3c5   : > { %v3051_v15 = vpop.f32.mrb[238].mxu1  ;;  %v4960_v48 = vpop.f32.mrb[146].mxu0  ;;  %v3604_v14 = vsub.s32 0, %v6789_v36 }
 0x3c6   : > { %v3187_v26 = vmul.f32 %v3123_v47, %v6677_v18  ;;  %v3124_v25 = vmul.f32 %v7265_v32, %v3051_v15  ;;  %v3053_v43 = vpop.f32.mrb[239].mxu1  ;;  %v3303_v50 = vpop.f32.mrb[147].mxu0  ;;  %v6832_v47 = vadd.s32 48, %v6789_v36  ;;  %v6838_v15 = vadd.s32 56, %v6789_v36 }
 0x3c7   : > { %v5115_v53 = vpack.c.bf16 %v4960_v48, %v3303_v50  ;;  %v3605_v32 = vrot.slane %v6797_v40, %v3604_v14  ;;  %v6844_v43 = vadd.s32 8, %v6789_v36  ;;  %v3616_v50 = vsub.s32 3, %v6789_v36 }
 0x3c8   : > { %v3188_v9 = vmul.f32 %v6675_v7, %v3124_v25  ;;  %5039 = vmatprep.mubr.f32.mxu0 %v3187_v26 }
 0x3c9   : > { %vm3618_vm0 = vcmp.eq.s32.totalorder %v6789_v36, %v3605_v32  ;;  %vm3622_vm7 = vcmp.eq.s32.totalorder %v6844_v43, %v3605_v32  ;;  %vm3626_vm10 = vcmp.eq.s32.totalorder %v6812_v56, %v3605_v32 }
 0x3ca   : > { %5040 = vmatmul.mubr.f32.gmra.mrb[200].mxu0 %v3188_v9  ;;  %v6849_v9 = vrot.slane %v6797_v40, %v3616_v50 }
 0x3cb   : > { %v3056_v5 = vpop.f32.mrb[240].mxu1 }
 0x3cc   : > { %v3125_v21 = vmul.f32 %v3056_v5, %v7266_v34  ;;  %v3058_v28 = vpop.f32.mrb[241].mxu1  ;;  %vm3621_vm4 = vcmp.eq.s32.totalorder %v6789_v36, %v6849_v9  ;;  %vm3625_vm6 = vcmp.eq.s32.totalorder %v6844_v43, %v6849_v9  ;;  %vm3629_vm9 = vcmp.eq.s32.totalorder %v6812_v56, %v6849_v9 }
 0x3cd   : > { %v3059_v62 = vpop.f32.mrb[242].mxu1  ;;  %v4963_v44 = vpop.f32.mrb[148].mxu0 }
 0x3ce   : > { %v3189_v59 = vmul.f32 %v3125_v21, %v6682_v6  ;;  %v3126_v22 = vmul.f32 %v7267_v63, %v3059_v62  ;;  %v3061_v18 = vpop.f32.mrb[243].mxu1  ;;  %v3313_v3 = vpop.f32.mrb[149].mxu0 }
 0x3cf   : > { %v5119_v42 = vpack.c.bf16 %v4963_v44, %v3313_v3 }
 0x3d0   : > { %v3190_v35 = vmul.f32 %v6679_v60, %v3126_v22  ;;  %5042 = vmatprep.mubr.f32.mxu0 %v3189_v59  ;;  %v3608_v60 = vsub.s32 1, %v6789_v36 }
 0x3d2   : > { %5043 = vmatmul.mubr.f32.gmra.mrb[202].mxu0 %v3190_v35  ;;  %v6800_v41 = vrot.slane %v6797_v40, %v3608_v60 }
 0x3d4   : > { %vm3619_vm1 = vcmp.eq.s32.totalorder %v6789_v36, %v6800_v41  ;;  %vm3627_vm2 = vcmp.eq.s32.totalorder %v6812_v56, %v6800_v41  ;;  %vm3631_vm11 = vcmp.eq.s32.totalorder %v6817_v24, %v6800_v41  ;;  %vm3635_vm12 = vcmp.eq.s32.totalorder %v6822_v51, %v6800_v41 }
 0x3d5   : > { %v4966_v7 = vpop.f32.mrb[150].mxu0  ;;  %4340 = vmatprep.mubr.msk.f32.mxu0 %vm3619_vm1, %v5218_v49  ;;  %vm3643_vm14 = vcmp.eq.s32.totalorder %v6832_v47, %v6800_v41  ;;  %vm3647_vm15 = vcmp.eq.s32.totalorder %v6838_v15, %v6800_v41  ;;  %vm3623_vm3 = vcmp.eq.s32.totalorder %v6844_v43, %v6800_v41 }
 0x3d6   : > { %v3323_v61 = vpop.f32.mrb[151].mxu0 }
 0x3d7   : > { %v5123_v2 = vpack.c.bf16 %v4966_v7, %v3323_v61 }
 0x3dd   : > { %v4969_v23 = vpop.f32.mrb[152].mxu0 }
 0x3de   : > { %v3333_v54 = vpop.f32.mrb[153].mxu0 }
 0x3df   : > { %v5127_v16 = vpack.c.bf16 %v4969_v23, %v3333_v54 }
 0x3e5   : > { %v6782_v52 = vpop.f32.mrb[154].mxu0 }
 0x3e6   : > { %v6784_v1 = vpop.f32.mrb[155].mxu0 }
 0x3e7   : > { %v5131_v6 = vpack.c.bf16 %v6782_v52, %v6784_v1 }
 0x3ed   : > { %v4975_v19 = vpop.f32.mrb[156].mxu0 }
 0x3ee   : > { %v3353_v4 = vpop.f32.mrb[157].mxu0 }
 0x3ef   : > { %v5101_v57 = vpack.c.bf16 %v4975_v19, %v3353_v4 }
 0x3f1   : > { %5102 = vmatprep.subr.bf16.mxu0 %v5101_v57 }
 0x3f2   : > { %5104 = vmatpush3.bf16.msra.mxu0 %v5103_v29 }
 0x3f5   : > { %v4978_v58 = vpop.f32.mrb[158].mxu0 }
 0x3f6   : > { %v3363_v30 = vpop.f32.mrb[159].mxu0 }
 0x3f7   : > { %v5105_v55 = vpack.c.bf16 %v4978_v58, %v3363_v30 }
 0x3f9   : > { %5106 = vmatprep.subr.bf16.mxu0 %v5105_v55 }
 0x3fa   : > { %5108 = vmatpush3.bf16.msra.mxu0 %v5107_v33 }
 0x3fd   : > { %v4981_v10 = vpop.f32.mrb[160].mxu0 }
 0x3fe   : > { %v3373_v13 = vpop.f32.mrb[161].mxu0 }
 0x3ff   : > { %v5109_v39 = vpack.c.bf16 %v4981_v10, %v3373_v13 }
 0x401   : > { %5110 = vmatprep.subr.bf16.mxu0 %v5109_v39 }
 0x402   : > { %5112 = vmatpush3.bf16.msra.mxu0 %v5111_v12  ;;  %v6827_v12 = vadd.s32 40, %v6789_v36 }
 0x404   : > { %vm3639_vm13 = vcmp.eq.s32.totalorder %v6827_v12, %v6800_v41 }
 0x405   : > { %v4984_v17 = vpop.f32.mrb[162].mxu0 }
 0x406   : > { %v3383_v11 = vpop.f32.mrb[163].mxu0 }
 0x407   : > { %v5113_v37 = vpack.c.bf16 %v4984_v17, %v3383_v11 }
 0x409   : > { %5114 = vmatprep.subr.bf16.mxu0 %v5113_v37 }
 0x40a   : > { %5116 = vmatpush3.bf16.msra.mxu0 %v5115_v53  ;;  %v3612_v53 = vsub.s32 2, %v6789_v36 }
 0x40c   : > { %v6856_v5 = vrot.slane %v6797_v40, %v3612_v53 }
 0x40d   : > { %v4987_v27 = vpop.f32.mrb[164].mxu0 }
 0x40e   : > { %v3393_v45 = vpop.f32.mrb[165].mxu0  ;;  %vm3620_vm5 = vcmp.eq.s32.totalorder %v6789_v36, %v6856_v5  ;;  %vm3624_vm8 = vcmp.eq.s32.totalorder %v6844_v43, %v6856_v5  ;;  %vm3628_vm1 = vcmp.eq.s32.totalorder %v6812_v56, %v6856_v5 }
 0x40f   : > { %v5117_v29 = vpack.c.bf16 %v4987_v27, %v3393_v45 }
 0x411   : > { %5118 = vmatprep.subr.bf16.mxu0 %v5117_v29 }
 0x412   : > { %5120 = vmatpush3.bf16.msra.mxu0 %v5119_v42 }
 0x415   : > { %v4990_v31 = vpop.f32.mrb[166].mxu0 }
 0x416   : > { %v3403_v33 = vpop.f32.mrb[167].mxu0 }
 0x417   : > { %v5121_v0 = vpack.c.bf16 %v4990_v31, %v3403_v33 }
 0x419   : > { %5122 = vmatprep.subr.bf16.mxu0 %v5121_v0 }
 0x41a   : > { %5124 = vmatpush3.bf16.msra.mxu0 %v5123_v2 }
 0x41d   : > { %v4993_v46 = vpop.f32.mrb[168].mxu0 }
 0x41e   : > { %v3413_v20 = vpop.f32.mrb[169].mxu0 }
 0x41f   : > { %v5125_v8 = vpack.c.bf16 %v4993_v46, %v3413_v20 }
 0x421   : > { %5126 = vmatprep.subr.bf16.mxu0 %v5125_v8 }
 0x422   : > { %5128 = vmatpush3.bf16.msra.mxu0 %v5127_v16 }
 0x425   : > { %v4996_v48 = vpop.f32.mrb[170].mxu0 }
 0x426   : > { %v3423_v26 = vpop.f32.mrb[171].mxu0 }
 0x427   : > { %v5129_v25 = vpack.c.bf16 %v4996_v48, %v3423_v26 }
 0x429   : > { %5130 = vmatprep.subr.bf16.mxu0 %v5129_v25 }
 0x42a   : > { %5132 = vmatpush3.bf16.msra.mxu0 %v5131_v6 }
 0x42d   : > { %v6864_v34 = vpop.f32.mrb[172].mxu0  ;;  %4341 = vmatmul.mubr.msk.f32.vlgmr.msra.gmra.mrb[204].mxu0 %vm3618_vm0, %v5218_v49  ;;  %vm3633_vm0 = vcmp.eq.s32.totalorder %v6817_v24, %v6849_v9 }
 0x42e   : > { %v3433_v21 = vpop.f32.mrb[173].mxu0  ;;  %4342 = vmatprep.mubr.msk.f32.mxu0 %vm3623_vm3, %v5218_v49  ;;  %vm3630_vm3 = vcmp.eq.s32.totalorder %v6817_v24, %v3605_v32 }
 0x42f   : > { %v5135_v28 = vpack.c.bf16 %v6864_v34, %v3433_v21 }
 0x431   : > { %4343 = vmatmul.mubr.msk.f32.gmra.mrb[206].mxu0 %vm3622_vm7, %v5218_v49  ;;  %vm3637_vm7 = vcmp.eq.s32.totalorder %v6822_v51, %v6849_v9 }
 0x432   : > { %4344 = vmatprep.mubr.msk.f32.mxu0 %vm3627_vm2, %v5218_v49  ;;  %vm3642_vm2 = vcmp.eq.s32.totalorder %v6832_v47, %v3605_v32 }
 0x435   : > { %v5002_v62 = vpop.f32.mrb[174].mxu0  ;;  %4345 = vmatmul.mubr.msk.f32.gmra.mrb[208].mxu0 %vm3626_vm10, %v5218_v49  ;;  %vm3634_vm10 = vcmp.eq.s32.totalorder %v6822_v51, %v3605_v32 }
 0x436   : > { %v3443_v44 = vpop.f32.mrb[175].mxu0  ;;  %4346 = vmatprep.mubr.msk.f32.mxu0 %vm3631_vm11, %v5218_v49  ;;  %vm3636_vm11 = vcmp.eq.s32.totalorder %v6822_v51, %v6856_v5 }
 0x437   : > { %v5139_v59 = vpack.c.bf16 %v5002_v62, %v3443_v44 }
 0x439   : > { %4347 = vmatmul.mubr.msk.f32.gmra.mrb[210].mxu0 %vm3630_vm3, %v5218_v49  ;;  %vm3638_vm3 = vcmp.eq.s32.totalorder %v6827_v12, %v3605_v32 }
 0x43a   : > { %4348 = vmatprep.mubr.msk.f32.mxu0 %vm3635_vm12, %v5218_v49  ;;  %vm3649_vm12 = vcmp.eq.s32.totalorder %v6838_v15, %v6849_v9 }
 0x43d   : > { %v5005_v63 = vpop.f32.mrb[176].mxu0  ;;  %4349 = vmatmul.mubr.msk.f32.gmra.mrb[212].mxu0 %vm3634_vm10, %v5218_v49  ;;  %vm3645_vm10 = vcmp.eq.s32.totalorder %v6832_v47, %v6849_v9 }
 0x43e   : > { %v3453_v22 = vpop.f32.mrb[177].mxu0  ;;  %4350 = vmatprep.mubr.msk.f32.mxu0 %vm3639_vm13, %v5218_v49  ;;  %vm3644_vm13 = vcmp.eq.s32.totalorder %v6832_v47, %v6856_v5 }
 0x43f   : > { %v5143_v18 = vpack.c.bf16 %v5005_v63, %v3453_v22 }
 0x441   : > { %4351 = vmatmul.mubr.msk.f32.gmra.mrb[214].mxu0 %vm3638_vm3, %v5218_v49  ;;  %vm3646_vm3 = vcmp.eq.s32.totalorder %v6838_v15, %v3605_v32 }
 0x442   : > { %4352 = vmatprep.mubr.msk.f32.mxu0 %vm3643_vm14, %v5218_v49  ;;  %vm3648_vm14 = vcmp.eq.s32.totalorder %v6838_v15, %v6856_v5 }
 0x445   : > { %v5008_v3 = vpop.f32.mrb[178].mxu0  ;;  %4353 = vmatmul.mubr.msk.f32.gmra.mrb[216].mxu0 %vm3642_vm2, %v5218_v49 }
 0x446   : > { %v3463_v42 = vpop.f32.mrb[179].mxu0  ;;  %4354 = vmatprep.mubr.msk.f32.mxu0 %vm3647_vm15, %v5218_v49  ;;  %vm7269_vm15 = vcmp.eq.s32.totalorder %v6817_v24, %v6856_v5 }
 0x447   : > { %v5147_v35 = vpack.c.bf16 %v5008_v3, %v3463_v42 }
 0x449   : > { %4355 = vmatmul.mubr.msk.f32.gmra.mrb[218].mxu0 %vm3646_vm3, %v5218_v49 }
 0x44a   : > { %4356 = vmatprep.mubr.msk.f32.mxu0 %vm3621_vm4, %v5218_v49  ;;  %vm7270_vm4 = vcmp.eq.s32.totalorder %v6827_v12, %v6849_v9 }
 0x44d   : > { %v5011_v7 = vpop.f32.mrb[180].mxu0 }
 0x44e   : > { %v3473_v61 = vpop.f32.mrb[181].mxu0 }
 0x44f   : > { %v5151_v2 = vpack.c.bf16 %v5011_v7, %v3473_v61 }
 0x455   : > { %v5014_v23 = vpop.f32.mrb[182].mxu0 }
 0x456   : > { %v3483_v54 = vpop.f32.mrb[183].mxu0 }
 0x457   : > { %v5155_v16 = vpack.c.bf16 %v5014_v23, %v3483_v54 }
 0x45d   : > { %v5017_v52 = vpop.f32.mrb[184].mxu0 }
 0x45e   : > { %v3493_v1 = vpop.f32.mrb[185].mxu0 }
 0x45f   : > { %v5159_v6 = vpack.c.bf16 %v5017_v52, %v3493_v1 }
 0x465   : > { %v5020_v38 = vpop.f32.mrb[186].mxu0 }
 0x466   : > { %v3503_v60 = vpop.f32.mrb[187].mxu0 }
 0x467   : > { %v5163_v19 = vpack.c.bf16 %v5020_v38, %v3503_v60 }
 0x46d   : > { %v5023_v40 = vpop.f32.mrb[188].mxu0 }
 0x46e   : > { %v3513_v4 = vpop.f32.mrb[189].mxu0 }
 0x46f   : > { %v5133_v41 = vpack.c.bf16 %v5023_v40, %v3513_v4 }
 0x471   : > { %5134 = vmatprep.subr.bf16.mxu0 %v5133_v41 }
 0x472   : > { %5136 = vmatpush3.bf16.msra.mxu0 %v5135_v28 }
 0x475   : > { %v5026_v57 = vpop.f32.mrb[190].mxu0 }
 0x476   : > { %v3523_v58 = vpop.f32.mrb[191].mxu0 }
 0x477   : > { %v5137_v30 = vpack.c.bf16 %v5026_v57, %v3523_v58 }
 0x479   : > { %5138 = vmatprep.subr.bf16.mxu0 %v5137_v30  ;;  %v3717_v30 = vld [vmem:[%s7122_s7 + $0x18] sm:$0xff] }
 0x47a   : > { %5140 = vmatpush3.bf16.msra.mxu0 %v5139_v59 }
 0x47d   : > { %v5029_v55 = vpop.f32.mrb[192].mxu0 }
 0x47e   : > { %v3533_v10 = vpop.f32.mrb[193].mxu0 }
 0x47f   : > { %v5141_v13 = vpack.c.bf16 %v5029_v55, %v3533_v10 }
 0x481   : > { %5142 = vmatprep.subr.bf16.mxu0 %v5141_v13 }
 0x482   : > { %5144 = vmatpush3.bf16.msra.mxu0 %v5143_v18 }
 0x485   : > { %v5032_v39 = vpop.f32.mrb[194].mxu0 }
 0x486   : > { %v3543_v17 = vpop.f32.mrb[195].mxu0 }
 0x487   : > { %v5145_v11 = vpack.c.bf16 %v5032_v39, %v3543_v17 }
 0x489   : > { %5146 = vmatprep.subr.bf16.mxu0 %v5145_v11  ;;  %v3718_v11 = vld [vmem:[%s7122_s7 + $0x20] sm:$0xff] }
 0x48a   : > { %5148 = vmatpush3.bf16.msra.mxu0 %v5147_v35  ;;  %v3714_v35 = vld [vmem:[%s7122_s7] sm:$0xff] }
 0x48d   : > { %v5035_v37 = vpop.f32.mrb[196].mxu0 }
 0x48e   : > { %v3553_v27 = vpop.f32.mrb[197].mxu0 }
 0x48f   : > { %v5149_v45 = vpack.c.bf16 %v5035_v37, %v3553_v27 }
 0x491   : > { %5150 = vmatprep.subr.bf16.mxu0 %v5149_v45 }
 0x492   : > { %5152 = vmatpush3.bf16.msra.mxu0 %v5151_v2 }
 0x495   : > { %v5038_v29 = vpop.f32.mrb[198].mxu0 }
 0x496   : > { %v3563_v31 = vpop.f32.mrb[199].mxu0 }
 0x497   : > { %v5153_v33 = vpack.c.bf16 %v5038_v29, %v3563_v31 }
 0x499   : > { %5154 = vmatprep.subr.bf16.mxu0 %v5153_v33  ;;  %v3719_v33 = vld [vmem:[%s7122_s7 + $0x28] sm:$0xff] }
 0x49a   : > { %5156 = vmatpush3.bf16.msra.mxu0 %v5155_v16  ;;  %v3715_v16 = vld [vmem:[%s7122_s7 + $0x8] sm:$0xff] }
 0x49d   : > { %v5041_v0 = vpop.f32.mrb[200].mxu0 }
 0x49e   : > { %v3573_v46 = vpop.f32.mrb[201].mxu0 }
 0x49f   : > { %v5157_v20 = vpack.c.bf16 %v5041_v0, %v3573_v46 }
 0x4a1   : > { %5158 = vmatprep.subr.bf16.mxu0 %v5157_v20 }
 0x4a2   : > { %5160 = vmatpush3.bf16.msra.mxu0 %v5159_v6 }
 0x4a5   : > { %v5044_v8 = vpop.f32.mrb[202].mxu0 }
 0x4a6   : > { %v3583_v14 = vpop.f32.mrb[203].mxu0 }
 0x4a7   : > { %v5161_v48 = vpack.c.bf16 %v5044_v8, %v3583_v14 }
 0x4a9   : > { %5162 = vmatprep.subr.bf16.mxu0 %v5161_v48  ;;  %v3720_v48 = vld [vmem:[%s7122_s7 + $0x30] sm:$0xff] }
 0x4aa   : > { %5164 = vmatpush3.bf16.msra.mxu0 %v5163_v19  ;;  %v3716_v19 = vld [vmem:[%s7122_s7 + $0x10] sm:$0xff] }
 0x4ad   : > { %4357 = vmatmul.mubr.msk.f32.vlgmr.msra.gmra.mrb[220].mxu0 %vm3620_vm5, %v5218_v49  ;;  %vm7271_vm5 = vcmp.eq.s32.totalorder %v6827_v12, %v6856_v5 }
 0x4ae   : > { %4358 = vmatprep.mubr.msk.f32.mxu0 %vm3625_vm6, %v5218_v49  ;;  %vm3940_vm6 = vcmask 64512  }
 0x4b1   : > { %4359 = vmatmul.mubr.msk.f32.gmra.mrb[222].mxu0 %vm3624_vm8, %v5218_v49 }
 0x4b2   : > { %4360 = vmatprep.mubr.msk.f32.mxu0 %vm3629_vm9, %v5218_v49 }
 0x4b5   : > { %4361 = vmatmul.mubr.msk.f32.gmra.mrb[224].mxu0 %vm3628_vm1, %v5218_v49 }
 0x4b6   : > { %4362 = vmatprep.mubr.msk.f32.mxu0 %vm3633_vm0, %v5218_v49 }
 0x4b9   : > { %4363 = vmatmul.mubr.msk.f32.gmra.mrb[226].mxu0 %vm7269_vm15, %v5218_v49 }
 0x4ba   : > { %4364 = vmatprep.mubr.msk.f32.mxu0 %vm3637_vm7, %v5218_v49 }
 0x4bd   : > { %4365 = vmatmul.mubr.msk.f32.gmra.mrb[228].mxu0 %vm3636_vm11, %v5218_v49 }
 0x4be   : > { %4366 = vmatprep.mubr.msk.f32.mxu0 %vm7270_vm4, %v5218_v49 }
 0x4c1   : > { %4367 = vmatmul.mubr.msk.f32.gmra.mrb[230].mxu0 %vm7271_vm5, %v5218_v49 }
 0x4c2   : > { %4368 = vmatprep.mubr.msk.f32.mxu0 %vm3645_vm10, %v5218_v49 }
 0x4c5   : > { %4369 = vmatmul.mubr.msk.f32.gmra.mrb[232].mxu0 %vm3644_vm13, %v5218_v49 }
 0x4c6   : > { %4370 = vmatprep.mubr.msk.f32.mxu0 %vm3649_vm12, %v5218_v49 }
 0x4c9   : > { %4371 = vmatmul.mubr.msk.f32.gmra.mrb[234].mxu0 %vm3648_vm14, %v5218_v49 }
 0x500   : > { %v4625_v36 = vpop.f32.mrb[204].mxu0 }
 0x501   : > { %v4626_v56 = vpop.f32.mrb[205].mxu0 }
 0x502   : > { %v4627_v24 = vadd.f32 %v4626_v56, %v4625_v36 }
 0x504   : > { %v4628_v51 = vpop.f32.mrb[206].mxu0 }
 0x505   : > { %v4629_v12 = vpop.f32.mrb[207].mxu0 }
 0x506   : > { %v4630_v26 = vadd.f32 %v4629_v12, %v4628_v51 }
 0x508   : > { %v4631_v32 = vpop.f32.mrb[208].mxu0 }
 0x509   : > { %v4632_v25 = vpop.f32.mrb[209].mxu0 }
 0x50a   : > { %v4633_v47 = vadd.f32 %v4632_v25, %v4631_v32 }
 0x50c   : > { %v4634_v43 = vpop.f32.mrb[210].mxu0 }
 0x50d   : > { %v4635_v50 = vpop.f32.mrb[211].mxu0 }
 0x50e   : > { %v4636_v53 = vadd.f32 %v4635_v50, %v4634_v43 }
 0x510   : > { %v4637_v34 = vpop.f32.mrb[212].mxu0 }
 0x511   : > { %v4638_v9 = vpop.f32.mrb[213].mxu0 }
 0x512   : > { %v4639_v21 = vadd.f32 %v4638_v9, %v4637_v34 }
 0x514   : > { %v4640_v28 = vpop.f32.mrb[214].mxu0 }
 0x515   : > { %v4641_v62 = vpop.f32.mrb[215].mxu0 }
 0x516   : > { %v4642_v44 = vadd.f32 %v4641_v62, %v4640_v28 }
 0x518   : > { %v4643_v15 = vpop.f32.mrb[216].mxu0 }
 0x519   : > { %v4644_v49 = vpop.f32.mrb[217].mxu0 }
 0x51a   : > { %v4645_v5 = vadd.f32 %v4644_v49, %v4643_v15 }
 0x51c   : > { %v4646_v59 = vpop.f32.mrb[218].mxu0 }
 0x51d   : > { %v4647_v63 = vpop.f32.mrb[219].mxu0 }
 0x51e   : > { %v4648_v22 = vadd.f32 %v4647_v63, %v4646_v59 }
 0x580   : > { %v4681_v18 = vpop.f32.mrb[220].mxu0 }
 0x581   : > { %v4682_v3 = vpop.f32.mrb[221].mxu0 }
 0x582   : > { %v4683_v42 = vadd.f32 %v4682_v3, %v4681_v18 }
 0x584   : > { %v3894_v7 = vadd.f32 %v4683_v42, %v4627_v24  ;;  %v4684_v61 = vpop.f32.mrb[222].mxu0 }
 0x585   : > { %v4685_v2 = vpop.f32.mrb[223].mxu0 }
 0x586   : > { %v3932_v23 = vadd.f32 %v3894_v7, %v3714_v35  ;;  %v4686_v54 = vadd.f32 %v4685_v2, %v4684_v61 }
 0x588   : > { %3941 = vst.msk [vmem:[%s7122_s7] sm:$0xff] %vm3940_vm6, %v3932_v23  ;;  %v3899_v52 = vadd.f32 %v4686_v54, %v4630_v26  ;;  %v4687_v1 = vpop.f32.mrb[224].mxu0  ;;  %v3721_v26 = vld [vmem:[%s7122_s7 + $0x38] sm:$0xff] }
 0x589   : > { %v4688_v6 = vpop.f32.mrb[225].mxu0 }
 0x58a   : > { %v3933_v38 = vadd.f32 %v3899_v52, %v3715_v16  ;;  %v4689_v60 = vadd.f32 %v4688_v6, %v4687_v1 }
 0x58c   : > { %3942 = vst.msk [vmem:[%s7122_s7 + $0x8] sm:$0xff] %vm3940_vm6, %v3933_v38  ;;  %v3904_v40 = vadd.f32 %v4689_v60, %v4633_v47  ;;  %v4690_v4 = vpop.f32.mrb[226].mxu0 }
 0x58d   : > { %v4691_v41 = vpop.f32.mrb[227].mxu0 }
 0x58e   : > { %v3934_v57 = vadd.f32 %v3904_v40, %v3716_v19  ;;  %v4692_v58 = vadd.f32 %v4691_v41, %v4690_v4 }
 0x58f   : > { %v3953_v47 = vld [vmem:[%s7122_s7] sm:$0xff] (!%p4372_p6) }
 0x590   : > { %3943 = vst.msk [vmem:[%s7122_s7 + $0x10] sm:$0xff] %vm3940_vm6, %v3934_v57  ;;  %v3909_v55 = vadd.f32 %v4692_v58, %v4636_v53  ;;  %v4693_v10 = vpop.f32.mrb[228].mxu0  ;;  %v3961_v53 = vmul.f32 (!%p4372_p6), 0.00390625, %v3953_v47 }
 0x591   : > { %v4694_v13 = vpop.f32.mrb[229].mxu0 }
 0x592   : > { %v3935_v39 = vadd.f32 %v3909_v55, %v3717_v30  ;;  %v4695_v17 = vadd.f32 %v4694_v13, %v4693_v10  ;;  %3969 = vst.msk [vmem:[%s7122_s7] sm:$0xff] (!%p4372_p6), %vm3940_vm6, %v3961_v53 }
 0x593   : > { %v3954_v43 = vld [vmem:[%s7122_s7 + $0x8] sm:$0xff] (!%p4372_p6) }
 0x594   : > { %3944 = vst.msk [vmem:[%s7122_s7 + $0x18] sm:$0xff] %vm3940_vm6, %v3935_v39  ;;  %v3914_v37 = vadd.f32 %v4695_v17, %v4639_v21  ;;  %v4696_v27 = vpop.f32.mrb[230].mxu0  ;;  %v3962_v34 = vmul.f32 (!%p4372_p6), 0.00390625, %v3954_v43 }
 0x595   : > { %v4697_v45 = vpop.f32.mrb[231].mxu0 }
 0x596   : > { %v3936_v29 = vadd.f32 %v3914_v37, %v3718_v11  ;;  %v4698_v31 = vadd.f32 %v4697_v45, %v4696_v27  ;;  %3970 = vst.msk [vmem:[%s7122_s7 + $0x8] sm:$0xff] (!%p4372_p6), %vm3940_vm6, %v3962_v34 }
 0x597   : > { %v3955_v50 = vld [vmem:[%s7122_s7 + $0x10] sm:$0xff] (!%p4372_p6) }
 0x598   : > { %3945 = vst.msk [vmem:[%s7122_s7 + $0x20] sm:$0xff] %vm3940_vm6, %v3936_v29  ;;  %v3919_v0 = vadd.f32 %v4698_v31, %v4642_v44  ;;  %v4699_v46 = vpop.f32.mrb[232].mxu0  ;;  %v3963_v9 = vmul.f32 (!%p4372_p6), 0.00390625, %v3955_v50 }
 0x599   : > { %v4700_v20 = vpop.f32.mrb[233].mxu0 }
 0x59a   : > { %v3937_v8 = vadd.f32 %v3919_v0, %v3719_v33  ;;  %v4701_v14 = vadd.f32 %v4700_v20, %v4699_v46  ;;  %3971 = vst.msk [vmem:[%s7122_s7 + $0x10] sm:$0xff] (!%p4372_p6), %vm3940_vm6, %v3963_v9 }
 0x59b   : > { %v3956_v21 = vld [vmem:[%s7122_s7 + $0x18] sm:$0xff] (!%p4372_p6) }
 0x59c   : > { %3946 = vst.msk [vmem:[%s7122_s7 + $0x28] sm:$0xff] %vm3940_vm6, %v3937_v8  ;;  %v3924_v36 = vadd.f32 %v4701_v14, %v4645_v5  ;;  %v4702_v56 = vpop.f32.mrb[234].mxu0  ;;  %v3964_v44 = vmul.f32 (!%p4372_p6), 0.00390625, %v3956_v21 }
 0x59d   : > { %v4703_v24 = vpop.f32.mrb[235].mxu0 }
 0x59e   : > { %v3938_v51 = vadd.f32 %v3924_v36, %v3720_v48  ;;  %v4704_v12 = vadd.f32 %v4703_v24, %v4702_v56  ;;  %3952 = sbr.rel (%p4372_p6) target bundleno = 1455 (0x5af), region = 56  ;;  %3972 = vst.msk [vmem:[%s7122_s7 + $0x18] sm:$0xff] (!%p4372_p6), %vm3940_vm6, %v3964_v44 }
 0x59f   : > { %v3957_v28 = vld [vmem:[%s7122_s7 + $0x20] sm:$0xff] (!%p4372_p6) }
 0x5a0   : > { %3947 = vst.msk [vmem:[%s7122_s7 + $0x30] sm:$0xff] %vm3940_vm6, %v3938_v51  ;;  %v3929_v32 = vadd.f32 %v4704_v12, %v4648_v22  ;;  %v3965_v15 = vmul.f32 (!%p4372_p6), 0.00390625, %v3957_v28 }
 0x5a2   : > { %v3939_v25 = vadd.f32 %v3929_v32, %v3721_v26  ;;  %3973 = vst.msk [vmem:[%s7122_s7 + $0x20] sm:$0xff] (!%p4372_p6), %vm3940_vm6, %v3965_v15 }
 0x5a3   : > { %v3958_v62 = vld [vmem:[%s7122_s7 + $0x28] sm:$0xff] (!%p4372_p6) }
 0x5a4   : > { %3948 = vst.msk [vmem:[%s7122_s7 + $0x38] sm:$0xff] %vm3940_vm6, %v3939_v25  ;;  %v3966_v49 = vmul.f32 (!%p4372_p6), 0.00390625, %v3958_v62 }
 0x5a6   : > { %3974 = vst.msk [vmem:[%s7122_s7 + $0x28] sm:$0xff] %vm3940_vm6, %v3966_v49 }
 0x5a7   : > { %v3959_v5 = vld [vmem:[%s7122_s7 + $0x30] sm:$0xff] }
 0x5a8   : > { %v3967_v63 = vmul.f32 0.00390625, %v3959_v5 }
 0x5aa   : > { %3975 = vst.msk [vmem:[%s7122_s7 + $0x30] sm:$0xff] %vm3940_vm6, %v3967_v63 }
 0x5ab   : > { %v3960_v59 = vld [vmem:[%s7122_s7 + $0x38] sm:$0xff] }
 0x5ac   : > { %v3968_v22 = vmul.f32 0.00390625, %v3960_v59 }
 0x5ae   : > { %3976 = vst.msk [vmem:[%s7122_s7 + $0x38] sm:$0xff] %vm3940_vm6, %v3968_v22 }
 0x5af PF: > { %s17_s24 = sadd.s32 1, %s5213_s24  }
 0x5b0   : > { %p14_p7 = scmp.ge.s32.totalorder %s17_s24, 4  }
 0x5b2   :  { %16 = sbr.rel (!%p14_p7) target bundleno = 1 (0x1), region = 88 }

</bundles_post_ra>
